<compile_context>
chip_gen: v7x
topology: tpu7x:2x2x1
jax: 0.10.0
libtpu: 0.0.40
codegen_flags: <defaults>
</compile_context>

<pallas_src>
import functools
import math

import jax
import jax.numpy as jnp
from jax import lax
from jax.experimental import pallas as pl
from jax.experimental.pallas import tpu as pltpu

LANE = 128
SUBLANE = 8


# --------------------------------------------------------------------------- #
# Pallas kernel 1: pre-NN state features (margins / rel rates / closeout)      #
# --------------------------------------------------------------------------- #
def _state_features_kernel(r0_ref, r1_ref, acr_ref, tm_ref, ots_ref, otr_ref,
                           feat_ref, closeout_ref,
                           *, n_cur, max_trades, leverage):
    inv_lev = 1.0 / leverage                   # compile-time constant
    f0 = n_cur * max_trades
    n_sub = tm_ref.shape[0] // SUBLANE

    def sub_body(r, carry):
        off = pl.multiple_of(r * SUBLANE, SUBLANE)
        sl = pl.ds(off, SUBLANE)

        tm = tm_ref[sl, :]                                    # (8, 128)
        inv_tm = pl.reciprocal(tm, approx=True)
        total_used = jnp.zeros_like(tm)
        pl_sum = jnp.zeros_like(tm)

        for i in range(n_cur):
            r0_i = r0_ref[i, sl, :]
            r1_i = r1_ref[i, sl, :]
            inv_acr_i = pl.reciprocal(acr_ref[i, sl, :], approx=True)
            first_i = ots_ref[i, max_trades - 1, sl, :]
            close_i = jnp.where(first_i > 0.0, r0_i,
                                jnp.where(first_i < 0.0, r1_i, 1.0))
            inv_close_i = pl.reciprocal(close_i, approx=True)
            inv_mean_r_i = 2.0 * pl.reciprocal(r0_i + r1_i, approx=True)
            for t in range(max_trades):
                s_it = ots_ref[i, t, sl, :]
                r_it = otr_ref[i, t, sl, :]
                acc_size = s_it * inv_acr_i
                margin = acc_size * inv_lev
                total_used = total_used + jnp.abs(margin)
                pl_sum = pl_sum + acc_size * (1.0 - r_it * inv_close_i)
                # rel_margins (flatten(0,1) ordering) and rel_open_rates rows.
                feat_ref[i * max_trades + t, sl, :] = margin * inv_tm
                feat_ref[f0 + 1 + i * max_trades + t, sl, :] = r_it * inv_mean_r_i

        total_unused = jnp.maximum(tm - total_used, 0.0)
        feat_ref[f0, sl, :] = total_unused * inv_tm
        account_value = tm + pl_sum
        closeout_ref[sl, :] = (account_value < 0.5 * total_used).astype(jnp.int32)
        return carry

    lax.fori_loop(0, n_sub, sub_body, None)


# --------------------------------------------------------------------------- #
# Pallas kernel 2: per-currency trade-accounting / loss loop                   #
# --------------------------------------------------------------------------- #
def _loss_loop_kernel(r0_ref, r1_ref, acr_ref, tm_ref, ots_ref, otr_ref,
                      closeout_ref, zlp_ref, frac_ref, elp_ref, bl_ref,
                      sur_ref, loss_ref, tm_out_ref, ots_out_ref, otr_out_ref,
                      *, n_cur, max_trades, leverage):
    inv_lev = 1.0 / leverage
    n_sub = tm_ref.shape[0] // SUBLANE

    def sub_body(r, carry):
        off = pl.multiple_of(r * SUBLANE, SUBLANE)
        sl = pl.ds(off, SUBLANE)

        total_margin = tm_ref[sl, :]                          # (8, 128)
        closeout = closeout_ref[sl, :] != 0
        not_closeout = jnp.logical_not(closeout)
        z_logprob = zlp_ref[sl, :]
        zero = jnp.zeros_like(total_margin)
        surrogate = zero
        loss = zero
        cum_elp = zero

        # Running sum of per-currency used margins (|net pos| / (lev*acr)),
        # initialized from the ORIGINAL trade state and updated with a single
        # delta per currency (removes the O(n_cur^2) re-summation).
        total_used = zero
        for j in range(n_cur):
            pos_j = ots_ref[j, 0, sl, :]
            for t in range(1, max_trades):
                pos_j = pos_j + ots_ref[j, t, sl, :]
            total_used = total_used + (jnp.abs(pos_j) * inv_lev *
                                       pl.reciprocal(acr_ref[j, sl, :],
                                                     approx=True))

        for i in range(n_cur):
            # ---- stream per-currency inputs (short live ranges) -------------
            r0_i = r0_ref[i, sl, :]
            r1_i = r1_ref[i, sl, :]
            acr_i = acr_ref[i, sl, :]
            inv_acr_i = pl.reciprocal(acr_i, approx=True)
            frac_i = frac_ref[i, sl, :]
            bl_i = bl_ref[i, sl, :]

            first_i = ots_ref[i, max_trades - 1, sl, :]
            last_i = ots_ref[i, 0, sl, :]
            # close rate recomputed locally (2 selects) — no HBM round trip.
            close_i = jnp.where(first_i > 0.0, r0_i,
                                jnp.where(first_i < 0.0, r1_i, 1.0))
            inv_close_i = pl.reciprocal(close_i, approx=True)

            # masks from the ORIGINAL currency-i state (== precomputing them
            # before the loop, since iteration i only mutates currency i).
            prod_i = frac_i * first_i
            add_i = not_closeout & (last_i == 0.0) & (prod_i > 0.0)
            rr_i = (closeout & (first_i != 0.0)) | (prod_i < 0.0)
            np_i = not_closeout & (first_i == 0.0) & (frac_i != 0.0)
            open_i = jnp.where(frac_i > 0.0, r1_i,
                               jnp.where(frac_i < 0.0, r0_i, 0.0))
            cum_elp = cum_elp + jnp.where(rr_i & not_closeout,
                                          elp_ref[i, sl, :], 0.0)

            # ---- available margin -------------------------------------------
            total_unused = total_margin - total_used
            no_unused = total_unused <= 0.0
            total_unused = jnp.where(no_unused, 0.0, total_unused)
            has_unused = jnp.logical_not(no_unused)
            add_i = add_i & has_unused
            np_i = np_i & has_unused

            pos_i = ots_ref[i, 0, sl, :]
            for t in range(1, max_trades):
                pos_i = pos_i + ots_ref[i, t, sl, :]
            used_i = jnp.abs(pos_i) * inv_lev * inv_acr_i

            available = total_unused + jnp.where(rr_i, used_i, 0.0)
            exec_sizes = frac_i * available * leverage * acr_i
            exec_sizes = jnp.where(closeout, -pos_i, exec_sizes)

            # ---- fused add-trade roll + close/reduce pass ---------------------
            # Slots t < max_trades-1 are final after this pass and written back
            # immediately; only the last slot needs flip / new-position care.
            closed_pl = zero
            left = exec_sizes                  # left cumulative size diff
            pos_new = zero
            last_s = None
            last_r = None
            close_last = None
            right_last = None
            for t in range(max_trades):
                if t < max_trades - 1:
                    s_roll = ots_ref[i, t + 1, sl, :]
                    r_roll = otr_ref[i, t + 1, sl, :]
                else:
                    s_roll = exec_sizes
                    r_roll = open_i
                s_t = jnp.where(add_i, s_roll, ots_ref[i, t, sl, :])
                r_t = jnp.where(add_i, r_roll, otr_ref[i, t, sl, :])
                run = left + s_t               # right_cum[t]
                close_t = rr_i & (run * exec_sizes >= 0.0)
                reduce_t = (left * run) < 0.0
                closed_t = jnp.where(close_t, s_t,
                                     jnp.where(reduce_t, left, 0.0))
                s_new = jnp.where(close_t, 0.0,
                                  jnp.where(reduce_t, run, s_t))
                r_new = jnp.where(close_t, 0.0, r_t)
                # NOTE: uses the *updated* (zeroed-where-closed) trade rate —
                # exactly matches the in-place PyTorch view semantics.
                closed_pl = closed_pl + (jnp.abs(closed_t) * inv_acr_i
                                         * (1.0 - r_new * inv_close_i))
                if t < max_trades - 1:
                    ots_out_ref[i, t, sl, :] = s_new
                    otr_out_ref[i, t, sl, :] = r_new
                    if i < n_cur - 1:
                        pos_new = pos_new + s_new
                else:
                    last_s = s_new
                    last_r = r_new
                    close_last = close_t
                    right_last = run
                left = run

            # ---- loss / surrogate ---------------------------------------------
            logprob = z_logprob + cum_elp
            # exact division kept on the cost path (log1p == log(1+x) here).
            cost = jnp.log(1.0 + closed_pl / total_margin)
            cost_adv = cost - bl_i
            surrogate = surrogate - (logprob * cost_adv + cost) + cost_adv * cost_adv
            loss = loss - cost
            total_margin = total_margin + closed_pl

            # ---- flip / new-position handling of the last slot ----------------
            flip = close_last & (right_last != 0.0)
            final_s = jnp.where(flip, right_last,
                                jnp.where(np_i, exec_sizes, last_s))
            final_r = jnp.where(flip | np_i, open_i, last_r)
            ots_out_ref[i, max_trades - 1, sl, :] = final_s
            otr_out_ref[i, max_trades - 1, sl, :] = final_r

            # ---- incremental total_used refresh --------------------------------
            if i < n_cur - 1:
                pos_new = pos_new + final_s
                used_new = jnp.abs(pos_new) * inv_lev * inv_acr_i
                total_used = total_used + (used_new - used_i)

        sur_ref[sl, :] = surrogate
        loss_ref[sl, :] = loss
        tm_out_ref[sl, :] = total_margin
        return carry

    lax.fori_loop(0, n_sub, sub_body, None)


# --------------------------------------------------------------------------- #
# Layout helpers: flat-batch axis B  ->  padded (B1, 128) lane-dense tiles      #
# --------------------------------------------------------------------------- #
def _to_tiles(x, b_real, b_pad, fill):
    pad = b_pad - b_real
    if pad:
        cfg = [(0, 0)] * (x.ndim - 1) + [(0, pad)]
        x = jnp.pad(x, cfg, constant_values=fill)
    return x.reshape(x.shape[:-1] + (b_pad // LANE, LANE))


def _from_tiles(x, b_real):
    x = x.reshape(x.shape[:-2] + (-1,))
    return x[..., :b_real]


# --------------------------------------------------------------------------- #
# Forward pass (glue in plain JAX, hot paths in the Pallas kernels above)      #
# --------------------------------------------------------------------------- #
def loss_evaluator_forward(params, batch_data, z0, rates, account_cur_rates,
                           total_margin, open_trades_sizes, open_trades_rates,
                           rng, *, n_samples, seq_len, batch_size, n_cur,
                           max_trades, z_dim, leverage, block_elems=8192):
    # block_elems: per-grid-step lane-tile size (multiple of 8*128).  8192
    # keeps the double-buffered working set around ~5 MiB per kernel (fits the
    # default scoped VMEM on v5e/v6e/v7x); raise to 16384 on v5e/v6e with
    # vmem_limit_bytes if desired.
    assert block_elems % (SUBLANE * LANE) == 0
    B = n_samples * seq_len * batch_size
    F = 2 * n_cur * max_trades + 1

    b_pad = ((B + block_elems - 1) // block_elems) * block_elems
    b1 = b_pad // LANE
    tb1 = block_elems // LANE
    nblk = b_pad // block_elems

    # ---- flatten trailing (n_samples, seq_len, batch_size) into B -----------
    # TODO(synk): avoid the n_samples broadcast with a 2-D (sample, block) grid.
    r_b = jnp.broadcast_to(
        rates[:, :, None],
        (2, n_cur, n_samples, seq_len, batch_size)).reshape(2, n_cur, B)
    acr_b = jnp.broadcast_to(
        account_cur_rates[:, None],
        (n_cur, n_samples, seq_len, batch_size)).reshape(n_cur, B)

    r0_t = _to_tiles(r_b[0], B, b_pad, 1.0)
    r1_t = _to_tiles(r_b[1], B, b_pad, 1.0)
    acr_t = _to_tiles(acr_b, B, b_pad, 1.0)
    tm_t = _to_tiles(total_margin.reshape(B), B, b_pad, 1.0)
    ots_t = _to_tiles(open_trades_sizes.reshape(n_cur, max_trades, B),
                      B, b_pad, 0.0)
    otr_t = _to_tiles(open_trades_rates.reshape(n_cur, max_trades, B),
                      B, b_pad, 0.0)

    row_spec = pl.BlockSpec((tb1, LANE), lambda b: (b, 0))
    cur_spec = pl.BlockSpec((n_cur, tb1, LANE), lambda b: (0, b, 0))
    trade_spec = pl.BlockSpec((n_cur, max_trades, tb1, LANE),
                              lambda b: (0, 0, b, 0))
    feat_spec = pl.BlockSpec((F, tb1, LANE), lambda b: (0, b, 0))
    cparams = pltpu.CompilerParams(dimension_semantics=("parallel",))

    # ---- Pallas kernel 1: state features / closeout mask ---------------------
    feat, closeout = pl.pallas_call(
        functools.partial(_state_features_kernel, n_cur=n_cur,
                          max_trades=max_trades, leverage=leverage),
        out_shape=(jax.ShapeDtypeStruct((F, b1, LANE), jnp.float32),
                   jax.ShapeDtypeStruct((b1, LANE), jnp.int32)),
        grid=(nblk,),
        in_specs=[cur_spec, cur_spec, cur_spec, row_spec, trade_spec,
                  trade_spec],
        out_specs=(feat_spec, row_spec),
        compiler_params=cparams,
    )(r0_t, r1_t, acr_t, tm_t, ots_t, otr_t)

    feat2d = _from_tiles(feat, B)                 # (F, B), lane-major

    # ---- tiny NN heads: plain XLA (Pallas adds no value at these sizes) ------
    pooled = jnp.mean(batch_data, axis=(2, 3))                       # (B, C)
    cnn_pre = pooled @ params['w_cnn_pool'] + params['b_cnn']
    cnn_pre = cnn_pre + jnp.einsum('fb,fh->bh', feat2d, params['w_cnn_feat'])
    out = jax.nn.relu(cnn_pre)
    out4 = out.reshape(n_samples, seq_len, batch_size, -1)

    # ---- GatedTransition + NeuralBaseline surrogates (fused dense head) ------
    h = jnp.concatenate([out4, z0], axis=-1).reshape(B, -1)
    w_head = jnp.concatenate([params['w_loc'], params['w_scale'],
                              params['w_bl']], axis=1)
    b_head = jnp.concatenate([params['b_loc'], params['b_scale'],
                              params['b_bl']], axis=0)
    hz = h @ w_head + b_head
    z_loc = hz[:, :z_dim]
    z_scale = jax.nn.softplus(hz[:, z_dim:2 * z_dim]) + 1e-3
    baseline_bn = hz[:, 2 * z_dim:]                                  # (B, n_cur)

    # ---- TransformedDistribution(Normal, [elementwise affine IAF]) ----------
    k_eps, k_exec = jax.random.split(rng)
    eps = jax.random.normal(k_eps, z_loc.shape, dtype=jnp.float32)
    x = z_loc + z_scale * eps
    z_sample_flat = params['iaf_loc'] + jnp.exp(params['iaf_log_scale']) * x
    base_lp = (-0.5 * ((x - z_loc) / z_scale) ** 2
               - jnp.log(z_scale) - 0.5 * math.log(2.0 * math.pi))
    z_logprob = jnp.sum(base_lp, axis=-1) - jnp.sum(params['iaf_log_scale'])
    z_sample = z_sample_flat.reshape(n_samples, seq_len, batch_size, z_dim)

    # ---- Emitter surrogate + Bernoulli sampling ------------------------------
    em = z_sample_flat @ params['w_em'] + params['b_em']             # (B, 2*n_cur)
    exec_logits = em[:, :n_cur]
    fractions_bn = jnp.tanh(em[:, n_cur:])
    p = jax.nn.sigmoid(exec_logits)
    u = jax.random.uniform(k_exec, exec_logits.shape, dtype=jnp.float32)
    exec_samples = (u < p).astype(jnp.float32)
    exec_logprobs_bn = (exec_samples * jax.nn.log_sigmoid(exec_logits)
                        + (1.0 - exec_samples) * jax.nn.log_sigmoid(-exec_logits))
    fractions_bn = jnp.where(exec_samples > 0.5, fractions_bn, 0.0)

    zlp_t = _to_tiles(z_logprob, B, b_pad, 0.0)
    frac_t = _to_tiles(fractions_bn.T, B, b_pad, 0.0)
    elp_t = _to_tiles(exec_logprobs_bn.T, B, b_pad, 0.0)
    bl_t = _to_tiles(baseline_bn.T, B, b_pad, 0.0)

    # ---- Pallas kernel 2: per-currency accounting / loss loop ---------------
    surrogate, loss, tm_out, ots_out, otr_out = pl.pallas_call(
        functools.partial(_loss_loop_kernel, n_cur=n_cur,
                          max_trades=max_trades, leverage=leverage),
        out_shape=(jax.ShapeDtypeStruct((b1, LANE), jnp.float32),
                   jax.ShapeDtypeStruct((b1, LANE), jnp.float32),
                   jax.ShapeDtypeStruct((b1, LANE), jnp.float32),
                   jax.ShapeDtypeStruct((n_cur, max_trades, b1, LANE),
                                        jnp.float32),
                   jax.ShapeDtypeStruct((n_cur, max_trades, b1, LANE),
                                        jnp.float32)),
        grid=(nblk,),
        in_specs=[cur_spec, cur_spec, cur_spec, row_spec, trade_spec,
                  trade_spec, row_spec, row_spec, cur_spec, cur_spec, cur_spec],
        out_specs=(row_spec, row_spec, row_spec, trade_spec, trade_spec),
        # donate the (largest) trade-state buffers to the matching outputs;
        # every block is fully overwritten with identical index maps -> safe.
        input_output_aliases={3: 2, 4: 3, 5: 4},
        compiler_params=cparams,
    )(r0_t, r1_t, acr_t, tm_t, ots_t, otr_t, closeout,
      zlp_t, frac_t, elp_t, bl_t)

    shp = (n_samples, seq_len, batch_size)
    return (_from_tiles(surrogate, B).reshape(shp),
            _from_tiles(loss, B).reshape(shp),
            z_sample,
            _from_tiles(tm_out, B).reshape(shp),
            _from_tiles(ots_out, B).reshape(n_cur, max_trades, *shp),
            _from_tiles(otr_out, B).reshape(n_cur, max_trades, *shp))


# --------------------------------------------------------------------------- #
if __name__ == "__main__":
    batch_size, seq_len, n_samples = 2, 4, 2
    n_cur, max_trades, z_dim = 3, 4, 8
    leverage = 1.0
    C, H, W = 4, 8, 8
    N = n_samples * seq_len * batch_size
    cnn_hidden = 16
    F = 2 * n_cur * max_trades + 1

    key = jax.random.PRNGKey(0)
    keys = jax.random.split(key, 12)

    params = {
        'w_cnn_pool': 0.1 * jax.random.normal(keys[0], (C, cnn_hidden), jnp.float32),
        'w_cnn_feat': 0.1 * jax.random.normal(keys[10], (F, cnn_hidden), jnp.float32),
        'b_cnn': jnp.zeros((cnn_hidden,), jnp.float32),
        'w_loc': 0.1 * jax.random.normal(keys[1], (cnn_hidden + z_dim, z_dim), jnp.float32),
        'b_loc': jnp.zeros((z_dim,), jnp.float32),
        'w_scale': 0.1 * jax.random.normal(keys[2], (cnn_hidden + z_dim, z_dim), jnp.float32),
        'b_scale': jnp.zeros((z_dim,), jnp.float32),
        'w_em': 0.1 * jax.random.normal(keys[3], (z_dim, 2 * n_cur), jnp.float32),
        'b_em': jnp.zeros((2 * n_cur,), jnp.float32),
        'w_bl': 0.1 * jax.random.normal(keys[4], (cnn_hidden + z_dim, n_cur), jnp.float32),
        'b_bl': jnp.zeros((n_cur,), jnp.float32),
        'iaf_loc': jnp.linspace(-0.05, 0.05, z_dim, dtype=jnp.float32),
        'iaf_log_scale': jnp.linspace(-0.1, 0.1, z_dim, dtype=jnp.float32),
    }

    batch_data = jax.random.normal(keys[5], (N, C, H, W), jnp.float32)
    z0 = 0.1 * jax.random.normal(keys[6], (n_samples, seq_len, batch_size, z_dim),
                                 jnp.float32)

    mid = 1.0 + 0.05 * jax.random.normal(keys[7], (n_cur, seq_len, batch_size),
                                         jnp.float32)
    rates = jnp.stack([mid * 0.999, mid * 1.001], axis=0)
    account_cur_rates = 1.0 + 0.05 * jax.random.normal(
        keys[8], (n_cur, seq_len, batch_size), jnp.float32)
    total_margin = jnp.ones((n_samples, seq_len, batch_size), jnp.float32)

    # one open trade per currency in the "oldest" slot (index max_trades-1),
    # satisfying the module's validity-mask invariants.
    ots = jnp.zeros((n_cur, max_trades, n_samples, seq_len, batch_size), jnp.float32)
    otr = jnp.zeros_like(ots)
    trade_sz = 0.01 * (1.0 + jnp.arange(n_cur, dtype=jnp.float32))
    trade_sz = jnp.broadcast_to(trade_sz[:, None, None, None],
                                (n_cur, n_samples, seq_len, batch_size))
    trade_rt = jnp.broadcast_to(mid[:, None],
                                (n_cur, n_samples, seq_len, batch_size))
    ots = ots.at[:, max_trades - 1].set(trade_sz)
    otr = otr.at[:, max_trades - 1].set(trade_rt)

    fwd = jax.jit(functools.partial(
        loss_evaluator_forward,
        n_samples=n_samples, seq_len=seq_len, batch_size=batch_size,
        n_cur=n_cur, max_trades=max_trades, z_dim=z_dim, leverage=leverage))

    outs = fwd(params, batch_data, z0, rates, account_cur_rates,
               total_margin, ots, otr, keys[9])
    jax.block_until_ready(outs)
    print("KERNEL_OK")
</pallas_src>

<mosaic_0001>
module attributes {stable_mosaic.version = 11 : i64} {
  func.func @_state_features_kernel(%arg0: i32, %arg1: memref<3x64x128xf32, #tpu.memory_space<vmem>>, %arg2: memref<3x64x128xf32, #tpu.memory_space<vmem>>, %arg3: memref<3x64x128xf32, #tpu.memory_space<vmem>>, %arg4: memref<64x128xf32, #tpu.memory_space<vmem>>, %arg5: memref<3x4x64x128xf32, #tpu.memory_space<vmem>>, %arg6: memref<3x4x64x128xf32, #tpu.memory_space<vmem>>, %arg7: memref<25x64x128xf32, #tpu.memory_space<vmem>>, %arg8: memref<64x128xi32, #tpu.memory_space<vmem>>) attributes {dimension_semantics = [#tpu.dimension_semantics<parallel>], iteration_bounds = array<i64: 1>, scalar_prefetch = 0 : i64, scratch_operands = 0 : i64, tpu.core_type = #tpu.core_type<tc>, window_params = [{transform_indices = @transform_0, window_bounds = array<i64: 3, 64, 128>}, {transform_indices = @transform_1, window_bounds = array<i64: 3, 64, 128>}, {transform_indices = @transform_2, window_bounds = array<i64: 3, 64, 128>}, {transform_indices = @transform_3, window_bounds = array<i64: 64, 128>}, {transform_indices = @transform_4, window_bounds = array<i64: 3, 4, 64, 128>}, {transform_indices = @transform_5, window_bounds = array<i64: 3, 4, 64, 128>}, {transform_indices = @transform_6, window_bounds = array<i64: 25, 64, 128>}, {transform_indices = @transform_7, window_bounds = array<i64: 64, 128>}]} {
    %c0_i32 = arith.constant 0 : i32
    %c8_i32 = arith.constant 8 : i32
    %0 = arith.addi %c0_i32, %c8_i32 : i32
    %c1_i32 = arith.constant 1 : i32
    scf.for %arg9 = %c0_i32 to %0 step %c1_i32  : i32 {
      %c8_i32_1 = arith.constant 8 : i32
      %1 = arith.muli %arg9, %c8_i32_1 : i32
      %2 = tpu.assume_multiple %1, 8 : i32
      %3 = arith.index_cast %2 : i32 to index
      %c0 = arith.constant 0 : index
      %4 = vector.load %arg4[%3, %c0] : memref<64x128xf32, #tpu.memory_space<vmem>>, vector<8x128xf32>
      %5 = tpu.reciprocal %4 {approx = true} : vector<8x128xf32> -> vector<8x128xf32>
      %cst = arith.constant 0.000000e+00 : f32
      %6 = vector.broadcast %cst : f32 to vector<8x128xf32>
      %cst_2 = arith.constant 0.000000e+00 : f32
      %7 = vector.broadcast %cst_2 : f32 to vector<8x128xf32>
      %c0_3 = arith.constant 0 : index
      %8 = arith.index_cast %2 : i32 to index
      %c0_4 = arith.constant 0 : index
      %9 = vector.load %arg1[%c0_3, %8, %c0_4] : memref<3x64x128xf32, #tpu.memory_space<vmem>>, vector<1x8x128xf32>
      %10 = vector.shape_cast %9 : vector<1x8x128xf32> to vector<8x128xf32>
      %c0_5 = arith.constant 0 : index
      %11 = arith.index_cast %2 : i32 to index
      %c0_6 = arith.constant 0 : index
      %12 = vector.load %arg2[%c0_5, %11, %c0_6] : memref<3x64x128xf32, #tpu.memory_space<vmem>>, vector<1x8x128xf32>
      %13 = vector.shape_cast %12 : vector<1x8x128xf32> to vector<8x128xf32>
      %c0_7 = arith.constant 0 : index
      %14 = arith.index_cast %2 : i32 to index
      %c0_8 = arith.constant 0 : index
      %15 = vector.load %arg3[%c0_7, %14, %c0_8] : memref<3x64x128xf32, #tpu.memory_space<vmem>>, vector<1x8x128xf32>
      %16 = vector.shape_cast %15 : vector<1x8x128xf32> to vector<8x128xf32>
      %17 = tpu.reciprocal %16 {approx = true} : vector<8x128xf32> -> vector<8x128xf32>
      %c0_9 = arith.constant 0 : index
      %c3 = arith.constant 3 : index
      %18 = arith.index_cast %2 : i32 to index
      %c0_10 = arith.constant 0 : index
      %19 = vector.load %arg5[%c0_9, %c3, %18, %c0_10] : memref<3x4x64x128xf32, #tpu.memory_space<vmem>>, vector<1x1x8x128xf32>
      %20 = vector.shape_cast %19 : vector<1x1x8x128xf32> to vector<8x128xf32>
      %cst_11 = arith.constant 0.000000e+00 : f32
      %21 = vector.broadcast %cst_11 : f32 to vector<8x128xf32>
      %22 = arith.cmpf ogt, %20, %21 : vector<8x128xf32>
      %cst_12 = arith.constant 0.000000e+00 : f32
      %23 = vector.broadcast %cst_12 : f32 to vector<8x128xf32>
      %24 = arith.cmpf olt, %20, %23 : vector<8x128xf32>
      %cst_13 = arith.constant 1.000000e+00 : f32
      %25 = vector.broadcast %cst_13 : f32 to vector<8x128xf32>
      %26 = arith.select %24, %13, %25 : vector<8x128xi1>, vector<8x128xf32>
      %27 = arith.select %22, %10, %26 : vector<8x128xi1>, vector<8x128xf32>
      %28 = tpu.reciprocal %27 {approx = true} : vector<8x128xf32> -> vector<8x128xf32>
      %29 = arith.addf %10, %13 : vector<8x128xf32>
      %30 = tpu.reciprocal %29 {approx = true} : vector<8x128xf32> -> vector<8x128xf32>
      %cst_14 = arith.constant 2.000000e+00 : f32
      %31 = vector.broadcast %cst_14 : f32 to vector<8x128xf32>
      %32 = arith.mulf %31, %30 : vector<8x128xf32>
      %c0_15 = arith.constant 0 : index
      %c0_16 = arith.constant 0 : index
      %33 = arith.index_cast %2 : i32 to index
      %c0_17 = arith.constant 0 : index
      %34 = vector.load %arg5[%c0_15, %c0_16, %33, %c0_17] : memref<3x4x64x128xf32, #tpu.memory_space<vmem>>, vector<1x1x8x128xf32>
      %35 = vector.shape_cast %34 : vector<1x1x8x128xf32> to vector<8x128xf32>
      %c0_18 = arith.constant 0 : index
      %c0_19 = arith.constant 0 : index
      %36 = arith.index_cast %2 : i32 to index
      %c0_20 = arith.constant 0 : index
      %37 = vector.load %arg6[%c0_18, %c0_19, %36, %c0_20] : memref<3x4x64x128xf32, #tpu.memory_space<vmem>>, vector<1x1x8x128xf32>
      %38 = vector.shape_cast %37 : vector<1x1x8x128xf32> to vector<8x128xf32>
      %39 = arith.mulf %35, %17 : vector<8x128xf32>
      %cst_21 = arith.constant 1.000000e+00 : f32
      %40 = vector.broadcast %cst_21 : f32 to vector<8x128xf32>
      %41 = arith.mulf %39, %40 : vector<8x128xf32>
      %42 = math.absf %41 : vector<8x128xf32>
      %43 = arith.addf %6, %42 : vector<8x128xf32>
      %44 = arith.mulf %38, %28 : vector<8x128xf32>
      %cst_22 = arith.constant 1.000000e+00 : f32
      %45 = vector.broadcast %cst_22 : f32 to vector<8x128xf32>
      %46 = arith.subf %45, %44 : vector<8x128xf32>
      %47 = arith.mulf %39, %46 : vector<8x128xf32>
      %48 = arith.addf %7, %47 : vector<8x128xf32>
      %49 = arith.mulf %41, %5 : vector<8x128xf32>
      %c0_23 = arith.constant 0 : index
      %50 = arith.index_cast %2 : i32 to index
      %c0_24 = arith.constant 0 : index
      %51 = vector.load %arg7[%c0_23, %50, %c0_24] : memref<25x64x128xf32, #tpu.memory_space<vmem>>, vector<1x8x128xf32>
      %52 = vector.shape_cast %51 : vector<1x8x128xf32> to vector<8x128xf32>
      %53 = vector.shape_cast %49 : vector<8x128xf32> to vector<1x8x128xf32>
      tpu.vector_store %arg7[%c0_23, %50, %c0_24], %53 {strides = array<i32>} : memref<25x64x128xf32, #tpu.memory_space<vmem>>, vector<1x8x128xf32>,
      %54 = arith.mulf %38, %32 : vector<8x128xf32>
      %c13 = arith.constant 13 : index
      %55 = arith.index_cast %2 : i32 to index
      %c0_25 = arith.constant 0 : index
      %56 = vector.load %arg7[%c13, %55, %c0_25] : memref<25x64x128xf32, #tpu.memory_space<vmem>>, vector<1x8x128xf32>
      %57 = vector.shape_cast %56 : vector<1x8x128xf32> to vector<8x128xf32>
      %58 = vector.shape_cast %54 : vector<8x128xf32> to vector<1x8x128xf32>
      tpu.vector_store %arg7[%c13, %55, %c0_25], %58 {strides = array<i32>} : memref<25x64x128xf32, #tpu.memory_space<vmem>>, vector<1x8x128xf32>,
      %c0_26 = arith.constant 0 : index
      %c1 = arith.constant 1 : index
      %59 = arith.index_cast %2 : i32 to index
      %c0_27 = arith.constant 0 : index
      %60 = vector.load %arg5[%c0_26, %c1, %59, %c0_27] : memref<3x4x64x128xf32, #tpu.memory_space<vmem>>, vector<1x1x8x128xf32>
      %61 = vector.shape_cast %60 : vector<1x1x8x128xf32> to vector<8x128xf32>
      %c0_28 = arith.constant 0 : index
      %c1_29 = arith.constant 1 : index
      %62 = arith.index_cast %2 : i32 to index
      %c0_30 = arith.constant 0 : index
      %63 = vector.load %arg6[%c0_28, %c1_29, %62, %c0_30] : memref<3x4x64x128xf32, #tpu.memory_space<vmem>>, vector<1x1x8x128xf32>
      %64 = vector.shape_cast %63 : vector<1x1x8x128xf32> to vector<8x128xf32>
      %65 = arith.mulf %61, %17 : vector<8x128xf32>
      %cst_31 = arith.constant 1.000000e+00 : f32
      %66 = vector.broadcast %cst_31 : f32 to vector<8x128xf32>
      %67 = arith.mulf %65, %66 : vector<8x128xf32>
      %68 = math.absf %67 : vector<8x128xf32>
      %69 = arith.addf %43, %68 : vector<8x128xf32>
      %70 = arith.mulf %64, %28 : vector<8x128xf32>
      %cst_32 = arith.constant 1.000000e+00 : f32
      %71 = vector.broadcast %cst_32 : f32 to vector<8x128xf32>
      %72 = arith.subf %71, %70 : vector<8x128xf32>
      %73 = arith.mulf %65, %72 : vector<8x128xf32>
      %74 = arith.addf %48, %73 : vector<8x128xf32>
      %75 = arith.mulf %67, %5 : vector<8x128xf32>
      %c1_33 = arith.constant 1 : index
      %76 = arith.index_cast %2 : i32 to index
      %c0_34 = arith.constant 0 : index
      %77 = vector.load %arg7[%c1_33, %76, %c0_34] : memref<25x64x128xf32, #tpu.memory_space<vmem>>, vector<1x8x128xf32>
      %78 = vector.shape_cast %77 : vector<1x8x128xf32> to vector<8x128xf32>
      %79 = vector.shape_cast %75 : vector<8x128xf32> to vector<1x8x128xf32>
      tpu.vector_store %arg7[%c1_33, %76, %c0_34], %79 {strides = array<i32>} : memref<25x64x128xf32, #tpu.memory_space<vmem>>, vector<1x8x128xf32>,
      %80 = arith.mulf %64, %32 : vector<8x128xf32>
      %c14 = arith.constant 14 : index
      %81 = arith.index_cast %2 : i32 to index
      %c0_35 = arith.constant 0 : index
      %82 = vector.load %arg7[%c14, %81, %c0_35] : memref<25x64x128xf32, #tpu.memory_space<vmem>>, vector<1x8x128xf32>
      %83 = vector.shape_cast %82 : vector<1x8x128xf32> to vector<8x128xf32>
      %84 = vector.shape_cast %80 : vector<8x128xf32> to vector<1x8x128xf32>
      tpu.vector_store %arg7[%c14, %81, %c0_35], %84 {strides = array<i32>} : memref<25x64x128xf32, #tpu.memory_space<vmem>>, vector<1x8x128xf32>,
      %c0_36 = arith.constant 0 : index
      %c2 = arith.constant 2 : index
      %85 = arith.index_cast %2 : i32 to index
      %c0_37 = arith.constant 0 : index
      %86 = vector.load %arg5[%c0_36, %c2, %85, %c0_37] : memref<3x4x64x128xf32, #tpu.memory_space<vmem>>, vector<1x1x8x128xf32>
      %87 = vector.shape_cast %86 : vector<1x1x8x128xf32> to vector<8x128xf32>
      %c0_38 = arith.constant 0 : index
      %c2_39 = arith.constant 2 : index
      %88 = arith.index_cast %2 : i32 to index
      %c0_40 = arith.constant 0 : index
      %89 = vector.load %arg6[%c0_38, %c2_39, %88, %c0_40] : memref<3x4x64x128xf32, #tpu.memory_space<vmem>>, vector<1x1x8x128xf32>
      %90 = vector.shape_cast %89 : vector<1x1x8x128xf32> to vector<8x128xf32>
      %91 = arith.mulf %87, %17 : vector<8x128xf32>
      %cst_41 = arith.constant 1.000000e+00 : f32
      %92 = vector.broadcast %cst_41 : f32 to vector<8x128xf32>
      %93 = arith.mulf %91, %92 : vector<8x128xf32>
      %94 = math.absf %93 : vector<8x128xf32>
      %95 = arith.addf %69, %94 : vector<8x128xf32>
      %96 = arith.mulf %90, %28 : vector<8x128xf32>
      %cst_42 = arith.constant 1.000000e+00 : f32
      %97 = vector.broadcast %cst_42 : f32 to vector<8x128xf32>
      %98 = arith.subf %97, %96 : vector<8x128xf32>
      %99 = arith.mulf %91, %98 : vector<8x128xf32>
      %100 = arith.addf %74, %99 : vector<8x128xf32>
      %101 = arith.mulf %93, %5 : vector<8x128xf32>
      %c2_43 = arith.constant 2 : index
      %102 = arith.index_cast %2 : i32 to index
      %c0_44 = arith.constant 0 : index
      %103 = vector.load %arg7[%c2_43, %102, %c0_44] : memref<25x64x128xf32, #tpu.memory_space<vmem>>, vector<1x8x128xf32>
      %104 = vector.shape_cast %103 : vector<1x8x128xf32> to vector<8x128xf32>
      %105 = vector.shape_cast %101 : vector<8x128xf32> to vector<1x8x128xf32>
      tpu.vector_store %arg7[%c2_43, %102, %c0_44], %105 {strides = array<i32>} : memref<25x64x128xf32, #tpu.memory_space<vmem>>, vector<1x8x128xf32>,
      %106 = arith.mulf %90, %32 : vector<8x128xf32>
      %c15 = arith.constant 15 : index
      %107 = arith.index_cast %2 : i32 to index
      %c0_45 = arith.constant 0 : index
      %108 = vector.load %arg7[%c15, %107, %c0_45] : memref<25x64x128xf32, #tpu.memory_space<vmem>>, vector<1x8x128xf32>
      %109 = vector.shape_cast %108 : vector<1x8x128xf32> to vector<8x128xf32>
      %110 = vector.shape_cast %106 : vector<8x128xf32> to vector<1x8x128xf32>
      tpu.vector_store %arg7[%c15, %107, %c0_45], %110 {strides = array<i32>} : memref<25x64x128xf32, #tpu.memory_space<vmem>>, vector<1x8x128xf32>,
      %c0_46 = arith.constant 0 : index
      %c3_47 = arith.constant 3 : index
      %111 = arith.index_cast %2 : i32 to index
      %c0_48 = arith.constant 0 : index
      %112 = vector.load %arg5[%c0_46, %c3_47, %111, %c0_48] : memref<3x4x64x128xf32, #tpu.memory_space<vmem>>, vector<1x1x8x128xf32>
      %113 = vector.shape_cast %112 : vector<1x1x8x128xf32> to vector<8x128xf32>
      %c0_49 = arith.constant 0 : index
      %c3_50 = arith.constant 3 : index
      %114 = arith.index_cast %2 : i32 to index
      %c0_51 = arith.constant 0 : index
      %115 = vector.load %arg6[%c0_49, %c3_50, %114, %c0_51] : memref<3x4x64x128xf32, #tpu.memory_space<vmem>>, vector<1x1x8x128xf32>
      %116 = vector.shape_cast %115 : vector<1x1x8x128xf32> to vector<8x128xf32>
      %117 = arith.mulf %113, %17 : vector<8x128xf32>
      %cst_52 = arith.constant 1.000000e+00 : f32
      %118 = vector.broadcast %cst_52 : f32 to vector<8x128xf32>
      %119 = arith.mulf %117, %118 : vector<8x128xf32>
      %120 = math.absf %119 : vector<8x128xf32>
      %121 = arith.addf %95, %120 : vector<8x128xf32>
      %122 = arith.mulf %116, %28 : vector<8x128xf32>
      %cst_53 = arith.constant 1.000000e+00 : f32
      %123 = vector.broadcast %cst_53 : f32 to vector<8x128xf32>
      %124 = arith.subf %123, %122 : vector<8x128xf32>
      %125 = arith.mulf %117, %124 : vector<8x128xf32>
      %126 = arith.addf %100, %125 : vector<8x128xf32>
      %127 = arith.mulf %119, %5 : vector<8x128xf32>
      %c3_54 = arith.constant 3 : index
      %128 = arith.index_cast %2 : i32 to index
      %c0_55 = arith.constant 0 : index
      %129 = vector.load %arg7[%c3_54, %128, %c0_55] : memref<25x64x128xf32, #tpu.memory_space<vmem>>, vector<1x8x128xf32>
      %130 = vector.shape_cast %129 : vector<1x8x128xf32> to vector<8x128xf32>
      %131 = vector.shape_cast %127 : vector<8x128xf32> to vector<1x8x128xf32>
      tpu.vector_store %arg7[%c3_54, %128, %c0_55], %131 {strides = array<i32>} : memref<25x64x128xf32, #tpu.memory_space<vmem>>, vector<1x8x128xf32>,
      %132 = arith.mulf %116, %32 : vector<8x128xf32>
      %c16 = arith.constant 16 : index
      %133 = arith.index_cast %2 : i32 to index
      %c0_56 = arith.constant 0 : index
      %134 = vector.load %arg7[%c16, %133, %c0_56] : memref<25x64x128xf32, #tpu.memory_space<vmem>>, vector<1x8x128xf32>
      %135 = vector.shape_cast %134 : vector<1x8x128xf32> to vector<8x128xf32>
      %136 = vector.shape_cast %132 : vector<8x128xf32> to vector<1x8x128xf32>
      tpu.vector_store %arg7[%c16, %133, %c0_56], %136 {strides = array<i32>} : memref<25x64x128xf32, #tpu.memory_space<vmem>>, vector<1x8x128xf32>,
      %c1_57 = arith.constant 1 : index
      %137 = arith.index_cast %2 : i32 to index
      %c0_58 = arith.constant 0 : index
      %138 = vector.load %arg1[%c1_57, %137, %c0_58] : memref<3x64x128xf32, #tpu.memory_space<vmem>>, vector<1x8x128xf32>
      %139 = vector.shape_cast %138 : vector<1x8x128xf32> to vector<8x128xf32>
      %c1_59 = arith.constant 1 : index
      %140 = arith.index_cast %2 : i32 to index
      %c0_60 = arith.constant 0 : index
      %141 = vector.load %arg2[%c1_59, %140, %c0_60] : memref<3x64x128xf32, #tpu.memory_space<vmem>>, vector<1x8x128xf32>
      %142 = vector.shape_cast %141 : vector<1x8x128xf32> to vector<8x128xf32>
      %c1_61 = arith.constant 1 : index
      %143 = arith.index_cast %2 : i32 to index
      %c0_62 = arith.constant 0 : index
      %144 = vector.load %arg3[%c1_61, %143, %c0_62] : memref<3x64x128xf32, #tpu.memory_space<vmem>>, vector<1x8x128xf32>
      %145 = vector.shape_cast %144 : vector<1x8x128xf32> to vector<8x128xf32>
      %146 = tpu.reciprocal %145 {approx = true} : vector<8x128xf32> -> vector<8x128xf32>
      %c1_63 = arith.constant 1 : index
      %c3_64 = arith.constant 3 : index
      %147 = arith.index_cast %2 : i32 to index
      %c0_65 = arith.constant 0 : index
      %148 = vector.load %arg5[%c1_63, %c3_64, %147, %c0_65] : memref<3x4x64x128xf32, #tpu.memory_space<vmem>>, vector<1x1x8x128xf32>
      %149 = vector.shape_cast %148 : vector<1x1x8x128xf32> to vector<8x128xf32>
      %cst_66 = arith.constant 0.000000e+00 : f32
      %150 = vector.broadcast %cst_66 : f32 to vector<8x128xf32>
      %151 = arith.cmpf ogt, %149, %150 : vector<8x128xf32>
      %cst_67 = arith.constant 0.000000e+00 : f32
      %152 = vector.broadcast %cst_67 : f32 to vector<8x128xf32>
      %153 = arith.cmpf olt, %149, %152 : vector<8x128xf32>
      %cst_68 = arith.constant 1.000000e+00 : f32
      %154 = vector.broadcast %cst_68 : f32 to vector<8x128xf32>
      %155 = arith.select %153, %142, %154 : vector<8x128xi1>, vector<8x128xf32>
      %156 = arith.select %151, %139, %155 : vector<8x128xi1>, vector<8x128xf32>
      %157 = tpu.reciprocal %156 {approx = true} : vector<8x128xf32> -> vector<8x128xf32>
      %158 = arith.addf %139, %142 : vector<8x128xf32>
      %159 = tpu.reciprocal %158 {approx = true} : vector<8x128xf32> -> vector<8x128xf32>
      %cst_69 = arith.constant 2.000000e+00 : f32
      %160 = vector.broadcast %cst_69 : f32 to vector<8x128xf32>
      %161 = arith.mulf %160, %159 : vector<8x128xf32>
      %c1_70 = arith.constant 1 : index
      %c0_71 = arith.constant 0 : index
      %162 = arith.index_cast %2 : i32 to index
      %c0_72 = arith.constant 0 : index
      %163 = vector.load %arg5[%c1_70, %c0_71, %162, %c0_72] : memref<3x4x64x128xf32, #tpu.memory_space<vmem>>, vector<1x1x8x128xf32>
      %164 = vector.shape_cast %163 : vector<1x1x8x128xf32> to vector<8x128xf32>
      %c1_73 = arith.constant 1 : index
      %c0_74 = arith.constant 0 : index
      %165 = arith.index_cast %2 : i32 to index
      %c0_75 = arith.constant 0 : index
      %166 = vector.load %arg6[%c1_73, %c0_74, %165, %c0_75] : memref<3x4x64x128xf32, #tpu.memory_space<vmem>>, vector<1x1x8x128xf32>
      %167 = vector.shape_cast %166 : vector<1x1x8x128xf32> to vector<8x128xf32>
      %168 = arith.mulf %164, %146 : vector<8x128xf32>
      %cst_76 = arith.constant 1.000000e+00 : f32
      %169 = vector.broadcast %cst_76 : f32 to vector<8x128xf32>
      %170 = arith.mulf %168, %169 : vector<8x128xf32>
      %171 = math.absf %170 : vector<8x128xf32>
      %172 = arith.addf %121, %171 : vector<8x128xf32>
      %173 = arith.mulf %167, %157 : vector<8x128xf32>
      %cst_77 = arith.constant 1.000000e+00 : f32
      %174 = vector.broadcast %cst_77 : f32 to vector<8x128xf32>
      %175 = arith.subf %174, %173 : vector<8x128xf32>
      %176 = arith.mulf %168, %175 : vector<8x128xf32>
      %177 = arith.addf %126, %176 : vector<8x128xf32>
      %178 = arith.mulf %170, %5 : vector<8x128xf32>
      %c4 = arith.constant 4 : index
      %179 = arith.index_cast %2 : i32 to index
      %c0_78 = arith.constant 0 : index
      %180 = vector.load %arg7[%c4, %179, %c0_78] : memref<25x64x128xf32, #tpu.memory_space<vmem>>, vector<1x8x128xf32>
      %181 = vector.shape_cast %180 : vector<1x8x128xf32> to vector<8x128xf32>
      %182 = vector.shape_cast %178 : vector<8x128xf32> to vector<1x8x128xf32>
      tpu.vector_store %arg7[%c4, %179, %c0_78], %182 {strides = array<i32>} : memref<25x64x128xf32, #tpu.memory_space<vmem>>, vector<1x8x128xf32>,
      %183 = arith.mulf %167, %161 : vector<8x128xf32>
      %c17 = arith.constant 17 : index
      %184 = arith.index_cast %2 : i32 to index
      %c0_79 = arith.constant 0 : index
      %185 = vector.load %arg7[%c17, %184, %c0_79] : memref<25x64x128xf32, #tpu.memory_space<vmem>>, vector<1x8x128xf32>
      %186 = vector.shape_cast %185 : vector<1x8x128xf32> to vector<8x128xf32>
      %187 = vector.shape_cast %183 : vector<8x128xf32> to vector<1x8x128xf32>
      tpu.vector_store %arg7[%c17, %184, %c0_79], %187 {strides = array<i32>} : memref<25x64x128xf32, #tpu.memory_space<vmem>>, vector<1x8x128xf32>,
      %c1_80 = arith.constant 1 : index
      %c1_81 = arith.constant 1 : index
      %188 = arith.index_cast %2 : i32 to index
      %c0_82 = arith.constant 0 : index
      %189 = vector.load %arg5[%c1_80, %c1_81, %188, %c0_82] : memref<3x4x64x128xf32, #tpu.memory_space<vmem>>, vector<1x1x8x128xf32>
      %190 = vector.shape_cast %189 : vector<1x1x8x128xf32> to vector<8x128xf32>
      %c1_83 = arith.constant 1 : index
      %c1_84 = arith.constant 1 : index
      %191 = arith.index_cast %2 : i32 to index
      %c0_85 = arith.constant 0 : index
      %192 = vector.load %arg6[%c1_83, %c1_84, %191, %c0_85] : memref<3x4x64x128xf32, #tpu.memory_space<vmem>>, vector<1x1x8x128xf32>
      %193 = vector.shape_cast %192 : vector<1x1x8x128xf32> to vector<8x128xf32>
      %194 = arith.mulf %190, %146 : vector<8x128xf32>
      %cst_86 = arith.constant 1.000000e+00 : f32
      %195 = vector.broadcast %cst_86 : f32 to vector<8x128xf32>
      %196 = arith.mulf %194, %195 : vector<8x128xf32>
      %197 = math.absf %196 : vector<8x128xf32>
      %198 = arith.addf %172, %197 : vector<8x128xf32>
      %199 = arith.mulf %193, %157 : vector<8x128xf32>
      %cst_87 = arith.constant 1.000000e+00 : f32
      %200 = vector.broadcast %cst_87 : f32 to vector<8x128xf32>
      %201 = arith.subf %200, %199 : vector<8x128xf32>
      %202 = arith.mulf %194, %201 : vector<8x128xf32>
      %203 = arith.addf %177, %202 : vector<8x128xf32>
      %204 = arith.mulf %196, %5 : vector<8x128xf32>
      %c5 = arith.constant 5 : index
      %205 = arith.index_cast %2 : i32 to index
      %c0_88 = arith.constant 0 : index
      %206 = vector.load %arg7[%c5, %205, %c0_88] : memref<25x64x128xf32, #tpu.memory_space<vmem>>, vector<1x8x128xf32>
      %207 = vector.shape_cast %206 : vector<1x8x128xf32> to vector<8x128xf32>
      %208 = vector.shape_cast %204 : vector<8x128xf32> to vector<1x8x128xf32>
      tpu.vector_store %arg7[%c5, %205, %c0_88], %208 {strides = array<i32>} : memref<25x64x128xf32, #tpu.memory_space<vmem>>, vector<1x8x128xf32>,
      %209 = arith.mulf %193, %161 : vector<8x128xf32>
      %c18 = arith.constant 18 : index
      %210 = arith.index_cast %2 : i32 to index
      %c0_89 = arith.constant 0 : index
      %211 = vector.load %arg7[%c18, %210, %c0_89] : memref<25x64x128xf32, #tpu.memory_space<vmem>>, vector<1x8x128xf32>
      %212 = vector.shape_cast %211 : vector<1x8x128xf32> to vector<8x128xf32>
      %213 = vector.shape_cast %209 : vector<8x128xf32> to vector<1x8x128xf32>
      tpu.vector_store %arg7[%c18, %210, %c0_89], %213 {strides = array<i32>} : memref<25x64x128xf32, #tpu.memory_space<vmem>>, vector<1x8x128xf32>,
      %c1_90 = arith.constant 1 : index
      %c2_91 = arith.constant 2 : index
      %214 = arith.index_cast %2 : i32 to index
      %c0_92 = arith.constant 0 : index
      %215 = vector.load %arg5[%c1_90, %c2_91, %214, %c0_92] : memref<3x4x64x128xf32, #tpu.memory_space<vmem>>, vector<1x1x8x128xf32>
      %216 = vector.shape_cast %215 : vector<1x1x8x128xf32> to vector<8x128xf32>
      %c1_93 = arith.constant 1 : index
      %c2_94 = arith.constant 2 : index
      %217 = arith.index_cast %2 : i32 to index
      %c0_95 = arith.constant 0 : index
      %218 = vector.load %arg6[%c1_93, %c2_94, %217, %c0_95] : memref<3x4x64x128xf32, #tpu.memory_space<vmem>>, vector<1x1x8x128xf32>
      %219 = vector.shape_cast %218 : vector<1x1x8x128xf32> to vector<8x128xf32>
      %220 = arith.mulf %216, %146 : vector<8x128xf32>
      %cst_96 = arith.constant 1.000000e+00 : f32
      %221 = vector.broadcast %cst_96 : f32 to vector<8x128xf32>
      %222 = arith.mulf %220, %221 : vector<8x128xf32>
      %223 = math.absf %222 : vector<8x128xf32>
      %224 = arith.addf %198, %223 : vector<8x128xf32>
      %225 = arith.mulf %219, %157 : vector<8x128xf32>
      %cst_97 = arith.constant 1.000000e+00 : f32
      %226 = vector.broadcast %cst_97 : f32 to vector<8x128xf32>
      %227 = arith.subf %226, %225 : vector<8x128xf32>
      %228 = arith.mulf %220, %227 : vector<8x128xf32>
      %229 = arith.addf %203, %228 : vector<8x128xf32>
      %230 = arith.mulf %222, %5 : vector<8x128xf32>
      %c6 = arith.constant 6 : index
      %231 = arith.index_cast %2 : i32 to index
      %c0_98 = arith.constant 0 : index
      %232 = vector.load %arg7[%c6, %231, %c0_98] : memref<25x64x128xf32, #tpu.memory_space<vmem>>, vector<1x8x128xf32>
      %233 = vector.shape_cast %232 : vector<1x8x128xf32> to vector<8x128xf32>
      %234 = vector.shape_cast %230 : vector<8x128xf32> to vector<1x8x128xf32>
      tpu.vector_store %arg7[%c6, %231, %c0_98], %234 {strides = array<i32>} : memref<25x64x128xf32, #tpu.memory_space<vmem>>, vector<1x8x128xf32>,
      %235 = arith.mulf %219, %161 : vector<8x128xf32>
      %c19 = arith.constant 19 : index
      %236 = arith.index_cast %2 : i32 to index
      %c0_99 = arith.constant 0 : index
      %237 = vector.load %arg7[%c19, %236, %c0_99] : memref<25x64x128xf32, #tpu.memory_space<vmem>>, vector<1x8x128xf32>
      %238 = vector.shape_cast %237 : vector<1x8x128xf32> to vector<8x128xf32>
      %239 = vector.shape_cast %235 : vector<8x128xf32> to vector<1x8x128xf32>
      tpu.vector_store %arg7[%c19, %236, %c0_99], %239 {strides = array<i32>} : memref<25x64x128xf32, #tpu.memory_space<vmem>>, vector<1x8x128xf32>,
      %c1_100 = arith.constant 1 : index
      %c3_101 = arith.constant 3 : index
      %240 = arith.index_cast %2 : i32 to index
      %c0_102 = arith.constant 0 : index
      %241 = vector.load %arg5[%c1_100, %c3_101, %240, %c0_102] : memref<3x4x64x128xf32, #tpu.memory_space<vmem>>, vector<1x1x8x128xf32>
      %242 = vector.shape_cast %241 : vector<1x1x8x128xf32> to vector<8x128xf32>
      %c1_103 = arith.constant 1 : index
      %c3_104 = arith.constant 3 : index
      %243 = arith.index_cast %2 : i32 to index
      %c0_105 = arith.constant 0 : index
      %244 = vector.load %arg6[%c1_103, %c3_104, %243, %c0_105] : memref<3x4x64x128xf32, #tpu.memory_space<vmem>>, vector<1x1x8x128xf32>
      %245 = vector.shape_cast %244 : vector<1x1x8x128xf32> to vector<8x128xf32>
      %246 = arith.mulf %242, %146 : vector<8x128xf32>
      %cst_106 = arith.constant 1.000000e+00 : f32
      %247 = vector.broadcast %cst_106 : f32 to vector<8x128xf32>
      %248 = arith.mulf %246, %247 : vector<8x128xf32>
      %249 = math.absf %248 : vector<8x128xf32>
      %250 = arith.addf %224, %249 : vector<8x128xf32>
      %251 = arith.mulf %245, %157 : vector<8x128xf32>
      %cst_107 = arith.constant 1.000000e+00 : f32
      %252 = vector.broadcast %cst_107 : f32 to vector<8x128xf32>
      %253 = arith.subf %252, %251 : vector<8x128xf32>
      %254 = arith.mulf %246, %253 : vector<8x128xf32>
      %255 = arith.addf %229, %254 : vector<8x128xf32>
      %256 = arith.mulf %248, %5 : vector<8x128xf32>
      %c7 = arith.constant 7 : index
      %257 = arith.index_cast %2 : i32 to index
      %c0_108 = arith.constant 0 : index
      %258 = vector.load %arg7[%c7, %257, %c0_108] : memref<25x64x128xf32, #tpu.memory_space<vmem>>, vector<1x8x128xf32>
      %259 = vector.shape_cast %258 : vector<1x8x128xf32> to vector<8x128xf32>
      %260 = vector.shape_cast %256 : vector<8x128xf32> to vector<1x8x128xf32>
      tpu.vector_store %arg7[%c7, %257, %c0_108], %260 {strides = array<i32>} : memref<25x64x128xf32, #tpu.memory_space<vmem>>, vector<1x8x128xf32>,
      %261 = arith.mulf %245, %161 : vector<8x128xf32>
      %c20 = arith.constant 20 : index
      %262 = arith.index_cast %2 : i32 to index
      %c0_109 = arith.constant 0 : index
      %263 = vector.load %arg7[%c20, %262, %c0_109] : memref<25x64x128xf32, #tpu.memory_space<vmem>>, vector<1x8x128xf32>
      %264 = vector.shape_cast %263 : vector<1x8x128xf32> to vector<8x128xf32>
      %265 = vector.shape_cast %261 : vector<8x128xf32> to vector<1x8x128xf32>
      tpu.vector_store %arg7[%c20, %262, %c0_109], %265 {strides = array<i32>} : memref<25x64x128xf32, #tpu.memory_space<vmem>>, vector<1x8x128xf32>,
      %c2_110 = arith.constant 2 : index
      %266 = arith.index_cast %2 : i32 to index
      %c0_111 = arith.constant 0 : index
      %267 = vector.load %arg1[%c2_110, %266, %c0_111] : memref<3x64x128xf32, #tpu.memory_space<vmem>>, vector<1x8x128xf32>
      %268 = vector.shape_cast %267 : vector<1x8x128xf32> to vector<8x128xf32>
      %c2_112 = arith.constant 2 : index
      %269 = arith.index_cast %2 : i32 to index
      %c0_113 = arith.constant 0 : index
      %270 = vector.load %arg2[%c2_112, %269, %c0_113] : memref<3x64x128xf32, #tpu.memory_space<vmem>>, vector<1x8x128xf32>
      %271 = vector.shape_cast %270 : vector<1x8x128xf32> to vector<8x128xf32>
      %c2_114 = arith.constant 2 : index
      %272 = arith.index_cast %2 : i32 to index
      %c0_115 = arith.constant 0 : index
      %273 = vector.load %arg3[%c2_114, %272, %c0_115] : memref<3x64x128xf32, #tpu.memory_space<vmem>>, vector<1x8x128xf32>
      %274 = vector.shape_cast %273 : vector<1x8x128xf32> to vector<8x128xf32>
      %275 = tpu.reciprocal %274 {approx = true} : vector<8x128xf32> -> vector<8x128xf32>
      %c2_116 = arith.constant 2 : index
      %c3_117 = arith.constant 3 : index
      %276 = arith.index_cast %2 : i32 to index
      %c0_118 = arith.constant 0 : index
      %277 = vector.load %arg5[%c2_116, %c3_117, %276, %c0_118] : memref<3x4x64x128xf32, #tpu.memory_space<vmem>>, vector<1x1x8x128xf32>
      %278 = vector.shape_cast %277 : vector<1x1x8x128xf32> to vector<8x128xf32>
      %cst_119 = arith.constant 0.000000e+00 : f32
      %279 = vector.broadcast %cst_119 : f32 to vector<8x128xf32>
      %280 = arith.cmpf ogt, %278, %279 : vector<8x128xf32>
      %cst_120 = arith.constant 0.000000e+00 : f32
      %281 = vector.broadcast %cst_120 : f32 to vector<8x128xf32>
      %282 = arith.cmpf olt, %278, %281 : vector<8x128xf32>
      %cst_121 = arith.constant 1.000000e+00 : f32
      %283 = vector.broadcast %cst_121 : f32 to vector<8x128xf32>
      %284 = arith.select %282, %271, %283 : vector<8x128xi1>, vector<8x128xf32>
      %285 = arith.select %280, %268, %284 : vector<8x128xi1>, vector<8x128xf32>
      %286 = tpu.reciprocal %285 {approx = true} : vector<8x128xf32> -> vector<8x128xf32>
      %287 = arith.addf %268, %271 : vector<8x128xf32>
      %288 = tpu.reciprocal %287 {approx = true} : vector<8x128xf32> -> vector<8x128xf32>
      %cst_122 = arith.constant 2.000000e+00 : f32
      %289 = vector.broadcast %cst_122 : f32 to vector<8x128xf32>
      %290 = arith.mulf %289, %288 : vector<8x128xf32>
      %c2_123 = arith.constant 2 : index
      %c0_124 = arith.constant 0 : index
      %291 = arith.index_cast %2 : i32 to index
      %c0_125 = arith.constant 0 : index
      %292 = vector.load %arg5[%c2_123, %c0_124, %291, %c0_125] : memref<3x4x64x128xf32, #tpu.memory_space<vmem>>, vector<1x1x8x128xf32>
      %293 = vector.shape_cast %292 : vector<1x1x8x128xf32> to vector<8x128xf32>
      %c2_126 = arith.constant 2 : index
      %c0_127 = arith.constant 0 : index
      %294 = arith.index_cast %2 : i32 to index
      %c0_128 = arith.constant 0 : index
      %295 = vector.load %arg6[%c2_126, %c0_127, %294, %c0_128] : memref<3x4x64x128xf32, #tpu.memory_space<vmem>>, vector<1x1x8x128xf32>
      %296 = vector.shape_cast %295 : vector<1x1x8x128xf32> to vector<8x128xf32>
      %297 = arith.mulf %293, %275 : vector<8x128xf32>
      %cst_129 = arith.constant 1.000000e+00 : f32
      %298 = vector.broadcast %cst_129 : f32 to vector<8x128xf32>
      %299 = arith.mulf %297, %298 : vector<8x128xf32>
      %300 = math.absf %299 : vector<8x128xf32>
      %301 = arith.addf %250, %300 : vector<8x128xf32>
      %302 = arith.mulf %296, %286 : vector<8x128xf32>
      %cst_130 = arith.constant 1.000000e+00 : f32
      %303 = vector.broadcast %cst_130 : f32 to vector<8x128xf32>
      %304 = arith.subf %303, %302 : vector<8x128xf32>
      %305 = arith.mulf %297, %304 : vector<8x128xf32>
      %306 = arith.addf %255, %305 : vector<8x128xf32>
      %307 = arith.mulf %299, %5 : vector<8x128xf32>
      %c8 = arith.constant 8 : index
      %308 = arith.index_cast %2 : i32 to index
      %c0_131 = arith.constant 0 : index
      %309 = vector.load %arg7[%c8, %308, %c0_131] : memref<25x64x128xf32, #tpu.memory_space<vmem>>, vector<1x8x128xf32>
      %310 = vector.shape_cast %309 : vector<1x8x128xf32> to vector<8x128xf32>
      %311 = vector.shape_cast %307 : vector<8x128xf32> to vector<1x8x128xf32>
      tpu.vector_store %arg7[%c8, %308, %c0_131], %311 {strides = array<i32>} : memref<25x64x128xf32, #tpu.memory_space<vmem>>, vector<1x8x128xf32>,
      %312 = arith.mulf %296, %290 : vector<8x128xf32>
      %c21 = arith.constant 21 : index
      %313 = arith.index_cast %2 : i32 to index
      %c0_132 = arith.constant 0 : index
      %314 = vector.load %arg7[%c21, %313, %c0_132] : memref<25x64x128xf32, #tpu.memory_space<vmem>>, vector<1x8x128xf32>
      %315 = vector.shape_cast %314 : vector<1x8x128xf32> to vector<8x128xf32>
      %316 = vector.shape_cast %312 : vector<8x128xf32> to vector<1x8x128xf32>
      tpu.vector_store %arg7[%c21, %313, %c0_132], %316 {strides = array<i32>} : memref<25x64x128xf32, #tpu.memory_space<vmem>>, vector<1x8x128xf32>,
      %c2_133 = arith.constant 2 : index
      %c1_134 = arith.constant 1 : index
      %317 = arith.index_cast %2 : i32 to index
      %c0_135 = arith.constant 0 : index
      %318 = vector.load %arg5[%c2_133, %c1_134, %317, %c0_135] : memref<3x4x64x128xf32, #tpu.memory_space<vmem>>, vector<1x1x8x128xf32>
      %319 = vector.shape_cast %318 : vector<1x1x8x128xf32> to vector<8x128xf32>
      %c2_136 = arith.constant 2 : index
      %c1_137 = arith.constant 1 : index
      %320 = arith.index_cast %2 : i32 to index
      %c0_138 = arith.constant 0 : index
      %321 = vector.load %arg6[%c2_136, %c1_137, %320, %c0_138] : memref<3x4x64x128xf32, #tpu.memory_space<vmem>>, vector<1x1x8x128xf32>
      %322 = vector.shape_cast %321 : vector<1x1x8x128xf32> to vector<8x128xf32>
      %323 = arith.mulf %319, %275 : vector<8x128xf32>
      %cst_139 = arith.constant 1.000000e+00 : f32
      %324 = vector.broadcast %cst_139 : f32 to vector<8x128xf32>
      %325 = arith.mulf %323, %324 : vector<8x128xf32>
      %326 = math.absf %325 : vector<8x128xf32>
      %327 = arith.addf %301, %326 : vector<8x128xf32>
      %328 = arith.mulf %322, %286 : vector<8x128xf32>
      %cst_140 = arith.constant 1.000000e+00 : f32
      %329 = vector.broadcast %cst_140 : f32 to vector<8x128xf32>
      %330 = arith.subf %329, %328 : vector<8x128xf32>
      %331 = arith.mulf %323, %330 : vector<8x128xf32>
      %332 = arith.addf %306, %331 : vector<8x128xf32>
      %333 = arith.mulf %325, %5 : vector<8x128xf32>
      %c9 = arith.constant 9 : index
      %334 = arith.index_cast %2 : i32 to index
      %c0_141 = arith.constant 0 : index
      %335 = vector.load %arg7[%c9, %334, %c0_141] : memref<25x64x128xf32, #tpu.memory_space<vmem>>, vector<1x8x128xf32>
      %336 = vector.shape_cast %335 : vector<1x8x128xf32> to vector<8x128xf32>
      %337 = vector.shape_cast %333 : vector<8x128xf32> to vector<1x8x128xf32>
      tpu.vector_store %arg7[%c9, %334, %c0_141], %337 {strides = array<i32>} : memref<25x64x128xf32, #tpu.memory_space<vmem>>, vector<1x8x128xf32>,
      %338 = arith.mulf %322, %290 : vector<8x128xf32>
      %c22 = arith.constant 22 : index
      %339 = arith.index_cast %2 : i32 to index
      %c0_142 = arith.constant 0 : index
      %340 = vector.load %arg7[%c22, %339, %c0_142] : memref<25x64x128xf32, #tpu.memory_space<vmem>>, vector<1x8x128xf32>
      %341 = vector.shape_cast %340 : vector<1x8x128xf32> to vector<8x128xf32>
      %342 = vector.shape_cast %338 : vector<8x128xf32> to vector<1x8x128xf32>
      tpu.vector_store %arg7[%c22, %339, %c0_142], %342 {strides = array<i32>} : memref<25x64x128xf32, #tpu.memory_space<vmem>>, vector<1x8x128xf32>,
      %c2_143 = arith.constant 2 : index
      %c2_144 = arith.constant 2 : index
      %343 = arith.index_cast %2 : i32 to index
      %c0_145 = arith.constant 0 : index
      %344 = vector.load %arg5[%c2_143, %c2_144, %343, %c0_145] : memref<3x4x64x128xf32, #tpu.memory_space<vmem>>, vector<1x1x8x128xf32>
      %345 = vector.shape_cast %344 : vector<1x1x8x128xf32> to vector<8x128xf32>
      %c2_146 = arith.constant 2 : index
      %c2_147 = arith.constant 2 : index
      %346 = arith.index_cast %2 : i32 to index
      %c0_148 = arith.constant 0 : index
      %347 = vector.load %arg6[%c2_146, %c2_147, %346, %c0_148] : memref<3x4x64x128xf32, #tpu.memory_space<vmem>>, vector<1x1x8x128xf32>
      %348 = vector.shape_cast %347 : vector<1x1x8x128xf32> to vector<8x128xf32>
      %349 = arith.mulf %345, %275 : vector<8x128xf32>
      %cst_149 = arith.constant 1.000000e+00 : f32
      %350 = vector.broadcast %cst_149 : f32 to vector<8x128xf32>
      %351 = arith.mulf %349, %350 : vector<8x128xf32>
      %352 = math.absf %351 : vector<8x128xf32>
      %353 = arith.addf %327, %352 : vector<8x128xf32>
      %354 = arith.mulf %348, %286 : vector<8x128xf32>
      %cst_150 = arith.constant 1.000000e+00 : f32
      %355 = vector.broadcast %cst_150 : f32 to vector<8x128xf32>
      %356 = arith.subf %355, %354 : vector<8x128xf32>
      %357 = arith.mulf %349, %356 : vector<8x128xf32>
      %358 = arith.addf %332, %357 : vector<8x128xf32>
      %359 = arith.mulf %351, %5 : vector<8x128xf32>
      %c10 = arith.constant 10 : index
      %360 = arith.index_cast %2 : i32 to index
      %c0_151 = arith.constant 0 : index
      %361 = vector.load %arg7[%c10, %360, %c0_151] : memref<25x64x128xf32, #tpu.memory_space<vmem>>, vector<1x8x128xf32>
      %362 = vector.shape_cast %361 : vector<1x8x128xf32> to vector<8x128xf32>
      %363 = vector.shape_cast %359 : vector<8x128xf32> to vector<1x8x128xf32>
      tpu.vector_store %arg7[%c10, %360, %c0_151], %363 {strides = array<i32>} : memref<25x64x128xf32, #tpu.memory_space<vmem>>, vector<1x8x128xf32>,
      %364 = arith.mulf %348, %290 : vector<8x128xf32>
      %c23 = arith.constant 23 : index
      %365 = arith.index_cast %2 : i32 to index
      %c0_152 = arith.constant 0 : index
      %366 = vector.load %arg7[%c23, %365, %c0_152] : memref<25x64x128xf32, #tpu.memory_space<vmem>>, vector<1x8x128xf32>
      %367 = vector.shape_cast %366 : vector<1x8x128xf32> to vector<8x128xf32>
      %368 = vector.shape_cast %364 : vector<8x128xf32> to vector<1x8x128xf32>
      tpu.vector_store %arg7[%c23, %365, %c0_152], %368 {strides = array<i32>} : memref<25x64x128xf32, #tpu.memory_space<vmem>>, vector<1x8x128xf32>,
      %c2_153 = arith.constant 2 : index
      %c3_154 = arith.constant 3 : index
      %369 = arith.index_cast %2 : i32 to index
      %c0_155 = arith.constant 0 : index
      %370 = vector.load %arg5[%c2_153, %c3_154, %369, %c0_155] : memref<3x4x64x128xf32, #tpu.memory_space<vmem>>, vector<1x1x8x128xf32>
      %371 = vector.shape_cast %370 : vector<1x1x8x128xf32> to vector<8x128xf32>
      %c2_156 = arith.constant 2 : index
      %c3_157 = arith.constant 3 : index
      %372 = arith.index_cast %2 : i32 to index
      %c0_158 = arith.constant 0 : index
      %373 = vector.load %arg6[%c2_156, %c3_157, %372, %c0_158] : memref<3x4x64x128xf32, #tpu.memory_space<vmem>>, vector<1x1x8x128xf32>
      %374 = vector.shape_cast %373 : vector<1x1x8x128xf32> to vector<8x128xf32>
      %375 = arith.mulf %371, %275 : vector<8x128xf32>
      %cst_159 = arith.constant 1.000000e+00 : f32
      %376 = vector.broadcast %cst_159 : f32 to vector<8x128xf32>
      %377 = arith.mulf %375, %376 : vector<8x128xf32>
      %378 = math.absf %377 : vector<8x128xf32>
      %379 = arith.addf %353, %378 : vector<8x128xf32>
      %380 = arith.mulf %374, %286 : vector<8x128xf32>
      %cst_160 = arith.constant 1.000000e+00 : f32
      %381 = vector.broadcast %cst_160 : f32 to vector<8x128xf32>
      %382 = arith.subf %381, %380 : vector<8x128xf32>
      %383 = arith.mulf %375, %382 : vector<8x128xf32>
      %384 = arith.addf %358, %383 : vector<8x128xf32>
      %385 = arith.mulf %377, %5 : vector<8x128xf32>
      %c11 = arith.constant 11 : index
      %386 = arith.index_cast %2 : i32 to index
      %c0_161 = arith.constant 0 : index
      %387 = vector.load %arg7[%c11, %386, %c0_161] : memref<25x64x128xf32, #tpu.memory_space<vmem>>, vector<1x8x128xf32>
      %388 = vector.shape_cast %387 : vector<1x8x128xf32> to vector<8x128xf32>
      %389 = vector.shape_cast %385 : vector<8x128xf32> to vector<1x8x128xf32>
      tpu.vector_store %arg7[%c11, %386, %c0_161], %389 {strides = array<i32>} : memref<25x64x128xf32, #tpu.memory_space<vmem>>, vector<1x8x128xf32>,
      %390 = arith.mulf %374, %290 : vector<8x128xf32>
      %c24 = arith.constant 24 : index
      %391 = arith.index_cast %2 : i32 to index
      %c0_162 = arith.constant 0 : index
      %392 = vector.load %arg7[%c24, %391, %c0_162] : memref<25x64x128xf32, #tpu.memory_space<vmem>>, vector<1x8x128xf32>
      %393 = vector.shape_cast %392 : vector<1x8x128xf32> to vector<8x128xf32>
      %394 = vector.shape_cast %390 : vector<8x128xf32> to vector<1x8x128xf32>
      tpu.vector_store %arg7[%c24, %391, %c0_162], %394 {strides = array<i32>} : memref<25x64x128xf32, #tpu.memory_space<vmem>>, vector<1x8x128xf32>,
      %395 = arith.subf %4, %379 : vector<8x128xf32>
      %cst_163 = arith.constant 0.000000e+00 : f32
      %396 = vector.broadcast %cst_163 : f32 to vector<8x128xf32>
      %397 = arith.maximumf %395, %396 : vector<8x128xf32>
      %398 = arith.mulf %397, %5 : vector<8x128xf32>
      %c12 = arith.constant 12 : index
      %399 = arith.index_cast %2 : i32 to index
      %c0_164 = arith.constant 0 : index
      %400 = vector.load %arg7[%c12, %399, %c0_164] : memref<25x64x128xf32, #tpu.memory_space<vmem>>, vector<1x8x128xf32>
      %401 = vector.shape_cast %400 : vector<1x8x128xf32> to vector<8x128xf32>
      %402 = vector.shape_cast %398 : vector<8x128xf32> to vector<1x8x128xf32>
      tpu.vector_store %arg7[%c12, %399, %c0_164], %402 {strides = array<i32>} : memref<25x64x128xf32, #tpu.memory_space<vmem>>, vector<1x8x128xf32>,
      %403 = arith.addf %4, %384 : vector<8x128xf32>
      %cst_165 = arith.constant 5.000000e-01 : f32
      %404 = vector.broadcast %cst_165 : f32 to vector<8x128xf32>
      %405 = arith.mulf %404, %379 : vector<8x128xf32>
      %406 = arith.cmpf olt, %403, %405 : vector<8x128xf32>
      %407 = arith.extui %406 : vector<8x128xi1> to vector<8x128xi32>
      %408 = arith.index_cast %2 : i32 to index
      %c0_166 = arith.constant 0 : index
      %409 = vector.load %arg8[%408, %c0_166] : memref<64x128xi32, #tpu.memory_space<vmem>>, vector<8x128xi32>
      tpu.vector_store %arg8[%408, %c0_166], %407 {strides = array<i32>} : memref<64x128xi32, #tpu.memory_space<vmem>>, vector<8x128xi32>,
    }
    %c8_i32_0 = arith.constant 8 : i32
    return
  }
  func.func @transform_0(%arg0: i32) -> (i32, i32, i32) {
    %c0_i32 = arith.constant 0 : i32
    %c0_i32_0 = arith.constant 0 : i32
    %c0_i32_1 = arith.constant 0 : i32
    return %c0_i32, %arg0, %c0_i32_0 : i32, i32, i32
  }
  func.func @transform_1(%arg0: i32) -> (i32, i32, i32) {
    %c0_i32 = arith.constant 0 : i32
    %c0_i32_0 = arith.constant 0 : i32
    %c0_i32_1 = arith.constant 0 : i32
    return %c0_i32, %arg0, %c0_i32_0 : i32, i32, i32
  }
  func.func @transform_2(%arg0: i32) -> (i32, i32, i32) {
    %c0_i32 = arith.constant 0 : i32
    %c0_i32_0 = arith.constant 0 : i32
    %c0_i32_1 = arith.constant 0 : i32
    return %c0_i32, %arg0, %c0_i32_0 : i32, i32, i32
  }
  func.func @transform_3(%arg0: i32) -> (i32, i32) {
    %c0_i32 = arith.constant 0 : i32
    %c0_i32_0 = arith.constant 0 : i32
    return %arg0, %c0_i32 : i32, i32
  }
  func.func @transform_4(%arg0: i32) -> (i32, i32, i32, i32) {
    %c0_i32 = arith.constant 0 : i32
    %c0_i32_0 = arith.constant 0 : i32
    %c0_i32_1 = arith.constant 0 : i32
    %c0_i32_2 = arith.constant 0 : i32
    return %c0_i32, %c0_i32_0, %arg0, %c0_i32_1 : i32, i32, i32, i32
  }
  func.func @transform_5(%arg0: i32) -> (i32, i32, i32, i32) {
    %c0_i32 = arith.constant 0 : i32
    %c0_i32_0 = arith.constant 0 : i32
    %c0_i32_1 = arith.constant 0 : i32
    %c0_i32_2 = arith.constant 0 : i32
    return %c0_i32, %c0_i32_0, %arg0, %c0_i32_1 : i32, i32, i32, i32
  }
  func.func @transform_6(%arg0: i32) -> (i32, i32, i32) {
    %c0_i32 = arith.constant 0 : i32
    %c0_i32_0 = arith.constant 0 : i32
    %c0_i32_1 = arith.constant 0 : i32
    return %c0_i32, %arg0, %c0_i32_0 : i32, i32, i32
  }
  func.func @transform_7(%arg0: i32) -> (i32, i32) {
    %c0_i32 = arith.constant 0 : i32
    %c0_i32_0 = arith.constant 0 : i32
    return %arg0, %c0_i32 : i32, i32
  }
}

module attributes {stable_mosaic.version = 11 : i64} {
  func.func @_loss_loop_kernel(%arg0: i32, %arg1: memref<3x64x128xf32, #tpu.memory_space<vmem>>, %arg2: memref<3x64x128xf32, #tpu.memory_space<vmem>>, %arg3: memref<3x64x128xf32, #tpu.memory_space<vmem>>, %arg4: memref<64x128xf32, #tpu.memory_space<vmem>>, %arg5: memref<3x4x64x128xf32, #tpu.memory_space<vmem>>, %arg6: memref<3x4x64x128xf32, #tpu.memory_space<vmem>>, %arg7: memref<64x128xi32, #tpu.memory_space<vmem>>, %arg8: memref<64x128xf32, #tpu.memory_space<vmem>>, %arg9: memref<3x64x128xf32, #tpu.memory_space<vmem>>, %arg10: memref<3x64x128xf32, #tpu.memory_space<vmem>>, %arg11: memref<3x64x128xf32, #tpu.memory_space<vmem>>, %arg12: memref<64x128xf32, #tpu.memory_space<vmem>>, %arg13: memref<64x128xf32, #tpu.memory_space<vmem>>, %arg14: memref<64x128xf32, #tpu.memory_space<vmem>>, %arg15: memref<3x4x64x128xf32, #tpu.memory_space<vmem>>, %arg16: memref<3x4x64x128xf32, #tpu.memory_space<vmem>>) attributes {dimension_semantics = [#tpu.dimension_semantics<parallel>], iteration_bounds = array<i64: 1>, scalar_prefetch = 0 : i64, scratch_operands = 0 : i64, tpu.core_type = #tpu.core_type<tc>, window_params = [{transform_indices = @transform_0, window_bounds = array<i64: 3, 64, 128>}, {transform_indices = @transform_1, window_bounds = array<i64: 3, 64, 128>}, {transform_indices = @transform_2, window_bounds = array<i64: 3, 64, 128>}, {transform_indices = @transform_3, window_bounds = array<i64: 64, 128>}, {transform_indices = @transform_4, window_bounds = array<i64: 3, 4, 64, 128>}, {transform_indices = @transform_5, window_bounds = array<i64: 3, 4, 64, 128>}, {transform_indices = @transform_6, window_bounds = array<i64: 64, 128>}, {transform_indices = @transform_7, window_bounds = array<i64: 64, 128>}, {transform_indices = @transform_8, window_bounds = array<i64: 3, 64, 128>}, {transform_indices = @transform_9, window_bounds = array<i64: 3, 64, 128>}, {transform_indices = @transform_10, window_bounds = array<i64: 3, 64, 128>}, {transform_indices = @transform_11, window_bounds = array<i64: 64, 128>}, {transform_indices = @transform_12, window_bounds = array<i64: 64, 128>}, {transform_indices = @transform_13, window_bounds = array<i64: 64, 128>}, {transform_indices = @transform_14, window_bounds = array<i64: 3, 4, 64, 128>}, {transform_indices = @transform_15, window_bounds = array<i64: 3, 4, 64, 128>}]} {
    %c0_i32 = arith.constant 0 : i32
    %c8_i32 = arith.constant 8 : i32
    %0 = arith.addi %c0_i32, %c8_i32 : i32
    %c1_i32 = arith.constant 1 : i32
    scf.for %arg17 = %c0_i32 to %0 step %c1_i32  : i32 {
      %c8_i32_1 = arith.constant 8 : i32
      %1 = arith.muli %arg17, %c8_i32_1 : i32
      %2 = tpu.assume_multiple %1, 8 : i32
      %3 = arith.index_cast %2 : i32 to index
      %c0 = arith.constant 0 : index
      %4 = vector.load %arg4[%3, %c0] : memref<64x128xf32, #tpu.memory_space<vmem>>, vector<8x128xf32>
      %5 = arith.index_cast %2 : i32 to index
      %c0_2 = arith.constant 0 : index
      %6 = vector.load %arg7[%5, %c0_2] : memref<64x128xi32, #tpu.memory_space<vmem>>, vector<8x128xi32>
      %c0_i32_3 = arith.constant 0 : i32
      %7 = vector.broadcast %c0_i32_3 : i32 to vector<8x128xi32>
      %8 = arith.cmpi ne, %6, %7 : vector<8x128xi32>
      %cst = arith.constant dense<true> : vector<8x128xi1>
      %9 = arith.xori %8, %cst : vector<8x128xi1>
      %10 = arith.index_cast %2 : i32 to index
      %c0_4 = arith.constant 0 : index
      %11 = vector.load %arg8[%10, %c0_4] : memref<64x128xf32, #tpu.memory_space<vmem>>, vector<8x128xf32>
      %cst_5 = arith.constant 0.000000e+00 : f32
      %12 = vector.broadcast %cst_5 : f32 to vector<8x128xf32>
      %c0_6 = arith.constant 0 : index
      %c0_7 = arith.constant 0 : index
      %13 = arith.index_cast %2 : i32 to index
      %c0_8 = arith.constant 0 : index
      %14 = vector.load %arg5[%c0_6, %c0_7, %13, %c0_8] : memref<3x4x64x128xf32, #tpu.memory_space<vmem>>, vector<1x1x8x128xf32>
      %15 = vector.shape_cast %14 : vector<1x1x8x128xf32> to vector<8x128xf32>
      %c0_9 = arith.constant 0 : index
      %c1 = arith.constant 1 : index
      %16 = arith.index_cast %2 : i32 to index
      %c0_10 = arith.constant 0 : index
      %17 = vector.load %arg5[%c0_9, %c1, %16, %c0_10] : memref<3x4x64x128xf32, #tpu.memory_space<vmem>>, vector<1x1x8x128xf32>
      %18 = vector.shape_cast %17 : vector<1x1x8x128xf32> to vector<8x128xf32>
      %19 = arith.addf %15, %18 : vector<8x128xf32>
      %c0_11 = arith.constant 0 : index
      %c2 = arith.constant 2 : index
      %20 = arith.index_cast %2 : i32 to index
      %c0_12 = arith.constant 0 : index
      %21 = vector.load %arg5[%c0_11, %c2, %20, %c0_12] : memref<3x4x64x128xf32, #tpu.memory_space<vmem>>, vector<1x1x8x128xf32>
      %22 = vector.shape_cast %21 : vector<1x1x8x128xf32> to vector<8x128xf32>
      %23 = arith.addf %19, %22 : vector<8x128xf32>
      %c0_13 = arith.constant 0 : index
      %c3 = arith.constant 3 : index
      %24 = arith.index_cast %2 : i32 to index
      %c0_14 = arith.constant 0 : index
      %25 = vector.load %arg5[%c0_13, %c3, %24, %c0_14] : memref<3x4x64x128xf32, #tpu.memory_space<vmem>>, vector<1x1x8x128xf32>
      %26 = vector.shape_cast %25 : vector<1x1x8x128xf32> to vector<8x128xf32>
      %27 = arith.addf %23, %26 : vector<8x128xf32>
      %28 = math.absf %27 : vector<8x128xf32>
      %cst_15 = arith.constant 1.000000e+00 : f32
      %29 = vector.broadcast %cst_15 : f32 to vector<8x128xf32>
      %30 = arith.mulf %28, %29 : vector<8x128xf32>
      %c0_16 = arith.constant 0 : index
      %31 = arith.index_cast %2 : i32 to index
      %c0_17 = arith.constant 0 : index
      %32 = vector.load %arg3[%c0_16, %31, %c0_17] : memref<3x64x128xf32, #tpu.memory_space<vmem>>, vector<1x8x128xf32>
      %33 = vector.shape_cast %32 : vector<1x8x128xf32> to vector<8x128xf32>
      %34 = tpu.reciprocal %33 {approx = true} : vector<8x128xf32> -> vector<8x128xf32>
      %35 = arith.mulf %30, %34 : vector<8x128xf32>
      %36 = arith.addf %12, %35 : vector<8x128xf32>
      %c1_18 = arith.constant 1 : index
      %c0_19 = arith.constant 0 : index
      %37 = arith.index_cast %2 : i32 to index
      %c0_20 = arith.constant 0 : index
      %38 = vector.load %arg5[%c1_18, %c0_19, %37, %c0_20] : memref<3x4x64x128xf32, #tpu.memory_space<vmem>>, vector<1x1x8x128xf32>
      %39 = vector.shape_cast %38 : vector<1x1x8x128xf32> to vector<8x128xf32>
      %c1_21 = arith.constant 1 : index
      %c1_22 = arith.constant 1 : index
      %40 = arith.index_cast %2 : i32 to index
      %c0_23 = arith.constant 0 : index
      %41 = vector.load %arg5[%c1_21, %c1_22, %40, %c0_23] : memref<3x4x64x128xf32, #tpu.memory_space<vmem>>, vector<1x1x8x128xf32>
      %42 = vector.shape_cast %41 : vector<1x1x8x128xf32> to vector<8x128xf32>
      %43 = arith.addf %39, %42 : vector<8x128xf32>
      %c1_24 = arith.constant 1 : index
      %c2_25 = arith.constant 2 : index
      %44 = arith.index_cast %2 : i32 to index
      %c0_26 = arith.constant 0 : index
      %45 = vector.load %arg5[%c1_24, %c2_25, %44, %c0_26] : memref<3x4x64x128xf32, #tpu.memory_space<vmem>>, vector<1x1x8x128xf32>
      %46 = vector.shape_cast %45 : vector<1x1x8x128xf32> to vector<8x128xf32>
      %47 = arith.addf %43, %46 : vector<8x128xf32>
      %c1_27 = arith.constant 1 : index
      %c3_28 = arith.constant 3 : index
      %48 = arith.index_cast %2 : i32 to index
      %c0_29 = arith.constant 0 : index
      %49 = vector.load %arg5[%c1_27, %c3_28, %48, %c0_29] : memref<3x4x64x128xf32, #tpu.memory_space<vmem>>, vector<1x1x8x128xf32>
      %50 = vector.shape_cast %49 : vector<1x1x8x128xf32> to vector<8x128xf32>
      %51 = arith.addf %47, %50 : vector<8x128xf32>
      %52 = math.absf %51 : vector<8x128xf32>
      %cst_30 = arith.constant 1.000000e+00 : f32
      %53 = vector.broadcast %cst_30 : f32 to vector<8x128xf32>
      %54 = arith.mulf %52, %53 : vector<8x128xf32>
      %c1_31 = arith.constant 1 : index
      %55 = arith.index_cast %2 : i32 to index
      %c0_32 = arith.constant 0 : index
      %56 = vector.load %arg3[%c1_31, %55, %c0_32] : memref<3x64x128xf32, #tpu.memory_space<vmem>>, vector<1x8x128xf32>
      %57 = vector.shape_cast %56 : vector<1x8x128xf32> to vector<8x128xf32>
      %58 = tpu.reciprocal %57 {approx = true} : vector<8x128xf32> -> vector<8x128xf32>
      %59 = arith.mulf %54, %58 : vector<8x128xf32>
      %60 = arith.addf %36, %59 : vector<8x128xf32>
      %c2_33 = arith.constant 2 : index
      %c0_34 = arith.constant 0 : index
      %61 = arith.index_cast %2 : i32 to index
      %c0_35 = arith.constant 0 : index
      %62 = vector.load %arg5[%c2_33, %c0_34, %61, %c0_35] : memref<3x4x64x128xf32, #tpu.memory_space<vmem>>, vector<1x1x8x128xf32>
      %63 = vector.shape_cast %62 : vector<1x1x8x128xf32> to vector<8x128xf32>
      %c2_36 = arith.constant 2 : index
      %c1_37 = arith.constant 1 : index
      %64 = arith.index_cast %2 : i32 to index
      %c0_38 = arith.constant 0 : index
      %65 = vector.load %arg5[%c2_36, %c1_37, %64, %c0_38] : memref<3x4x64x128xf32, #tpu.memory_space<vmem>>, vector<1x1x8x128xf32>
      %66 = vector.shape_cast %65 : vector<1x1x8x128xf32> to vector<8x128xf32>
      %67 = arith.addf %63, %66 : vector<8x128xf32>
      %c2_39 = arith.constant 2 : index
      %c2_40 = arith.constant 2 : index
      %68 = arith.index_cast %2 : i32 to index
      %c0_41 = arith.constant 0 : index
      %69 = vector.load %arg5[%c2_39, %c2_40, %68, %c0_41] : memref<3x4x64x128xf32, #tpu.memory_space<vmem>>, vector<1x1x8x128xf32>
      %70 = vector.shape_cast %69 : vector<1x1x8x128xf32> to vector<8x128xf32>
      %71 = arith.addf %67, %70 : vector<8x128xf32>
      %c2_42 = arith.constant 2 : index
      %c3_43 = arith.constant 3 : index
      %72 = arith.index_cast %2 : i32 to index
      %c0_44 = arith.constant 0 : index
      %73 = vector.load %arg5[%c2_42, %c3_43, %72, %c0_44] : memref<3x4x64x128xf32, #tpu.memory_space<vmem>>, vector<1x1x8x128xf32>
      %74 = vector.shape_cast %73 : vector<1x1x8x128xf32> to vector<8x128xf32>
      %75 = arith.addf %71, %74 : vector<8x128xf32>
      %76 = math.absf %75 : vector<8x128xf32>
      %cst_45 = arith.constant 1.000000e+00 : f32
      %77 = vector.broadcast %cst_45 : f32 to vector<8x128xf32>
      %78 = arith.mulf %76, %77 : vector<8x128xf32>
      %c2_46 = arith.constant 2 : index
      %79 = arith.index_cast %2 : i32 to index
      %c0_47 = arith.constant 0 : index
      %80 = vector.load %arg3[%c2_46, %79, %c0_47] : memref<3x64x128xf32, #tpu.memory_space<vmem>>, vector<1x8x128xf32>
      %81 = vector.shape_cast %80 : vector<1x8x128xf32> to vector<8x128xf32>
      %82 = tpu.reciprocal %81 {approx = true} : vector<8x128xf32> -> vector<8x128xf32>
      %83 = arith.mulf %78, %82 : vector<8x128xf32>
      %84 = arith.addf %60, %83 : vector<8x128xf32>
      %c0_48 = arith.constant 0 : index
      %85 = arith.index_cast %2 : i32 to index
      %c0_49 = arith.constant 0 : index
      %86 = vector.load %arg1[%c0_48, %85, %c0_49] : memref<3x64x128xf32, #tpu.memory_space<vmem>>, vector<1x8x128xf32>
      %87 = vector.shape_cast %86 : vector<1x8x128xf32> to vector<8x128xf32>
      %c0_50 = arith.constant 0 : index
      %88 = arith.index_cast %2 : i32 to index
      %c0_51 = arith.constant 0 : index
      %89 = vector.load %arg2[%c0_50, %88, %c0_51] : memref<3x64x128xf32, #tpu.memory_space<vmem>>, vector<1x8x128xf32>
      %90 = vector.shape_cast %89 : vector<1x8x128xf32> to vector<8x128xf32>
      %c0_52 = arith.constant 0 : index
      %91 = arith.index_cast %2 : i32 to index
      %c0_53 = arith.constant 0 : index
      %92 = vector.load %arg3[%c0_52, %91, %c0_53] : memref<3x64x128xf32, #tpu.memory_space<vmem>>, vector<1x8x128xf32>
      %93 = vector.shape_cast %92 : vector<1x8x128xf32> to vector<8x128xf32>
      %94 = tpu.reciprocal %93 {approx = true} : vector<8x128xf32> -> vector<8x128xf32>
      %c0_54 = arith.constant 0 : index
      %95 = arith.index_cast %2 : i32 to index
      %c0_55 = arith.constant 0 : index
      %96 = vector.load %arg9[%c0_54, %95, %c0_55] : memref<3x64x128xf32, #tpu.memory_space<vmem>>, vector<1x8x128xf32>
      %97 = vector.shape_cast %96 : vector<1x8x128xf32> to vector<8x128xf32>
      %c0_56 = arith.constant 0 : index
      %98 = arith.index_cast %2 : i32 to index
      %c0_57 = arith.constant 0 : index
      %99 = vector.load %arg11[%c0_56, %98, %c0_57] : memref<3x64x128xf32, #tpu.memory_space<vmem>>, vector<1x8x128xf32>
      %100 = vector.shape_cast %99 : vector<1x8x128xf32> to vector<8x128xf32>
      %c0_58 = arith.constant 0 : index
      %c3_59 = arith.constant 3 : index
      %101 = arith.index_cast %2 : i32 to index
      %c0_60 = arith.constant 0 : index
      %102 = vector.load %arg5[%c0_58, %c3_59, %101, %c0_60] : memref<3x4x64x128xf32, #tpu.memory_space<vmem>>, vector<1x1x8x128xf32>
      %103 = vector.shape_cast %102 : vector<1x1x8x128xf32> to vector<8x128xf32>
      %c0_61 = arith.constant 0 : index
      %c0_62 = arith.constant 0 : index
      %104 = arith.index_cast %2 : i32 to index
      %c0_63 = arith.constant 0 : index
      %105 = vector.load %arg5[%c0_61, %c0_62, %104, %c0_63] : memref<3x4x64x128xf32, #tpu.memory_space<vmem>>, vector<1x1x8x128xf32>
      %106 = vector.shape_cast %105 : vector<1x1x8x128xf32> to vector<8x128xf32>
      %cst_64 = arith.constant 0.000000e+00 : f32
      %107 = vector.broadcast %cst_64 : f32 to vector<8x128xf32>
      %108 = arith.cmpf ogt, %103, %107 : vector<8x128xf32>
      %cst_65 = arith.constant 0.000000e+00 : f32
      %109 = vector.broadcast %cst_65 : f32 to vector<8x128xf32>
      %110 = arith.cmpf olt, %103, %109 : vector<8x128xf32>
      %cst_66 = arith.constant 1.000000e+00 : f32
      %111 = vector.broadcast %cst_66 : f32 to vector<8x128xf32>
      %112 = arith.select %110, %90, %111 : vector<8x128xi1>, vector<8x128xf32>
      %113 = arith.select %108, %87, %112 : vector<8x128xi1>, vector<8x128xf32>
      %114 = tpu.reciprocal %113 {approx = true} : vector<8x128xf32> -> vector<8x128xf32>
      %115 = arith.mulf %97, %103 : vector<8x128xf32>
      %cst_67 = arith.constant 0.000000e+00 : f32
      %116 = vector.broadcast %cst_67 : f32 to vector<8x128xf32>
      %117 = arith.cmpf oeq, %106, %116 : vector<8x128xf32>
      %118 = arith.andi %9, %117 : vector<8x128xi1>
      %cst_68 = arith.constant 0.000000e+00 : f32
      %119 = vector.broadcast %cst_68 : f32 to vector<8x128xf32>
      %120 = arith.cmpf ogt, %115, %119 : vector<8x128xf32>
      %121 = arith.andi %118, %120 : vector<8x128xi1>
      %cst_69 = arith.constant 0.000000e+00 : f32
      %122 = vector.broadcast %cst_69 : f32 to vector<8x128xf32>
      %123 = arith.cmpf one, %103, %122 : vector<8x128xf32>
      %124 = arith.andi %8, %123 : vector<8x128xi1>
      %cst_70 = arith.constant 0.000000e+00 : f32
      %125 = vector.broadcast %cst_70 : f32 to vector<8x128xf32>
      %126 = arith.cmpf olt, %115, %125 : vector<8x128xf32>
      %127 = arith.ori %124, %126 : vector<8x128xi1>
      %cst_71 = arith.constant 0.000000e+00 : f32
      %128 = vector.broadcast %cst_71 : f32 to vector<8x128xf32>
      %129 = arith.cmpf oeq, %103, %128 : vector<8x128xf32>
      %130 = arith.andi %9, %129 : vector<8x128xi1>
      %cst_72 = arith.constant 0.000000e+00 : f32
      %131 = vector.broadcast %cst_72 : f32 to vector<8x128xf32>
      %132 = arith.cmpf one, %97, %131 : vector<8x128xf32>
      %133 = arith.andi %130, %132 : vector<8x128xi1>
      %cst_73 = arith.constant 0.000000e+00 : f32
      %134 = vector.broadcast %cst_73 : f32 to vector<8x128xf32>
      %135 = arith.cmpf ogt, %97, %134 : vector<8x128xf32>
      %cst_74 = arith.constant 0.000000e+00 : f32
      %136 = vector.broadcast %cst_74 : f32 to vector<8x128xf32>
      %137 = arith.cmpf olt, %97, %136 : vector<8x128xf32>
      %cst_75 = arith.constant 0.000000e+00 : f32
      %138 = vector.broadcast %cst_75 : f32 to vector<8x128xf32>
      %139 = arith.select %137, %87, %138 : vector<8x128xi1>, vector<8x128xf32>
      %140 = arith.select %135, %90, %139 : vector<8x128xi1>, vector<8x128xf32>
      %141 = arith.andi %127, %9 : vector<8x128xi1>
      %c0_76 = arith.constant 0 : index
      %142 = arith.index_cast %2 : i32 to index
      %c0_77 = arith.constant 0 : index
      %143 = vector.load %arg10[%c0_76, %142, %c0_77] : memref<3x64x128xf32, #tpu.memory_space<vmem>>, vector<1x8x128xf32>
      %144 = vector.shape_cast %143 : vector<1x8x128xf32> to vector<8x128xf32>
      %cst_78 = arith.constant 0.000000e+00 : f32
      %145 = vector.broadcast %cst_78 : f32 to vector<8x128xf32>
      %146 = arith.select %141, %144, %145 : vector<8x128xi1>, vector<8x128xf32>
      %147 = arith.addf %12, %146 : vector<8x128xf32>
      %148 = arith.subf %4, %84 : vector<8x128xf32>
      %cst_79 = arith.constant 0.000000e+00 : f32
      %149 = vector.broadcast %cst_79 : f32 to vector<8x128xf32>
      %150 = arith.cmpf ole, %148, %149 : vector<8x128xf32>
      %cst_80 = arith.constant 0.000000e+00 : f32
      %151 = vector.broadcast %cst_80 : f32 to vector<8x128xf32>
      %152 = arith.select %150, %151, %148 : vector<8x128xi1>, vector<8x128xf32>
      %cst_81 = arith.constant dense<true> : vector<8x128xi1>
      %153 = arith.xori %150, %cst_81 : vector<8x128xi1>
      %154 = arith.andi %121, %153 : vector<8x128xi1>
      %155 = arith.andi %133, %153 : vector<8x128xi1>
      %c0_82 = arith.constant 0 : index
      %c0_83 = arith.constant 0 : index
      %156 = arith.index_cast %2 : i32 to index
      %c0_84 = arith.constant 0 : index
      %157 = vector.load %arg5[%c0_82, %c0_83, %156, %c0_84] : memref<3x4x64x128xf32, #tpu.memory_space<vmem>>, vector<1x1x8x128xf32>
      %158 = vector.shape_cast %157 : vector<1x1x8x128xf32> to vector<8x128xf32>
      %c0_85 = arith.constant 0 : index
      %c1_86 = arith.constant 1 : index
      %159 = arith.index_cast %2 : i32 to index
      %c0_87 = arith.constant 0 : index
      %160 = vector.load %arg5[%c0_85, %c1_86, %159, %c0_87] : memref<3x4x64x128xf32, #tpu.memory_space<vmem>>, vector<1x1x8x128xf32>
      %161 = vector.shape_cast %160 : vector<1x1x8x128xf32> to vector<8x128xf32>
      %162 = arith.addf %158, %161 : vector<8x128xf32>
      %c0_88 = arith.constant 0 : index
      %c2_89 = arith.constant 2 : index
      %163 = arith.index_cast %2 : i32 to index
      %c0_90 = arith.constant 0 : index
      %164 = vector.load %arg5[%c0_88, %c2_89, %163, %c0_90] : memref<3x4x64x128xf32, #tpu.memory_space<vmem>>, vector<1x1x8x128xf32>
      %165 = vector.shape_cast %164 : vector<1x1x8x128xf32> to vector<8x128xf32>
      %166 = arith.addf %162, %165 : vector<8x128xf32>
      %c0_91 = arith.constant 0 : index
      %c3_92 = arith.constant 3 : index
      %167 = arith.index_cast %2 : i32 to index
      %c0_93 = arith.constant 0 : index
      %168 = vector.load %arg5[%c0_91, %c3_92, %167, %c0_93] : memref<3x4x64x128xf32, #tpu.memory_space<vmem>>, vector<1x1x8x128xf32>
      %169 = vector.shape_cast %168 : vector<1x1x8x128xf32> to vector<8x128xf32>
      %170 = arith.addf %166, %169 : vector<8x128xf32>
      %171 = math.absf %170 : vector<8x128xf32>
      %cst_94 = arith.constant 1.000000e+00 : f32
      %172 = vector.broadcast %cst_94 : f32 to vector<8x128xf32>
      %173 = arith.mulf %171, %172 : vector<8x128xf32>
      %174 = arith.mulf %173, %94 : vector<8x128xf32>
      %cst_95 = arith.constant 0.000000e+00 : f32
      %175 = vector.broadcast %cst_95 : f32 to vector<8x128xf32>
      %176 = arith.select %127, %174, %175 : vector<8x128xi1>, vector<8x128xf32>
      %177 = arith.addf %152, %176 : vector<8x128xf32>
      %178 = arith.mulf %97, %177 : vector<8x128xf32>
      %cst_96 = arith.constant 1.000000e+00 : f32
      %179 = vector.broadcast %cst_96 : f32 to vector<8x128xf32>
      %180 = arith.mulf %178, %179 : vector<8x128xf32>
      %181 = arith.mulf %180, %93 : vector<8x128xf32>
      %cst_97 = arith.constant 0.000000e+00 : f32
      %182 = vector.broadcast %cst_97 : f32 to vector<8x128xf32>
      %183 = arith.subf %182, %170 : vector<8x128xf32>
      %184 = arith.select %8, %183, %181 : vector<8x128xi1>, vector<8x128xf32>
      %c0_98 = arith.constant 0 : index
      %c1_99 = arith.constant 1 : index
      %185 = arith.index_cast %2 : i32 to index
      %c0_100 = arith.constant 0 : index
      %186 = vector.load %arg5[%c0_98, %c1_99, %185, %c0_100] : memref<3x4x64x128xf32, #tpu.memory_space<vmem>>, vector<1x1x8x128xf32>
      %187 = vector.shape_cast %186 : vector<1x1x8x128xf32> to vector<8x128xf32>
      %c0_101 = arith.constant 0 : index
      %c1_102 = arith.constant 1 : index
      %188 = arith.index_cast %2 : i32 to index
      %c0_103 = arith.constant 0 : index
      %189 = vector.load %arg6[%c0_101, %c1_102, %188, %c0_103] : memref<3x4x64x128xf32, #tpu.memory_space<vmem>>, vector<1x1x8x128xf32>
      %190 = vector.shape_cast %189 : vector<1x1x8x128xf32> to vector<8x128xf32>
      %c0_104 = arith.constant 0 : index
      %c0_105 = arith.constant 0 : index
      %191 = arith.index_cast %2 : i32 to index
      %c0_106 = arith.constant 0 : index
      %192 = vector.load %arg5[%c0_104, %c0_105, %191, %c0_106] : memref<3x4x64x128xf32, #tpu.memory_space<vmem>>, vector<1x1x8x128xf32>
      %193 = vector.shape_cast %192 : vector<1x1x8x128xf32> to vector<8x128xf32>
      %194 = arith.select %154, %187, %193 : vector<8x128xi1>, vector<8x128xf32>
      %c0_107 = arith.constant 0 : index
      %c0_108 = arith.constant 0 : index
      %195 = arith.index_cast %2 : i32 to index
      %c0_109 = arith.constant 0 : index
      %196 = vector.load %arg6[%c0_107, %c0_108, %195, %c0_109] : memref<3x4x64x128xf32, #tpu.memory_space<vmem>>, vector<1x1x8x128xf32>
      %197 = vector.shape_cast %196 : vector<1x1x8x128xf32> to vector<8x128xf32>
      %198 = arith.select %154, %190, %197 : vector<8x128xi1>, vector<8x128xf32>
      %199 = arith.addf %184, %194 : vector<8x128xf32>
      %200 = arith.mulf %199, %184 : vector<8x128xf32>
      %cst_110 = arith.constant 0.000000e+00 : f32
      %201 = vector.broadcast %cst_110 : f32 to vector<8x128xf32>
      %202 = arith.cmpf oge, %200, %201 : vector<8x128xf32>
      %203 = arith.andi %127, %202 : vector<8x128xi1>
      %204 = arith.mulf %184, %199 : vector<8x128xf32>
      %cst_111 = arith.constant 0.000000e+00 : f32
      %205 = vector.broadcast %cst_111 : f32 to vector<8x128xf32>
      %206 = arith.cmpf olt, %204, %205 : vector<8x128xf32>
      %cst_112 = arith.constant 0.000000e+00 : f32
      %207 = vector.broadcast %cst_112 : f32 to vector<8x128xf32>
      %208 = arith.select %206, %184, %207 : vector<8x128xi1>, vector<8x128xf32>
      %209 = arith.select %203, %194, %208 : vector<8x128xi1>, vector<8x128xf32>
      %210 = arith.select %206, %199, %194 : vector<8x128xi1>, vector<8x128xf32>
      %cst_113 = arith.constant 0.000000e+00 : f32
      %211 = vector.broadcast %cst_113 : f32 to vector<8x128xf32>
      %212 = arith.select %203, %211, %210 : vector<8x128xi1>, vector<8x128xf32>
      %cst_114 = arith.constant 0.000000e+00 : f32
      %213 = vector.broadcast %cst_114 : f32 to vector<8x128xf32>
      %214 = arith.select %203, %213, %198 : vector<8x128xi1>, vector<8x128xf32>
      %215 = math.absf %209 : vector<8x128xf32>
      %216 = arith.mulf %215, %94 : vector<8x128xf32>
      %217 = arith.mulf %214, %114 : vector<8x128xf32>
      %cst_115 = arith.constant 1.000000e+00 : f32
      %218 = vector.broadcast %cst_115 : f32 to vector<8x128xf32>
      %219 = arith.subf %218, %217 : vector<8x128xf32>
      %220 = arith.mulf %216, %219 : vector<8x128xf32>
      %221 = arith.addf %12, %220 : vector<8x128xf32>
      %c0_116 = arith.constant 0 : index
      %c0_117 = arith.constant 0 : index
      %222 = arith.index_cast %2 : i32 to index
      %c0_118 = arith.constant 0 : index
      %223 = vector.load %arg15[%c0_116, %c0_117, %222, %c0_118] : memref<3x4x64x128xf32, #tpu.memory_space<vmem>>, vector<1x1x8x128xf32>
      %224 = vector.shape_cast %223 : vector<1x1x8x128xf32> to vector<8x128xf32>
      %225 = vector.shape_cast %212 : vector<8x128xf32> to vector<1x1x8x128xf32>
      tpu.vector_store %arg15[%c0_116, %c0_117, %222, %c0_118], %225 {strides = array<i32>} : memref<3x4x64x128xf32, #tpu.memory_space<vmem>>, vector<1x1x8x128xf32>,
      %c0_119 = arith.constant 0 : index
      %c0_120 = arith.constant 0 : index
      %226 = arith.index_cast %2 : i32 to index
      %c0_121 = arith.constant 0 : index
      %227 = vector.load %arg16[%c0_119, %c0_120, %226, %c0_121] : memref<3x4x64x128xf32, #tpu.memory_space<vmem>>, vector<1x1x8x128xf32>
      %228 = vector.shape_cast %227 : vector<1x1x8x128xf32> to vector<8x128xf32>
      %229 = vector.shape_cast %214 : vector<8x128xf32> to vector<1x1x8x128xf32>
      tpu.vector_store %arg16[%c0_119, %c0_120, %226, %c0_121], %229 {strides = array<i32>} : memref<3x4x64x128xf32, #tpu.memory_space<vmem>>, vector<1x1x8x128xf32>,
      %230 = arith.addf %12, %212 : vector<8x128xf32>
      %c0_122 = arith.constant 0 : index
      %c2_123 = arith.constant 2 : index
      %231 = arith.index_cast %2 : i32 to index
      %c0_124 = arith.constant 0 : index
      %232 = vector.load %arg5[%c0_122, %c2_123, %231, %c0_124] : memref<3x4x64x128xf32, #tpu.memory_space<vmem>>, vector<1x1x8x128xf32>
      %233 = vector.shape_cast %232 : vector<1x1x8x128xf32> to vector<8x128xf32>
      %c0_125 = arith.constant 0 : index
      %c2_126 = arith.constant 2 : index
      %234 = arith.index_cast %2 : i32 to index
      %c0_127 = arith.constant 0 : index
      %235 = vector.load %arg6[%c0_125, %c2_126, %234, %c0_127] : memref<3x4x64x128xf32, #tpu.memory_space<vmem>>, vector<1x1x8x128xf32>
      %236 = vector.shape_cast %235 : vector<1x1x8x128xf32> to vector<8x128xf32>
      %c0_128 = arith.constant 0 : index
      %c1_129 = arith.constant 1 : index
      %237 = arith.index_cast %2 : i32 to index
      %c0_130 = arith.constant 0 : index
      %238 = vector.load %arg5[%c0_128, %c1_129, %237, %c0_130] : memref<3x4x64x128xf32, #tpu.memory_space<vmem>>, vector<1x1x8x128xf32>
      %239 = vector.shape_cast %238 : vector<1x1x8x128xf32> to vector<8x128xf32>
      %240 = arith.select %154, %233, %239 : vector<8x128xi1>, vector<8x128xf32>
      %c0_131 = arith.constant 0 : index
      %c1_132 = arith.constant 1 : index
      %241 = arith.index_cast %2 : i32 to index
      %c0_133 = arith.constant 0 : index
      %242 = vector.load %arg6[%c0_131, %c1_132, %241, %c0_133] : memref<3x4x64x128xf32, #tpu.memory_space<vmem>>, vector<1x1x8x128xf32>
      %243 = vector.shape_cast %242 : vector<1x1x8x128xf32> to vector<8x128xf32>
      %244 = arith.select %154, %236, %243 : vector<8x128xi1>, vector<8x128xf32>
      %245 = arith.addf %199, %240 : vector<8x128xf32>
      %246 = arith.mulf %245, %184 : vector<8x128xf32>
      %cst_134 = arith.constant 0.000000e+00 : f32
      %247 = vector.broadcast %cst_134 : f32 to vector<8x128xf32>
      %248 = arith.cmpf oge, %246, %247 : vector<8x128xf32>
      %249 = arith.andi %127, %248 : vector<8x128xi1>
      %250 = arith.mulf %199, %245 : vector<8x128xf32>
      %cst_135 = arith.constant 0.000000e+00 : f32
      %251 = vector.broadcast %cst_135 : f32 to vector<8x128xf32>
      %252 = arith.cmpf olt, %250, %251 : vector<8x128xf32>
      %cst_136 = arith.constant 0.000000e+00 : f32
      %253 = vector.broadcast %cst_136 : f32 to vector<8x128xf32>
      %254 = arith.select %252, %199, %253 : vector<8x128xi1>, vector<8x128xf32>
      %255 = arith.select %249, %240, %254 : vector<8x128xi1>, vector<8x128xf32>
      %256 = arith.select %252, %245, %240 : vector<8x128xi1>, vector<8x128xf32>
      %cst_137 = arith.constant 0.000000e+00 : f32
      %257 = vector.broadcast %cst_137 : f32 to vector<8x128xf32>
      %258 = arith.select %249, %257, %256 : vector<8x128xi1>, vector<8x128xf32>
      %cst_138 = arith.constant 0.000000e+00 : f32
      %259 = vector.broadcast %cst_138 : f32 to vector<8x128xf32>
      %260 = arith.select %249, %259, %244 : vector<8x128xi1>, vector<8x128xf32>
      %261 = math.absf %255 : vector<8x128xf32>
      %262 = arith.mulf %261, %94 : vector<8x128xf32>
      %263 = arith.mulf %260, %114 : vector<8x128xf32>
      %cst_139 = arith.constant 1.000000e+00 : f32
      %264 = vector.broadcast %cst_139 : f32 to vector<8x128xf32>
      %265 = arith.subf %264, %263 : vector<8x128xf32>
      %266 = arith.mulf %262, %265 : vector<8x128xf32>
      %267 = arith.addf %221, %266 : vector<8x128xf32>
      %c0_140 = arith.constant 0 : index
      %c1_141 = arith.constant 1 : index
      %268 = arith.index_cast %2 : i32 to index
      %c0_142 = arith.constant 0 : index
      %269 = vector.load %arg15[%c0_140, %c1_141, %268, %c0_142] : memref<3x4x64x128xf32, #tpu.memory_space<vmem>>, vector<1x1x8x128xf32>
      %270 = vector.shape_cast %269 : vector<1x1x8x128xf32> to vector<8x128xf32>
      %271 = vector.shape_cast %258 : vector<8x128xf32> to vector<1x1x8x128xf32>
      tpu.vector_store %arg15[%c0_140, %c1_141, %268, %c0_142], %271 {strides = array<i32>} : memref<3x4x64x128xf32, #tpu.memory_space<vmem>>, vector<1x1x8x128xf32>,
      %c0_143 = arith.constant 0 : index
      %c1_144 = arith.constant 1 : index
      %272 = arith.index_cast %2 : i32 to index
      %c0_145 = arith.constant 0 : index
      %273 = vector.load %arg16[%c0_143, %c1_144, %272, %c0_145] : memref<3x4x64x128xf32, #tpu.memory_space<vmem>>, vector<1x1x8x128xf32>
      %274 = vector.shape_cast %273 : vector<1x1x8x128xf32> to vector<8x128xf32>
      %275 = vector.shape_cast %260 : vector<8x128xf32> to vector<1x1x8x128xf32>
      tpu.vector_store %arg16[%c0_143, %c1_144, %272, %c0_145], %275 {strides = array<i32>} : memref<3x4x64x128xf32, #tpu.memory_space<vmem>>, vector<1x1x8x128xf32>,
      %276 = arith.addf %230, %258 : vector<8x128xf32>
      %c0_146 = arith.constant 0 : index
      %c3_147 = arith.constant 3 : index
      %277 = arith.index_cast %2 : i32 to index
      %c0_148 = arith.constant 0 : index
      %278 = vector.load %arg5[%c0_146, %c3_147, %277, %c0_148] : memref<3x4x64x128xf32, #tpu.memory_space<vmem>>, vector<1x1x8x128xf32>
      %279 = vector.shape_cast %278 : vector<1x1x8x128xf32> to vector<8x128xf32>
      %c0_149 = arith.constant 0 : index
      %c3_150 = arith.constant 3 : index
      %280 = arith.index_cast %2 : i32 to index
      %c0_151 = arith.constant 0 : index
      %281 = vector.load %arg6[%c0_149, %c3_150, %280, %c0_151] : memref<3x4x64x128xf32, #tpu.memory_space<vmem>>, vector<1x1x8x128xf32>
      %282 = vector.shape_cast %281 : vector<1x1x8x128xf32> to vector<8x128xf32>
      %c0_152 = arith.constant 0 : index
      %c2_153 = arith.constant 2 : index
      %283 = arith.index_cast %2 : i32 to index
      %c0_154 = arith.constant 0 : index
      %284 = vector.load %arg5[%c0_152, %c2_153, %283, %c0_154] : memref<3x4x64x128xf32, #tpu.memory_space<vmem>>, vector<1x1x8x128xf32>
      %285 = vector.shape_cast %284 : vector<1x1x8x128xf32> to vector<8x128xf32>
      %286 = arith.select %154, %279, %285 : vector<8x128xi1>, vector<8x128xf32>
      %c0_155 = arith.constant 0 : index
      %c2_156 = arith.constant 2 : index
      %287 = arith.index_cast %2 : i32 to index
      %c0_157 = arith.constant 0 : index
      %288 = vector.load %arg6[%c0_155, %c2_156, %287, %c0_157] : memref<3x4x64x128xf32, #tpu.memory_space<vmem>>, vector<1x1x8x128xf32>
      %289 = vector.shape_cast %288 : vector<1x1x8x128xf32> to vector<8x128xf32>
      %290 = arith.select %154, %282, %289 : vector<8x128xi1>, vector<8x128xf32>
      %291 = arith.addf %245, %286 : vector<8x128xf32>
      %292 = arith.mulf %291, %184 : vector<8x128xf32>
      %cst_158 = arith.constant 0.000000e+00 : f32
      %293 = vector.broadcast %cst_158 : f32 to vector<8x128xf32>
      %294 = arith.cmpf oge, %292, %293 : vector<8x128xf32>
      %295 = arith.andi %127, %294 : vector<8x128xi1>
      %296 = arith.mulf %245, %291 : vector<8x128xf32>
      %cst_159 = arith.constant 0.000000e+00 : f32
      %297 = vector.broadcast %cst_159 : f32 to vector<8x128xf32>
      %298 = arith.cmpf olt, %296, %297 : vector<8x128xf32>
      %cst_160 = arith.constant 0.000000e+00 : f32
      %299 = vector.broadcast %cst_160 : f32 to vector<8x128xf32>
      %300 = arith.select %298, %245, %299 : vector<8x128xi1>, vector<8x128xf32>
      %301 = arith.select %295, %286, %300 : vector<8x128xi1>, vector<8x128xf32>
      %302 = arith.select %298, %291, %286 : vector<8x128xi1>, vector<8x128xf32>
      %cst_161 = arith.constant 0.000000e+00 : f32
      %303 = vector.broadcast %cst_161 : f32 to vector<8x128xf32>
      %304 = arith.select %295, %303, %302 : vector<8x128xi1>, vector<8x128xf32>
      %cst_162 = arith.constant 0.000000e+00 : f32
      %305 = vector.broadcast %cst_162 : f32 to vector<8x128xf32>
      %306 = arith.select %295, %305, %290 : vector<8x128xi1>, vector<8x128xf32>
      %307 = math.absf %301 : vector<8x128xf32>
      %308 = arith.mulf %307, %94 : vector<8x128xf32>
      %309 = arith.mulf %306, %114 : vector<8x128xf32>
      %cst_163 = arith.constant 1.000000e+00 : f32
      %310 = vector.broadcast %cst_163 : f32 to vector<8x128xf32>
      %311 = arith.subf %310, %309 : vector<8x128xf32>
      %312 = arith.mulf %308, %311 : vector<8x128xf32>
      %313 = arith.addf %267, %312 : vector<8x128xf32>
      %c0_164 = arith.constant 0 : index
      %c2_165 = arith.constant 2 : index
      %314 = arith.index_cast %2 : i32 to index
      %c0_166 = arith.constant 0 : index
      %315 = vector.load %arg15[%c0_164, %c2_165, %314, %c0_166] : memref<3x4x64x128xf32, #tpu.memory_space<vmem>>, vector<1x1x8x128xf32>
      %316 = vector.shape_cast %315 : vector<1x1x8x128xf32> to vector<8x128xf32>
      %317 = vector.shape_cast %304 : vector<8x128xf32> to vector<1x1x8x128xf32>
      tpu.vector_store %arg15[%c0_164, %c2_165, %314, %c0_166], %317 {strides = array<i32>} : memref<3x4x64x128xf32, #tpu.memory_space<vmem>>, vector<1x1x8x128xf32>,
      %c0_167 = arith.constant 0 : index
      %c2_168 = arith.constant 2 : index
      %318 = arith.index_cast %2 : i32 to index
      %c0_169 = arith.constant 0 : index
      %319 = vector.load %arg16[%c0_167, %c2_168, %318, %c0_169] : memref<3x4x64x128xf32, #tpu.memory_space<vmem>>, vector<1x1x8x128xf32>
      %320 = vector.shape_cast %319 : vector<1x1x8x128xf32> to vector<8x128xf32>
      %321 = vector.shape_cast %306 : vector<8x128xf32> to vector<1x1x8x128xf32>
      tpu.vector_store %arg16[%c0_167, %c2_168, %318, %c0_169], %321 {strides = array<i32>} : memref<3x4x64x128xf32, #tpu.memory_space<vmem>>, vector<1x1x8x128xf32>,
      %322 = arith.addf %276, %304 : vector<8x128xf32>
      %c0_170 = arith.constant 0 : index
      %c3_171 = arith.constant 3 : index
      %323 = arith.index_cast %2 : i32 to index
      %c0_172 = arith.constant 0 : index
      %324 = vector.load %arg5[%c0_170, %c3_171, %323, %c0_172] : memref<3x4x64x128xf32, #tpu.memory_space<vmem>>, vector<1x1x8x128xf32>
      %325 = vector.shape_cast %324 : vector<1x1x8x128xf32> to vector<8x128xf32>
      %326 = arith.select %154, %184, %325 : vector<8x128xi1>, vector<8x128xf32>
      %c0_173 = arith.constant 0 : index
      %c3_174 = arith.constant 3 : index
      %327 = arith.index_cast %2 : i32 to index
      %c0_175 = arith.constant 0 : index
      %328 = vector.load %arg6[%c0_173, %c3_174, %327, %c0_175] : memref<3x4x64x128xf32, #tpu.memory_space<vmem>>, vector<1x1x8x128xf32>
      %329 = vector.shape_cast %328 : vector<1x1x8x128xf32> to vector<8x128xf32>
      %330 = arith.select %154, %140, %329 : vector<8x128xi1>, vector<8x128xf32>
      %331 = arith.addf %291, %326 : vector<8x128xf32>
      %332 = arith.mulf %331, %184 : vector<8x128xf32>
      %cst_176 = arith.constant 0.000000e+00 : f32
      %333 = vector.broadcast %cst_176 : f32 to vector<8x128xf32>
      %334 = arith.cmpf oge, %332, %333 : vector<8x128xf32>
      %335 = arith.andi %127, %334 : vector<8x128xi1>
      %336 = arith.mulf %291, %331 : vector<8x128xf32>
      %cst_177 = arith.constant 0.000000e+00 : f32
      %337 = vector.broadcast %cst_177 : f32 to vector<8x128xf32>
      %338 = arith.cmpf olt, %336, %337 : vector<8x128xf32>
      %cst_178 = arith.constant 0.000000e+00 : f32
      %339 = vector.broadcast %cst_178 : f32 to vector<8x128xf32>
      %340 = arith.select %338, %291, %339 : vector<8x128xi1>, vector<8x128xf32>
      %341 = arith.select %335, %326, %340 : vector<8x128xi1>, vector<8x128xf32>
      %342 = arith.select %338, %331, %326 : vector<8x128xi1>, vector<8x128xf32>
      %cst_179 = arith.constant 0.000000e+00 : f32
      %343 = vector.broadcast %cst_179 : f32 to vector<8x128xf32>
      %344 = arith.select %335, %343, %342 : vector<8x128xi1>, vector<8x128xf32>
      %cst_180 = arith.constant 0.000000e+00 : f32
      %345 = vector.broadcast %cst_180 : f32 to vector<8x128xf32>
      %346 = arith.select %335, %345, %330 : vector<8x128xi1>, vector<8x128xf32>
      %347 = math.absf %341 : vector<8x128xf32>
      %348 = arith.mulf %347, %94 : vector<8x128xf32>
      %349 = arith.mulf %346, %114 : vector<8x128xf32>
      %cst_181 = arith.constant 1.000000e+00 : f32
      %350 = vector.broadcast %cst_181 : f32 to vector<8x128xf32>
      %351 = arith.subf %350, %349 : vector<8x128xf32>
      %352 = arith.mulf %348, %351 : vector<8x128xf32>
      %353 = arith.addf %313, %352 : vector<8x128xf32>
      %354 = arith.addf %11, %147 : vector<8x128xf32>
      %355 = arith.divf %353, %4 : vector<8x128xf32>
      %cst_182 = arith.constant 1.000000e+00 : f32
      %356 = vector.broadcast %cst_182 : f32 to vector<8x128xf32>
      %357 = arith.addf %356, %355 : vector<8x128xf32>
      %358 = math.log %357 : vector<8x128xf32>
      %359 = arith.subf %358, %100 : vector<8x128xf32>
      %360 = arith.mulf %354, %359 : vector<8x128xf32>
      %361 = arith.addf %360, %358 : vector<8x128xf32>
      %362 = arith.subf %12, %361 : vector<8x128xf32>
      %363 = arith.mulf %359, %359 : vector<8x128xf32>
      %364 = arith.addf %362, %363 : vector<8x128xf32>
      %365 = arith.subf %12, %358 : vector<8x128xf32>
      %366 = arith.addf %4, %353 : vector<8x128xf32>
      %cst_183 = arith.constant 0.000000e+00 : f32
      %367 = vector.broadcast %cst_183 : f32 to vector<8x128xf32>
      %368 = arith.cmpf one, %331, %367 : vector<8x128xf32>
      %369 = arith.andi %335, %368 : vector<8x128xi1>
      %370 = arith.select %155, %184, %344 : vector<8x128xi1>, vector<8x128xf32>
      %371 = arith.select %369, %331, %370 : vector<8x128xi1>, vector<8x128xf32>
      %372 = arith.ori %369, %155 : vector<8x128xi1>
      %373 = arith.select %372, %140, %346 : vector<8x128xi1>, vector<8x128xf32>
      %c0_184 = arith.constant 0 : index
      %c3_185 = arith.constant 3 : index
      %374 = arith.index_cast %2 : i32 to index
      %c0_186 = arith.constant 0 : index
      %375 = vector.load %arg15[%c0_184, %c3_185, %374, %c0_186] : memref<3x4x64x128xf32, #tpu.memory_space<vmem>>, vector<1x1x8x128xf32>
      %376 = vector.shape_cast %375 : vector<1x1x8x128xf32> to vector<8x128xf32>
      %377 = vector.shape_cast %371 : vector<8x128xf32> to vector<1x1x8x128xf32>
      tpu.vector_store %arg15[%c0_184, %c3_185, %374, %c0_186], %377 {strides = array<i32>} : memref<3x4x64x128xf32, #tpu.memory_space<vmem>>, vector<1x1x8x128xf32>,
      %c0_187 = arith.constant 0 : index
      %c3_188 = arith.constant 3 : index
      %378 = arith.index_cast %2 : i32 to index
      %c0_189 = arith.constant 0 : index
      %379 = vector.load %arg16[%c0_187, %c3_188, %378, %c0_189] : memref<3x4x64x128xf32, #tpu.memory_space<vmem>>, vector<1x1x8x128xf32>
      %380 = vector.shape_cast %379 : vector<1x1x8x128xf32> to vector<8x128xf32>
      %381 = vector.shape_cast %373 : vector<8x128xf32> to vector<1x1x8x128xf32>
      tpu.vector_store %arg16[%c0_187, %c3_188, %378, %c0_189], %381 {strides = array<i32>} : memref<3x4x64x128xf32, #tpu.memory_space<vmem>>, vector<1x1x8x128xf32>,
      %382 = arith.addf %322, %371 : vector<8x128xf32>
      %383 = math.absf %382 : vector<8x128xf32>
      %cst_190 = arith.constant 1.000000e+00 : f32
      %384 = vector.broadcast %cst_190 : f32 to vector<8x128xf32>
      %385 = arith.mulf %383, %384 : vector<8x128xf32>
      %386 = arith.mulf %385, %94 : vector<8x128xf32>
      %387 = arith.subf %386, %174 : vector<8x128xf32>
      %388 = arith.addf %84, %387 : vector<8x128xf32>
      %c1_191 = arith.constant 1 : index
      %389 = arith.index_cast %2 : i32 to index
      %c0_192 = arith.constant 0 : index
      %390 = vector.load %arg1[%c1_191, %389, %c0_192] : memref<3x64x128xf32, #tpu.memory_space<vmem>>, vector<1x8x128xf32>
      %391 = vector.shape_cast %390 : vector<1x8x128xf32> to vector<8x128xf32>
      %c1_193 = arith.constant 1 : index
      %392 = arith.index_cast %2 : i32 to index
      %c0_194 = arith.constant 0 : index
      %393 = vector.load %arg2[%c1_193, %392, %c0_194] : memref<3x64x128xf32, #tpu.memory_space<vmem>>, vector<1x8x128xf32>
      %394 = vector.shape_cast %393 : vector<1x8x128xf32> to vector<8x128xf32>
      %c1_195 = arith.constant 1 : index
      %395 = arith.index_cast %2 : i32 to index
      %c0_196 = arith.constant 0 : index
      %396 = vector.load %arg3[%c1_195, %395, %c0_196] : memref<3x64x128xf32, #tpu.memory_space<vmem>>, vector<1x8x128xf32>
      %397 = vector.shape_cast %396 : vector<1x8x128xf32> to vector<8x128xf32>
      %398 = tpu.reciprocal %397 {approx = true} : vector<8x128xf32> -> vector<8x128xf32>
      %c1_197 = arith.constant 1 : index
      %399 = arith.index_cast %2 : i32 to index
      %c0_198 = arith.constant 0 : index
      %400 = vector.load %arg9[%c1_197, %399, %c0_198] : memref<3x64x128xf32, #tpu.memory_space<vmem>>, vector<1x8x128xf32>
      %401 = vector.shape_cast %400 : vector<1x8x128xf32> to vector<8x128xf32>
      %c1_199 = arith.constant 1 : index
      %402 = arith.index_cast %2 : i32 to index
      %c0_200 = arith.constant 0 : index
      %403 = vector.load %arg11[%c1_199, %402, %c0_200] : memref<3x64x128xf32, #tpu.memory_space<vmem>>, vector<1x8x128xf32>
      %404 = vector.shape_cast %403 : vector<1x8x128xf32> to vector<8x128xf32>
      %c1_201 = arith.constant 1 : index
      %c3_202 = arith.constant 3 : index
      %405 = arith.index_cast %2 : i32 to index
      %c0_203 = arith.constant 0 : index
      %406 = vector.load %arg5[%c1_201, %c3_202, %405, %c0_203] : memref<3x4x64x128xf32, #tpu.memory_space<vmem>>, vector<1x1x8x128xf32>
      %407 = vector.shape_cast %406 : vector<1x1x8x128xf32> to vector<8x128xf32>
      %c1_204 = arith.constant 1 : index
      %c0_205 = arith.constant 0 : index
      %408 = arith.index_cast %2 : i32 to index
      %c0_206 = arith.constant 0 : index
      %409 = vector.load %arg5[%c1_204, %c0_205, %408, %c0_206] : memref<3x4x64x128xf32, #tpu.memory_space<vmem>>, vector<1x1x8x128xf32>
      %410 = vector.shape_cast %409 : vector<1x1x8x128xf32> to vector<8x128xf32>
      %cst_207 = arith.constant 0.000000e+00 : f32
      %411 = vector.broadcast %cst_207 : f32 to vector<8x128xf32>
      %412 = arith.cmpf ogt, %407, %411 : vector<8x128xf32>
      %cst_208 = arith.constant 0.000000e+00 : f32
      %413 = vector.broadcast %cst_208 : f32 to vector<8x128xf32>
      %414 = arith.cmpf olt, %407, %413 : vector<8x128xf32>
      %cst_209 = arith.constant 1.000000e+00 : f32
      %415 = vector.broadcast %cst_209 : f32 to vector<8x128xf32>
      %416 = arith.select %414, %394, %415 : vector<8x128xi1>, vector<8x128xf32>
      %417 = arith.select %412, %391, %416 : vector<8x128xi1>, vector<8x128xf32>
      %418 = tpu.reciprocal %417 {approx = true} : vector<8x128xf32> -> vector<8x128xf32>
      %419 = arith.mulf %401, %407 : vector<8x128xf32>
      %cst_210 = arith.constant 0.000000e+00 : f32
      %420 = vector.broadcast %cst_210 : f32 to vector<8x128xf32>
      %421 = arith.cmpf oeq, %410, %420 : vector<8x128xf32>
      %422 = arith.andi %9, %421 : vector<8x128xi1>
      %cst_211 = arith.constant 0.000000e+00 : f32
      %423 = vector.broadcast %cst_211 : f32 to vector<8x128xf32>
      %424 = arith.cmpf ogt, %419, %423 : vector<8x128xf32>
      %425 = arith.andi %422, %424 : vector<8x128xi1>
      %cst_212 = arith.constant 0.000000e+00 : f32
      %426 = vector.broadcast %cst_212 : f32 to vector<8x128xf32>
      %427 = arith.cmpf one, %407, %426 : vector<8x128xf32>
      %428 = arith.andi %8, %427 : vector<8x128xi1>
      %cst_213 = arith.constant 0.000000e+00 : f32
      %429 = vector.broadcast %cst_213 : f32 to vector<8x128xf32>
      %430 = arith.cmpf olt, %419, %429 : vector<8x128xf32>
      %431 = arith.ori %428, %430 : vector<8x128xi1>
      %cst_214 = arith.constant 0.000000e+00 : f32
      %432 = vector.broadcast %cst_214 : f32 to vector<8x128xf32>
      %433 = arith.cmpf oeq, %407, %432 : vector<8x128xf32>
      %434 = arith.andi %9, %433 : vector<8x128xi1>
      %cst_215 = arith.constant 0.000000e+00 : f32
      %435 = vector.broadcast %cst_215 : f32 to vector<8x128xf32>
      %436 = arith.cmpf one, %401, %435 : vector<8x128xf32>
      %437 = arith.andi %434, %436 : vector<8x128xi1>
      %cst_216 = arith.constant 0.000000e+00 : f32
      %438 = vector.broadcast %cst_216 : f32 to vector<8x128xf32>
      %439 = arith.cmpf ogt, %401, %438 : vector<8x128xf32>
      %cst_217 = arith.constant 0.000000e+00 : f32
      %440 = vector.broadcast %cst_217 : f32 to vector<8x128xf32>
      %441 = arith.cmpf olt, %401, %440 : vector<8x128xf32>
      %cst_218 = arith.constant 0.000000e+00 : f32
      %442 = vector.broadcast %cst_218 : f32 to vector<8x128xf32>
      %443 = arith.select %441, %391, %442 : vector<8x128xi1>, vector<8x128xf32>
      %444 = arith.select %439, %394, %443 : vector<8x128xi1>, vector<8x128xf32>
      %445 = arith.andi %431, %9 : vector<8x128xi1>
      %c1_219 = arith.constant 1 : index
      %446 = arith.index_cast %2 : i32 to index
      %c0_220 = arith.constant 0 : index
      %447 = vector.load %arg10[%c1_219, %446, %c0_220] : memref<3x64x128xf32, #tpu.memory_space<vmem>>, vector<1x8x128xf32>
      %448 = vector.shape_cast %447 : vector<1x8x128xf32> to vector<8x128xf32>
      %cst_221 = arith.constant 0.000000e+00 : f32
      %449 = vector.broadcast %cst_221 : f32 to vector<8x128xf32>
      %450 = arith.select %445, %448, %449 : vector<8x128xi1>, vector<8x128xf32>
      %451 = arith.addf %147, %450 : vector<8x128xf32>
      %452 = arith.subf %366, %388 : vector<8x128xf32>
      %cst_222 = arith.constant 0.000000e+00 : f32
      %453 = vector.broadcast %cst_222 : f32 to vector<8x128xf32>
      %454 = arith.cmpf ole, %452, %453 : vector<8x128xf32>
      %cst_223 = arith.constant 0.000000e+00 : f32
      %455 = vector.broadcast %cst_223 : f32 to vector<8x128xf32>
      %456 = arith.select %454, %455, %452 : vector<8x128xi1>, vector<8x128xf32>
      %cst_224 = arith.constant dense<true> : vector<8x128xi1>
      %457 = arith.xori %454, %cst_224 : vector<8x128xi1>
      %458 = arith.andi %425, %457 : vector<8x128xi1>
      %459 = arith.andi %437, %457 : vector<8x128xi1>
      %c1_225 = arith.constant 1 : index
      %c0_226 = arith.constant 0 : index
      %460 = arith.index_cast %2 : i32 to index
      %c0_227 = arith.constant 0 : index
      %461 = vector.load %arg5[%c1_225, %c0_226, %460, %c0_227] : memref<3x4x64x128xf32, #tpu.memory_space<vmem>>, vector<1x1x8x128xf32>
      %462 = vector.shape_cast %461 : vector<1x1x8x128xf32> to vector<8x128xf32>
      %c1_228 = arith.constant 1 : index
      %c1_229 = arith.constant 1 : index
      %463 = arith.index_cast %2 : i32 to index
      %c0_230 = arith.constant 0 : index
      %464 = vector.load %arg5[%c1_228, %c1_229, %463, %c0_230] : memref<3x4x64x128xf32, #tpu.memory_space<vmem>>, vector<1x1x8x128xf32>
      %465 = vector.shape_cast %464 : vector<1x1x8x128xf32> to vector<8x128xf32>
      %466 = arith.addf %462, %465 : vector<8x128xf32>
      %c1_231 = arith.constant 1 : index
      %c2_232 = arith.constant 2 : index
      %467 = arith.index_cast %2 : i32 to index
      %c0_233 = arith.constant 0 : index
      %468 = vector.load %arg5[%c1_231, %c2_232, %467, %c0_233] : memref<3x4x64x128xf32, #tpu.memory_space<vmem>>, vector<1x1x8x128xf32>
      %469 = vector.shape_cast %468 : vector<1x1x8x128xf32> to vector<8x128xf32>
      %470 = arith.addf %466, %469 : vector<8x128xf32>
      %c1_234 = arith.constant 1 : index
      %c3_235 = arith.constant 3 : index
      %471 = arith.index_cast %2 : i32 to index
      %c0_236 = arith.constant 0 : index
      %472 = vector.load %arg5[%c1_234, %c3_235, %471, %c0_236] : memref<3x4x64x128xf32, #tpu.memory_space<vmem>>, vector<1x1x8x128xf32>
      %473 = vector.shape_cast %472 : vector<1x1x8x128xf32> to vector<8x128xf32>
      %474 = arith.addf %470, %473 : vector<8x128xf32>
      %475 = math.absf %474 : vector<8x128xf32>
      %cst_237 = arith.constant 1.000000e+00 : f32
      %476 = vector.broadcast %cst_237 : f32 to vector<8x128xf32>
      %477 = arith.mulf %475, %476 : vector<8x128xf32>
      %478 = arith.mulf %477, %398 : vector<8x128xf32>
      %cst_238 = arith.constant 0.000000e+00 : f32
      %479 = vector.broadcast %cst_238 : f32 to vector<8x128xf32>
      %480 = arith.select %431, %478, %479 : vector<8x128xi1>, vector<8x128xf32>
      %481 = arith.addf %456, %480 : vector<8x128xf32>
      %482 = arith.mulf %401, %481 : vector<8x128xf32>
      %cst_239 = arith.constant 1.000000e+00 : f32
      %483 = vector.broadcast %cst_239 : f32 to vector<8x128xf32>
      %484 = arith.mulf %482, %483 : vector<8x128xf32>
      %485 = arith.mulf %484, %397 : vector<8x128xf32>
      %cst_240 = arith.constant 0.000000e+00 : f32
      %486 = vector.broadcast %cst_240 : f32 to vector<8x128xf32>
      %487 = arith.subf %486, %474 : vector<8x128xf32>
      %488 = arith.select %8, %487, %485 : vector<8x128xi1>, vector<8x128xf32>
      %c1_241 = arith.constant 1 : index
      %c1_242 = arith.constant 1 : index
      %489 = arith.index_cast %2 : i32 to index
      %c0_243 = arith.constant 0 : index
      %490 = vector.load %arg5[%c1_241, %c1_242, %489, %c0_243] : memref<3x4x64x128xf32, #tpu.memory_space<vmem>>, vector<1x1x8x128xf32>
      %491 = vector.shape_cast %490 : vector<1x1x8x128xf32> to vector<8x128xf32>
      %c1_244 = arith.constant 1 : index
      %c1_245 = arith.constant 1 : index
      %492 = arith.index_cast %2 : i32 to index
      %c0_246 = arith.constant 0 : index
      %493 = vector.load %arg6[%c1_244, %c1_245, %492, %c0_246] : memref<3x4x64x128xf32, #tpu.memory_space<vmem>>, vector<1x1x8x128xf32>
      %494 = vector.shape_cast %493 : vector<1x1x8x128xf32> to vector<8x128xf32>
      %c1_247 = arith.constant 1 : index
      %c0_248 = arith.constant 0 : index
      %495 = arith.index_cast %2 : i32 to index
      %c0_249 = arith.constant 0 : index
      %496 = vector.load %arg5[%c1_247, %c0_248, %495, %c0_249] : memref<3x4x64x128xf32, #tpu.memory_space<vmem>>, vector<1x1x8x128xf32>
      %497 = vector.shape_cast %496 : vector<1x1x8x128xf32> to vector<8x128xf32>
      %498 = arith.select %458, %491, %497 : vector<8x128xi1>, vector<8x128xf32>
      %c1_250 = arith.constant 1 : index
      %c0_251 = arith.constant 0 : index
      %499 = arith.index_cast %2 : i32 to index
      %c0_252 = arith.constant 0 : index
      %500 = vector.load %arg6[%c1_250, %c0_251, %499, %c0_252] : memref<3x4x64x128xf32, #tpu.memory_space<vmem>>, vector<1x1x8x128xf32>
      %501 = vector.shape_cast %500 : vector<1x1x8x128xf32> to vector<8x128xf32>
      %502 = arith.select %458, %494, %501 : vector<8x128xi1>, vector<8x128xf32>
      %503 = arith.addf %488, %498 : vector<8x128xf32>
      %504 = arith.mulf %503, %488 : vector<8x128xf32>
      %cst_253 = arith.constant 0.000000e+00 : f32
      %505 = vector.broadcast %cst_253 : f32 to vector<8x128xf32>
      %506 = arith.cmpf oge, %504, %505 : vector<8x128xf32>
      %507 = arith.andi %431, %506 : vector<8x128xi1>
      %508 = arith.mulf %488, %503 : vector<8x128xf32>
      %cst_254 = arith.constant 0.000000e+00 : f32
      %509 = vector.broadcast %cst_254 : f32 to vector<8x128xf32>
      %510 = arith.cmpf olt, %508, %509 : vector<8x128xf32>
      %cst_255 = arith.constant 0.000000e+00 : f32
      %511 = vector.broadcast %cst_255 : f32 to vector<8x128xf32>
      %512 = arith.select %510, %488, %511 : vector<8x128xi1>, vector<8x128xf32>
      %513 = arith.select %507, %498, %512 : vector<8x128xi1>, vector<8x128xf32>
      %514 = arith.select %510, %503, %498 : vector<8x128xi1>, vector<8x128xf32>
      %cst_256 = arith.constant 0.000000e+00 : f32
      %515 = vector.broadcast %cst_256 : f32 to vector<8x128xf32>
      %516 = arith.select %507, %515, %514 : vector<8x128xi1>, vector<8x128xf32>
      %cst_257 = arith.constant 0.000000e+00 : f32
      %517 = vector.broadcast %cst_257 : f32 to vector<8x128xf32>
      %518 = arith.select %507, %517, %502 : vector<8x128xi1>, vector<8x128xf32>
      %519 = math.absf %513 : vector<8x128xf32>
      %520 = arith.mulf %519, %398 : vector<8x128xf32>
      %521 = arith.mulf %518, %418 : vector<8x128xf32>
      %cst_258 = arith.constant 1.000000e+00 : f32
      %522 = vector.broadcast %cst_258 : f32 to vector<8x128xf32>
      %523 = arith.subf %522, %521 : vector<8x128xf32>
      %524 = arith.mulf %520, %523 : vector<8x128xf32>
      %525 = arith.addf %12, %524 : vector<8x128xf32>
      %c1_259 = arith.constant 1 : index
      %c0_260 = arith.constant 0 : index
      %526 = arith.index_cast %2 : i32 to index
      %c0_261 = arith.constant 0 : index
      %527 = vector.load %arg15[%c1_259, %c0_260, %526, %c0_261] : memref<3x4x64x128xf32, #tpu.memory_space<vmem>>, vector<1x1x8x128xf32>
      %528 = vector.shape_cast %527 : vector<1x1x8x128xf32> to vector<8x128xf32>
      %529 = vector.shape_cast %516 : vector<8x128xf32> to vector<1x1x8x128xf32>
      tpu.vector_store %arg15[%c1_259, %c0_260, %526, %c0_261], %529 {strides = array<i32>} : memref<3x4x64x128xf32, #tpu.memory_space<vmem>>, vector<1x1x8x128xf32>,
      %c1_262 = arith.constant 1 : index
      %c0_263 = arith.constant 0 : index
      %530 = arith.index_cast %2 : i32 to index
      %c0_264 = arith.constant 0 : index
      %531 = vector.load %arg16[%c1_262, %c0_263, %530, %c0_264] : memref<3x4x64x128xf32, #tpu.memory_space<vmem>>, vector<1x1x8x128xf32>
      %532 = vector.shape_cast %531 : vector<1x1x8x128xf32> to vector<8x128xf32>
      %533 = vector.shape_cast %518 : vector<8x128xf32> to vector<1x1x8x128xf32>
      tpu.vector_store %arg16[%c1_262, %c0_263, %530, %c0_264], %533 {strides = array<i32>} : memref<3x4x64x128xf32, #tpu.memory_space<vmem>>, vector<1x1x8x128xf32>,
      %534 = arith.addf %12, %516 : vector<8x128xf32>
      %c1_265 = arith.constant 1 : index
      %c2_266 = arith.constant 2 : index
      %535 = arith.index_cast %2 : i32 to index
      %c0_267 = arith.constant 0 : index
      %536 = vector.load %arg5[%c1_265, %c2_266, %535, %c0_267] : memref<3x4x64x128xf32, #tpu.memory_space<vmem>>, vector<1x1x8x128xf32>
      %537 = vector.shape_cast %536 : vector<1x1x8x128xf32> to vector<8x128xf32>
      %c1_268 = arith.constant 1 : index
      %c2_269 = arith.constant 2 : index
      %538 = arith.index_cast %2 : i32 to index
      %c0_270 = arith.constant 0 : index
      %539 = vector.load %arg6[%c1_268, %c2_269, %538, %c0_270] : memref<3x4x64x128xf32, #tpu.memory_space<vmem>>, vector<1x1x8x128xf32>
      %540 = vector.shape_cast %539 : vector<1x1x8x128xf32> to vector<8x128xf32>
      %c1_271 = arith.constant 1 : index
      %c1_272 = arith.constant 1 : index
      %541 = arith.index_cast %2 : i32 to index
      %c0_273 = arith.constant 0 : index
      %542 = vector.load %arg5[%c1_271, %c1_272, %541, %c0_273] : memref<3x4x64x128xf32, #tpu.memory_space<vmem>>, vector<1x1x8x128xf32>
      %543 = vector.shape_cast %542 : vector<1x1x8x128xf32> to vector<8x128xf32>
      %544 = arith.select %458, %537, %543 : vector<8x128xi1>, vector<8x128xf32>
      %c1_274 = arith.constant 1 : index
      %c1_275 = arith.constant 1 : index
      %545 = arith.index_cast %2 : i32 to index
      %c0_276 = arith.constant 0 : index
      %546 = vector.load %arg6[%c1_274, %c1_275, %545, %c0_276] : memref<3x4x64x128xf32, #tpu.memory_space<vmem>>, vector<1x1x8x128xf32>
      %547 = vector.shape_cast %546 : vector<1x1x8x128xf32> to vector<8x128xf32>
      %548 = arith.select %458, %540, %547 : vector<8x128xi1>, vector<8x128xf32>
      %549 = arith.addf %503, %544 : vector<8x128xf32>
      %550 = arith.mulf %549, %488 : vector<8x128xf32>
      %cst_277 = arith.constant 0.000000e+00 : f32
      %551 = vector.broadcast %cst_277 : f32 to vector<8x128xf32>
      %552 = arith.cmpf oge, %550, %551 : vector<8x128xf32>
      %553 = arith.andi %431, %552 : vector<8x128xi1>
      %554 = arith.mulf %503, %549 : vector<8x128xf32>
      %cst_278 = arith.constant 0.000000e+00 : f32
      %555 = vector.broadcast %cst_278 : f32 to vector<8x128xf32>
      %556 = arith.cmpf olt, %554, %555 : vector<8x128xf32>
      %cst_279 = arith.constant 0.000000e+00 : f32
      %557 = vector.broadcast %cst_279 : f32 to vector<8x128xf32>
      %558 = arith.select %556, %503, %557 : vector<8x128xi1>, vector<8x128xf32>
      %559 = arith.select %553, %544, %558 : vector<8x128xi1>, vector<8x128xf32>
      %560 = arith.select %556, %549, %544 : vector<8x128xi1>, vector<8x128xf32>
      %cst_280 = arith.constant 0.000000e+00 : f32
      %561 = vector.broadcast %cst_280 : f32 to vector<8x128xf32>
      %562 = arith.select %553, %561, %560 : vector<8x128xi1>, vector<8x128xf32>
      %cst_281 = arith.constant 0.000000e+00 : f32
      %563 = vector.broadcast %cst_281 : f32 to vector<8x128xf32>
      %564 = arith.select %553, %563, %548 : vector<8x128xi1>, vector<8x128xf32>
      %565 = math.absf %559 : vector<8x128xf32>
      %566 = arith.mulf %565, %398 : vector<8x128xf32>
      %567 = arith.mulf %564, %418 : vector<8x128xf32>
      %cst_282 = arith.constant 1.000000e+00 : f32
      %568 = vector.broadcast %cst_282 : f32 to vector<8x128xf32>
      %569 = arith.subf %568, %567 : vector<8x128xf32>
      %570 = arith.mulf %566, %569 : vector<8x128xf32>
      %571 = arith.addf %525, %570 : vector<8x128xf32>
      %c1_283 = arith.constant 1 : index
      %c1_284 = arith.constant 1 : index
      %572 = arith.index_cast %2 : i32 to index
      %c0_285 = arith.constant 0 : index
      %573 = vector.load %arg15[%c1_283, %c1_284, %572, %c0_285] : memref<3x4x64x128xf32, #tpu.memory_space<vmem>>, vector<1x1x8x128xf32>
      %574 = vector.shape_cast %573 : vector<1x1x8x128xf32> to vector<8x128xf32>
      %575 = vector.shape_cast %562 : vector<8x128xf32> to vector<1x1x8x128xf32>
      tpu.vector_store %arg15[%c1_283, %c1_284, %572, %c0_285], %575 {strides = array<i32>} : memref<3x4x64x128xf32, #tpu.memory_space<vmem>>, vector<1x1x8x128xf32>,
      %c1_286 = arith.constant 1 : index
      %c1_287 = arith.constant 1 : index
      %576 = arith.index_cast %2 : i32 to index
      %c0_288 = arith.constant 0 : index
      %577 = vector.load %arg16[%c1_286, %c1_287, %576, %c0_288] : memref<3x4x64x128xf32, #tpu.memory_space<vmem>>, vector<1x1x8x128xf32>
      %578 = vector.shape_cast %577 : vector<1x1x8x128xf32> to vector<8x128xf32>
      %579 = vector.shape_cast %564 : vector<8x128xf32> to vector<1x1x8x128xf32>
      tpu.vector_store %arg16[%c1_286, %c1_287, %576, %c0_288], %579 {strides = array<i32>} : memref<3x4x64x128xf32, #tpu.memory_space<vmem>>, vector<1x1x8x128xf32>,
      %580 = arith.addf %534, %562 : vector<8x128xf32>
      %c1_289 = arith.constant 1 : index
      %c3_290 = arith.constant 3 : index
      %581 = arith.index_cast %2 : i32 to index
      %c0_291 = arith.constant 0 : index
      %582 = vector.load %arg5[%c1_289, %c3_290, %581, %c0_291] : memref<3x4x64x128xf32, #tpu.memory_space<vmem>>, vector<1x1x8x128xf32>
      %583 = vector.shape_cast %582 : vector<1x1x8x128xf32> to vector<8x128xf32>
      %c1_292 = arith.constant 1 : index
      %c3_293 = arith.constant 3 : index
      %584 = arith.index_cast %2 : i32 to index
      %c0_294 = arith.constant 0 : index
      %585 = vector.load %arg6[%c1_292, %c3_293, %584, %c0_294] : memref<3x4x64x128xf32, #tpu.memory_space<vmem>>, vector<1x1x8x128xf32>
      %586 = vector.shape_cast %585 : vector<1x1x8x128xf32> to vector<8x128xf32>
      %c1_295 = arith.constant 1 : index
      %c2_296 = arith.constant 2 : index
      %587 = arith.index_cast %2 : i32 to index
      %c0_297 = arith.constant 0 : index
      %588 = vector.load %arg5[%c1_295, %c2_296, %587, %c0_297] : memref<3x4x64x128xf32, #tpu.memory_space<vmem>>, vector<1x1x8x128xf32>
      %589 = vector.shape_cast %588 : vector<1x1x8x128xf32> to vector<8x128xf32>
      %590 = arith.select %458, %583, %589 : vector<8x128xi1>, vector<8x128xf32>
      %c1_298 = arith.constant 1 : index
      %c2_299 = arith.constant 2 : index
      %591 = arith.index_cast %2 : i32 to index
      %c0_300 = arith.constant 0 : index
      %592 = vector.load %arg6[%c1_298, %c2_299, %591, %c0_300] : memref<3x4x64x128xf32, #tpu.memory_space<vmem>>, vector<1x1x8x128xf32>
      %593 = vector.shape_cast %592 : vector<1x1x8x128xf32> to vector<8x128xf32>
      %594 = arith.select %458, %586, %593 : vector<8x128xi1>, vector<8x128xf32>
      %595 = arith.addf %549, %590 : vector<8x128xf32>
      %596 = arith.mulf %595, %488 : vector<8x128xf32>
      %cst_301 = arith.constant 0.000000e+00 : f32
      %597 = vector.broadcast %cst_301 : f32 to vector<8x128xf32>
      %598 = arith.cmpf oge, %596, %597 : vector<8x128xf32>
      %599 = arith.andi %431, %598 : vector<8x128xi1>
      %600 = arith.mulf %549, %595 : vector<8x128xf32>
      %cst_302 = arith.constant 0.000000e+00 : f32
      %601 = vector.broadcast %cst_302 : f32 to vector<8x128xf32>
      %602 = arith.cmpf olt, %600, %601 : vector<8x128xf32>
      %cst_303 = arith.constant 0.000000e+00 : f32
      %603 = vector.broadcast %cst_303 : f32 to vector<8x128xf32>
      %604 = arith.select %602, %549, %603 : vector<8x128xi1>, vector<8x128xf32>
      %605 = arith.select %599, %590, %604 : vector<8x128xi1>, vector<8x128xf32>
      %606 = arith.select %602, %595, %590 : vector<8x128xi1>, vector<8x128xf32>
      %cst_304 = arith.constant 0.000000e+00 : f32
      %607 = vector.broadcast %cst_304 : f32 to vector<8x128xf32>
      %608 = arith.select %599, %607, %606 : vector<8x128xi1>, vector<8x128xf32>
      %cst_305 = arith.constant 0.000000e+00 : f32
      %609 = vector.broadcast %cst_305 : f32 to vector<8x128xf32>
      %610 = arith.select %599, %609, %594 : vector<8x128xi1>, vector<8x128xf32>
      %611 = math.absf %605 : vector<8x128xf32>
      %612 = arith.mulf %611, %398 : vector<8x128xf32>
      %613 = arith.mulf %610, %418 : vector<8x128xf32>
      %cst_306 = arith.constant 1.000000e+00 : f32
      %614 = vector.broadcast %cst_306 : f32 to vector<8x128xf32>
      %615 = arith.subf %614, %613 : vector<8x128xf32>
      %616 = arith.mulf %612, %615 : vector<8x128xf32>
      %617 = arith.addf %571, %616 : vector<8x128xf32>
      %c1_307 = arith.constant 1 : index
      %c2_308 = arith.constant 2 : index
      %618 = arith.index_cast %2 : i32 to index
      %c0_309 = arith.constant 0 : index
      %619 = vector.load %arg15[%c1_307, %c2_308, %618, %c0_309] : memref<3x4x64x128xf32, #tpu.memory_space<vmem>>, vector<1x1x8x128xf32>
      %620 = vector.shape_cast %619 : vector<1x1x8x128xf32> to vector<8x128xf32>
      %621 = vector.shape_cast %608 : vector<8x128xf32> to vector<1x1x8x128xf32>
      tpu.vector_store %arg15[%c1_307, %c2_308, %618, %c0_309], %621 {strides = array<i32>} : memref<3x4x64x128xf32, #tpu.memory_space<vmem>>, vector<1x1x8x128xf32>,
      %c1_310 = arith.constant 1 : index
      %c2_311 = arith.constant 2 : index
      %622 = arith.index_cast %2 : i32 to index
      %c0_312 = arith.constant 0 : index
      %623 = vector.load %arg16[%c1_310, %c2_311, %622, %c0_312] : memref<3x4x64x128xf32, #tpu.memory_space<vmem>>, vector<1x1x8x128xf32>
      %624 = vector.shape_cast %623 : vector<1x1x8x128xf32> to vector<8x128xf32>
      %625 = vector.shape_cast %610 : vector<8x128xf32> to vector<1x1x8x128xf32>
      tpu.vector_store %arg16[%c1_310, %c2_311, %622, %c0_312], %625 {strides = array<i32>} : memref<3x4x64x128xf32, #tpu.memory_space<vmem>>, vector<1x1x8x128xf32>,
      %626 = arith.addf %580, %608 : vector<8x128xf32>
      %c1_313 = arith.constant 1 : index
      %c3_314 = arith.constant 3 : index
      %627 = arith.index_cast %2 : i32 to index
      %c0_315 = arith.constant 0 : index
      %628 = vector.load %arg5[%c1_313, %c3_314, %627, %c0_315] : memref<3x4x64x128xf32, #tpu.memory_space<vmem>>, vector<1x1x8x128xf32>
      %629 = vector.shape_cast %628 : vector<1x1x8x128xf32> to vector<8x128xf32>
      %630 = arith.select %458, %488, %629 : vector<8x128xi1>, vector<8x128xf32>
      %c1_316 = arith.constant 1 : index
      %c3_317 = arith.constant 3 : index
      %631 = arith.index_cast %2 : i32 to index
      %c0_318 = arith.constant 0 : index
      %632 = vector.load %arg6[%c1_316, %c3_317, %631, %c0_318] : memref<3x4x64x128xf32, #tpu.memory_space<vmem>>, vector<1x1x8x128xf32>
      %633 = vector.shape_cast %632 : vector<1x1x8x128xf32> to vector<8x128xf32>
      %634 = arith.select %458, %444, %633 : vector<8x128xi1>, vector<8x128xf32>
      %635 = arith.addf %595, %630 : vector<8x128xf32>
      %636 = arith.mulf %635, %488 : vector<8x128xf32>
      %cst_319 = arith.constant 0.000000e+00 : f32
      %637 = vector.broadcast %cst_319 : f32 to vector<8x128xf32>
      %638 = arith.cmpf oge, %636, %637 : vector<8x128xf32>
      %639 = arith.andi %431, %638 : vector<8x128xi1>
      %640 = arith.mulf %595, %635 : vector<8x128xf32>
      %cst_320 = arith.constant 0.000000e+00 : f32
      %641 = vector.broadcast %cst_320 : f32 to vector<8x128xf32>
      %642 = arith.cmpf olt, %640, %641 : vector<8x128xf32>
      %cst_321 = arith.constant 0.000000e+00 : f32
      %643 = vector.broadcast %cst_321 : f32 to vector<8x128xf32>
      %644 = arith.select %642, %595, %643 : vector<8x128xi1>, vector<8x128xf32>
      %645 = arith.select %639, %630, %644 : vector<8x128xi1>, vector<8x128xf32>
      %646 = arith.select %642, %635, %630 : vector<8x128xi1>, vector<8x128xf32>
      %cst_322 = arith.constant 0.000000e+00 : f32
      %647 = vector.broadcast %cst_322 : f32 to vector<8x128xf32>
      %648 = arith.select %639, %647, %646 : vector<8x128xi1>, vector<8x128xf32>
      %cst_323 = arith.constant 0.000000e+00 : f32
      %649 = vector.broadcast %cst_323 : f32 to vector<8x128xf32>
      %650 = arith.select %639, %649, %634 : vector<8x128xi1>, vector<8x128xf32>
      %651 = math.absf %645 : vector<8x128xf32>
      %652 = arith.mulf %651, %398 : vector<8x128xf32>
      %653 = arith.mulf %650, %418 : vector<8x128xf32>
      %cst_324 = arith.constant 1.000000e+00 : f32
      %654 = vector.broadcast %cst_324 : f32 to vector<8x128xf32>
      %655 = arith.subf %654, %653 : vector<8x128xf32>
      %656 = arith.mulf %652, %655 : vector<8x128xf32>
      %657 = arith.addf %617, %656 : vector<8x128xf32>
      %658 = arith.addf %11, %451 : vector<8x128xf32>
      %659 = arith.divf %657, %366 : vector<8x128xf32>
      %cst_325 = arith.constant 1.000000e+00 : f32
      %660 = vector.broadcast %cst_325 : f32 to vector<8x128xf32>
      %661 = arith.addf %660, %659 : vector<8x128xf32>
      %662 = math.log %661 : vector<8x128xf32>
      %663 = arith.subf %662, %404 : vector<8x128xf32>
      %664 = arith.mulf %658, %663 : vector<8x128xf32>
      %665 = arith.addf %664, %662 : vector<8x128xf32>
      %666 = arith.subf %364, %665 : vector<8x128xf32>
      %667 = arith.mulf %663, %663 : vector<8x128xf32>
      %668 = arith.addf %666, %667 : vector<8x128xf32>
      %669 = arith.subf %365, %662 : vector<8x128xf32>
      %670 = arith.addf %366, %657 : vector<8x128xf32>
      %cst_326 = arith.constant 0.000000e+00 : f32
      %671 = vector.broadcast %cst_326 : f32 to vector<8x128xf32>
      %672 = arith.cmpf one, %635, %671 : vector<8x128xf32>
      %673 = arith.andi %639, %672 : vector<8x128xi1>
      %674 = arith.select %459, %488, %648 : vector<8x128xi1>, vector<8x128xf32>
      %675 = arith.select %673, %635, %674 : vector<8x128xi1>, vector<8x128xf32>
      %676 = arith.ori %673, %459 : vector<8x128xi1>
      %677 = arith.select %676, %444, %650 : vector<8x128xi1>, vector<8x128xf32>
      %c1_327 = arith.constant 1 : index
      %c3_328 = arith.constant 3 : index
      %678 = arith.index_cast %2 : i32 to index
      %c0_329 = arith.constant 0 : index
      %679 = vector.load %arg15[%c1_327, %c3_328, %678, %c0_329] : memref<3x4x64x128xf32, #tpu.memory_space<vmem>>, vector<1x1x8x128xf32>
      %680 = vector.shape_cast %679 : vector<1x1x8x128xf32> to vector<8x128xf32>
      %681 = vector.shape_cast %675 : vector<8x128xf32> to vector<1x1x8x128xf32>
      tpu.vector_store %arg15[%c1_327, %c3_328, %678, %c0_329], %681 {strides = array<i32>} : memref<3x4x64x128xf32, #tpu.memory_space<vmem>>, vector<1x1x8x128xf32>,
      %c1_330 = arith.constant 1 : index
      %c3_331 = arith.constant 3 : index
      %682 = arith.index_cast %2 : i32 to index
      %c0_332 = arith.constant 0 : index
      %683 = vector.load %arg16[%c1_330, %c3_331, %682, %c0_332] : memref<3x4x64x128xf32, #tpu.memory_space<vmem>>, vector<1x1x8x128xf32>
      %684 = vector.shape_cast %683 : vector<1x1x8x128xf32> to vector<8x128xf32>
      %685 = vector.shape_cast %677 : vector<8x128xf32> to vector<1x1x8x128xf32>
      tpu.vector_store %arg16[%c1_330, %c3_331, %682, %c0_332], %685 {strides = array<i32>} : memref<3x4x64x128xf32, #tpu.memory_space<vmem>>, vector<1x1x8x128xf32>,
      %686 = arith.addf %626, %675 : vector<8x128xf32>
      %687 = math.absf %686 : vector<8x128xf32>
      %cst_333 = arith.constant 1.000000e+00 : f32
      %688 = vector.broadcast %cst_333 : f32 to vector<8x128xf32>
      %689 = arith.mulf %687, %688 : vector<8x128xf32>
      %690 = arith.mulf %689, %398 : vector<8x128xf32>
      %691 = arith.subf %690, %478 : vector<8x128xf32>
      %692 = arith.addf %388, %691 : vector<8x128xf32>
      %c2_334 = arith.constant 2 : index
      %693 = arith.index_cast %2 : i32 to index
      %c0_335 = arith.constant 0 : index
      %694 = vector.load %arg1[%c2_334, %693, %c0_335] : memref<3x64x128xf32, #tpu.memory_space<vmem>>, vector<1x8x128xf32>
      %695 = vector.shape_cast %694 : vector<1x8x128xf32> to vector<8x128xf32>
      %c2_336 = arith.constant 2 : index
      %696 = arith.index_cast %2 : i32 to index
      %c0_337 = arith.constant 0 : index
      %697 = vector.load %arg2[%c2_336, %696, %c0_337] : memref<3x64x128xf32, #tpu.memory_space<vmem>>, vector<1x8x128xf32>
      %698 = vector.shape_cast %697 : vector<1x8x128xf32> to vector<8x128xf32>
      %c2_338 = arith.constant 2 : index
      %699 = arith.index_cast %2 : i32 to index
      %c0_339 = arith.constant 0 : index
      %700 = vector.load %arg3[%c2_338, %699, %c0_339] : memref<3x64x128xf32, #tpu.memory_space<vmem>>, vector<1x8x128xf32>
      %701 = vector.shape_cast %700 : vector<1x8x128xf32> to vector<8x128xf32>
      %702 = tpu.reciprocal %701 {approx = true} : vector<8x128xf32> -> vector<8x128xf32>
      %c2_340 = arith.constant 2 : index
      %703 = arith.index_cast %2 : i32 to index
      %c0_341 = arith.constant 0 : index
      %704 = vector.load %arg9[%c2_340, %703, %c0_341] : memref<3x64x128xf32, #tpu.memory_space<vmem>>, vector<1x8x128xf32>
      %705 = vector.shape_cast %704 : vector<1x8x128xf32> to vector<8x128xf32>
      %c2_342 = arith.constant 2 : index
      %706 = arith.index_cast %2 : i32 to index
      %c0_343 = arith.constant 0 : index
      %707 = vector.load %arg11[%c2_342, %706, %c0_343] : memref<3x64x128xf32, #tpu.memory_space<vmem>>, vector<1x8x128xf32>
      %708 = vector.shape_cast %707 : vector<1x8x128xf32> to vector<8x128xf32>
      %c2_344 = arith.constant 2 : index
      %c3_345 = arith.constant 3 : index
      %709 = arith.index_cast %2 : i32 to index
      %c0_346 = arith.constant 0 : index
      %710 = vector.load %arg5[%c2_344, %c3_345, %709, %c0_346] : memref<3x4x64x128xf32, #tpu.memory_space<vmem>>, vector<1x1x8x128xf32>
      %711 = vector.shape_cast %710 : vector<1x1x8x128xf32> to vector<8x128xf32>
      %c2_347 = arith.constant 2 : index
      %c0_348 = arith.constant 0 : index
      %712 = arith.index_cast %2 : i32 to index
      %c0_349 = arith.constant 0 : index
      %713 = vector.load %arg5[%c2_347, %c0_348, %712, %c0_349] : memref<3x4x64x128xf32, #tpu.memory_space<vmem>>, vector<1x1x8x128xf32>
      %714 = vector.shape_cast %713 : vector<1x1x8x128xf32> to vector<8x128xf32>
      %cst_350 = arith.constant 0.000000e+00 : f32
      %715 = vector.broadcast %cst_350 : f32 to vector<8x128xf32>
      %716 = arith.cmpf ogt, %711, %715 : vector<8x128xf32>
      %cst_351 = arith.constant 0.000000e+00 : f32
      %717 = vector.broadcast %cst_351 : f32 to vector<8x128xf32>
      %718 = arith.cmpf olt, %711, %717 : vector<8x128xf32>
      %cst_352 = arith.constant 1.000000e+00 : f32
      %719 = vector.broadcast %cst_352 : f32 to vector<8x128xf32>
      %720 = arith.select %718, %698, %719 : vector<8x128xi1>, vector<8x128xf32>
      %721 = arith.select %716, %695, %720 : vector<8x128xi1>, vector<8x128xf32>
      %722 = tpu.reciprocal %721 {approx = true} : vector<8x128xf32> -> vector<8x128xf32>
      %723 = arith.mulf %705, %711 : vector<8x128xf32>
      %cst_353 = arith.constant 0.000000e+00 : f32
      %724 = vector.broadcast %cst_353 : f32 to vector<8x128xf32>
      %725 = arith.cmpf oeq, %714, %724 : vector<8x128xf32>
      %726 = arith.andi %9, %725 : vector<8x128xi1>
      %cst_354 = arith.constant 0.000000e+00 : f32
      %727 = vector.broadcast %cst_354 : f32 to vector<8x128xf32>
      %728 = arith.cmpf ogt, %723, %727 : vector<8x128xf32>
      %729 = arith.andi %726, %728 : vector<8x128xi1>
      %cst_355 = arith.constant 0.000000e+00 : f32
      %730 = vector.broadcast %cst_355 : f32 to vector<8x128xf32>
      %731 = arith.cmpf one, %711, %730 : vector<8x128xf32>
      %732 = arith.andi %8, %731 : vector<8x128xi1>
      %cst_356 = arith.constant 0.000000e+00 : f32
      %733 = vector.broadcast %cst_356 : f32 to vector<8x128xf32>
      %734 = arith.cmpf olt, %723, %733 : vector<8x128xf32>
      %735 = arith.ori %732, %734 : vector<8x128xi1>
      %cst_357 = arith.constant 0.000000e+00 : f32
      %736 = vector.broadcast %cst_357 : f32 to vector<8x128xf32>
      %737 = arith.cmpf oeq, %711, %736 : vector<8x128xf32>
      %738 = arith.andi %9, %737 : vector<8x128xi1>
      %cst_358 = arith.constant 0.000000e+00 : f32
      %739 = vector.broadcast %cst_358 : f32 to vector<8x128xf32>
      %740 = arith.cmpf one, %705, %739 : vector<8x128xf32>
      %741 = arith.andi %738, %740 : vector<8x128xi1>
      %cst_359 = arith.constant 0.000000e+00 : f32
      %742 = vector.broadcast %cst_359 : f32 to vector<8x128xf32>
      %743 = arith.cmpf ogt, %705, %742 : vector<8x128xf32>
      %cst_360 = arith.constant 0.000000e+00 : f32
      %744 = vector.broadcast %cst_360 : f32 to vector<8x128xf32>
      %745 = arith.cmpf olt, %705, %744 : vector<8x128xf32>
      %cst_361 = arith.constant 0.000000e+00 : f32
      %746 = vector.broadcast %cst_361 : f32 to vector<8x128xf32>
      %747 = arith.select %745, %695, %746 : vector<8x128xi1>, vector<8x128xf32>
      %748 = arith.select %743, %698, %747 : vector<8x128xi1>, vector<8x128xf32>
      %749 = arith.andi %735, %9 : vector<8x128xi1>
      %c2_362 = arith.constant 2 : index
      %750 = arith.index_cast %2 : i32 to index
      %c0_363 = arith.constant 0 : index
      %751 = vector.load %arg10[%c2_362, %750, %c0_363] : memref<3x64x128xf32, #tpu.memory_space<vmem>>, vector<1x8x128xf32>
      %752 = vector.shape_cast %751 : vector<1x8x128xf32> to vector<8x128xf32>
      %cst_364 = arith.constant 0.000000e+00 : f32
      %753 = vector.broadcast %cst_364 : f32 to vector<8x128xf32>
      %754 = arith.select %749, %752, %753 : vector<8x128xi1>, vector<8x128xf32>
      %755 = arith.addf %451, %754 : vector<8x128xf32>
      %756 = arith.subf %670, %692 : vector<8x128xf32>
      %cst_365 = arith.constant 0.000000e+00 : f32
      %757 = vector.broadcast %cst_365 : f32 to vector<8x128xf32>
      %758 = arith.cmpf ole, %756, %757 : vector<8x128xf32>
      %cst_366 = arith.constant 0.000000e+00 : f32
      %759 = vector.broadcast %cst_366 : f32 to vector<8x128xf32>
      %760 = arith.select %758, %759, %756 : vector<8x128xi1>, vector<8x128xf32>
      %cst_367 = arith.constant dense<true> : vector<8x128xi1>
      %761 = arith.xori %758, %cst_367 : vector<8x128xi1>
      %762 = arith.andi %729, %761 : vector<8x128xi1>
      %763 = arith.andi %741, %761 : vector<8x128xi1>
      %c2_368 = arith.constant 2 : index
      %c0_369 = arith.constant 0 : index
      %764 = arith.index_cast %2 : i32 to index
      %c0_370 = arith.constant 0 : index
      %765 = vector.load %arg5[%c2_368, %c0_369, %764, %c0_370] : memref<3x4x64x128xf32, #tpu.memory_space<vmem>>, vector<1x1x8x128xf32>
      %766 = vector.shape_cast %765 : vector<1x1x8x128xf32> to vector<8x128xf32>
      %c2_371 = arith.constant 2 : index
      %c1_372 = arith.constant 1 : index
      %767 = arith.index_cast %2 : i32 to index
      %c0_373 = arith.constant 0 : index
      %768 = vector.load %arg5[%c2_371, %c1_372, %767, %c0_373] : memref<3x4x64x128xf32, #tpu.memory_space<vmem>>, vector<1x1x8x128xf32>
      %769 = vector.shape_cast %768 : vector<1x1x8x128xf32> to vector<8x128xf32>
      %770 = arith.addf %766, %769 : vector<8x128xf32>
      %c2_374 = arith.constant 2 : index
      %c2_375 = arith.constant 2 : index
      %771 = arith.index_cast %2 : i32 to index
      %c0_376 = arith.constant 0 : index
      %772 = vector.load %arg5[%c2_374, %c2_375, %771, %c0_376] : memref<3x4x64x128xf32, #tpu.memory_space<vmem>>, vector<1x1x8x128xf32>
      %773 = vector.shape_cast %772 : vector<1x1x8x128xf32> to vector<8x128xf32>
      %774 = arith.addf %770, %773 : vector<8x128xf32>
      %c2_377 = arith.constant 2 : index
      %c3_378 = arith.constant 3 : index
      %775 = arith.index_cast %2 : i32 to index
      %c0_379 = arith.constant 0 : index
      %776 = vector.load %arg5[%c2_377, %c3_378, %775, %c0_379] : memref<3x4x64x128xf32, #tpu.memory_space<vmem>>, vector<1x1x8x128xf32>
      %777 = vector.shape_cast %776 : vector<1x1x8x128xf32> to vector<8x128xf32>
      %778 = arith.addf %774, %777 : vector<8x128xf32>
      %779 = math.absf %778 : vector<8x128xf32>
      %cst_380 = arith.constant 1.000000e+00 : f32
      %780 = vector.broadcast %cst_380 : f32 to vector<8x128xf32>
      %781 = arith.mulf %779, %780 : vector<8x128xf32>
      %782 = arith.mulf %781, %702 : vector<8x128xf32>
      %cst_381 = arith.constant 0.000000e+00 : f32
      %783 = vector.broadcast %cst_381 : f32 to vector<8x128xf32>
      %784 = arith.select %735, %782, %783 : vector<8x128xi1>, vector<8x128xf32>
      %785 = arith.addf %760, %784 : vector<8x128xf32>
      %786 = arith.mulf %705, %785 : vector<8x128xf32>
      %cst_382 = arith.constant 1.000000e+00 : f32
      %787 = vector.broadcast %cst_382 : f32 to vector<8x128xf32>
      %788 = arith.mulf %786, %787 : vector<8x128xf32>
      %789 = arith.mulf %788, %701 : vector<8x128xf32>
      %cst_383 = arith.constant 0.000000e+00 : f32
      %790 = vector.broadcast %cst_383 : f32 to vector<8x128xf32>
      %791 = arith.subf %790, %778 : vector<8x128xf32>
      %792 = arith.select %8, %791, %789 : vector<8x128xi1>, vector<8x128xf32>
      %c2_384 = arith.constant 2 : index
      %c1_385 = arith.constant 1 : index
      %793 = arith.index_cast %2 : i32 to index
      %c0_386 = arith.constant 0 : index
      %794 = vector.load %arg5[%c2_384, %c1_385, %793, %c0_386] : memref<3x4x64x128xf32, #tpu.memory_space<vmem>>, vector<1x1x8x128xf32>
      %795 = vector.shape_cast %794 : vector<1x1x8x128xf32> to vector<8x128xf32>
      %c2_387 = arith.constant 2 : index
      %c1_388 = arith.constant 1 : index
      %796 = arith.index_cast %2 : i32 to index
      %c0_389 = arith.constant 0 : index
      %797 = vector.load %arg6[%c2_387, %c1_388, %796, %c0_389] : memref<3x4x64x128xf32, #tpu.memory_space<vmem>>, vector<1x1x8x128xf32>
      %798 = vector.shape_cast %797 : vector<1x1x8x128xf32> to vector<8x128xf32>
      %c2_390 = arith.constant 2 : index
      %c0_391 = arith.constant 0 : index
      %799 = arith.index_cast %2 : i32 to index
      %c0_392 = arith.constant 0 : index
      %800 = vector.load %arg5[%c2_390, %c0_391, %799, %c0_392] : memref<3x4x64x128xf32, #tpu.memory_space<vmem>>, vector<1x1x8x128xf32>
      %801 = vector.shape_cast %800 : vector<1x1x8x128xf32> to vector<8x128xf32>
      %802 = arith.select %762, %795, %801 : vector<8x128xi1>, vector<8x128xf32>
      %c2_393 = arith.constant 2 : index
      %c0_394 = arith.constant 0 : index
      %803 = arith.index_cast %2 : i32 to index
      %c0_395 = arith.constant 0 : index
      %804 = vector.load %arg6[%c2_393, %c0_394, %803, %c0_395] : memref<3x4x64x128xf32, #tpu.memory_space<vmem>>, vector<1x1x8x128xf32>
      %805 = vector.shape_cast %804 : vector<1x1x8x128xf32> to vector<8x128xf32>
      %806 = arith.select %762, %798, %805 : vector<8x128xi1>, vector<8x128xf32>
      %807 = arith.addf %792, %802 : vector<8x128xf32>
      %808 = arith.mulf %807, %792 : vector<8x128xf32>
      %cst_396 = arith.constant 0.000000e+00 : f32
      %809 = vector.broadcast %cst_396 : f32 to vector<8x128xf32>
      %810 = arith.cmpf oge, %808, %809 : vector<8x128xf32>
      %811 = arith.andi %735, %810 : vector<8x128xi1>
      %812 = arith.mulf %792, %807 : vector<8x128xf32>
      %cst_397 = arith.constant 0.000000e+00 : f32
      %813 = vector.broadcast %cst_397 : f32 to vector<8x128xf32>
      %814 = arith.cmpf olt, %812, %813 : vector<8x128xf32>
      %cst_398 = arith.constant 0.000000e+00 : f32
      %815 = vector.broadcast %cst_398 : f32 to vector<8x128xf32>
      %816 = arith.select %814, %792, %815 : vector<8x128xi1>, vector<8x128xf32>
      %817 = arith.select %811, %802, %816 : vector<8x128xi1>, vector<8x128xf32>
      %818 = arith.select %814, %807, %802 : vector<8x128xi1>, vector<8x128xf32>
      %cst_399 = arith.constant 0.000000e+00 : f32
      %819 = vector.broadcast %cst_399 : f32 to vector<8x128xf32>
      %820 = arith.select %811, %819, %818 : vector<8x128xi1>, vector<8x128xf32>
      %cst_400 = arith.constant 0.000000e+00 : f32
      %821 = vector.broadcast %cst_400 : f32 to vector<8x128xf32>
      %822 = arith.select %811, %821, %806 : vector<8x128xi1>, vector<8x128xf32>
      %823 = math.absf %817 : vector<8x128xf32>
      %824 = arith.mulf %823, %702 : vector<8x128xf32>
      %825 = arith.mulf %822, %722 : vector<8x128xf32>
      %cst_401 = arith.constant 1.000000e+00 : f32
      %826 = vector.broadcast %cst_401 : f32 to vector<8x128xf32>
      %827 = arith.subf %826, %825 : vector<8x128xf32>
      %828 = arith.mulf %824, %827 : vector<8x128xf32>
      %829 = arith.addf %12, %828 : vector<8x128xf32>
      %c2_402 = arith.constant 2 : index
      %c0_403 = arith.constant 0 : index
      %830 = arith.index_cast %2 : i32 to index
      %c0_404 = arith.constant 0 : index
      %831 = vector.load %arg15[%c2_402, %c0_403, %830, %c0_404] : memref<3x4x64x128xf32, #tpu.memory_space<vmem>>, vector<1x1x8x128xf32>
      %832 = vector.shape_cast %831 : vector<1x1x8x128xf32> to vector<8x128xf32>
      %833 = vector.shape_cast %820 : vector<8x128xf32> to vector<1x1x8x128xf32>
      tpu.vector_store %arg15[%c2_402, %c0_403, %830, %c0_404], %833 {strides = array<i32>} : memref<3x4x64x128xf32, #tpu.memory_space<vmem>>, vector<1x1x8x128xf32>,
      %c2_405 = arith.constant 2 : index
      %c0_406 = arith.constant 0 : index
      %834 = arith.index_cast %2 : i32 to index
      %c0_407 = arith.constant 0 : index
      %835 = vector.load %arg16[%c2_405, %c0_406, %834, %c0_407] : memref<3x4x64x128xf32, #tpu.memory_space<vmem>>, vector<1x1x8x128xf32>
      %836 = vector.shape_cast %835 : vector<1x1x8x128xf32> to vector<8x128xf32>
      %837 = vector.shape_cast %822 : vector<8x128xf32> to vector<1x1x8x128xf32>
      tpu.vector_store %arg16[%c2_405, %c0_406, %834, %c0_407], %837 {strides = array<i32>} : memref<3x4x64x128xf32, #tpu.memory_space<vmem>>, vector<1x1x8x128xf32>,
      %c2_408 = arith.constant 2 : index
      %c2_409 = arith.constant 2 : index
      %838 = arith.index_cast %2 : i32 to index
      %c0_410 = arith.constant 0 : index
      %839 = vector.load %arg5[%c2_408, %c2_409, %838, %c0_410] : memref<3x4x64x128xf32, #tpu.memory_space<vmem>>, vector<1x1x8x128xf32>
      %840 = vector.shape_cast %839 : vector<1x1x8x128xf32> to vector<8x128xf32>
      %c2_411 = arith.constant 2 : index
      %c2_412 = arith.constant 2 : index
      %841 = arith.index_cast %2 : i32 to index
      %c0_413 = arith.constant 0 : index
      %842 = vector.load %arg6[%c2_411, %c2_412, %841, %c0_413] : memref<3x4x64x128xf32, #tpu.memory_space<vmem>>, vector<1x1x8x128xf32>
      %843 = vector.shape_cast %842 : vector<1x1x8x128xf32> to vector<8x128xf32>
      %c2_414 = arith.constant 2 : index
      %c1_415 = arith.constant 1 : index
      %844 = arith.index_cast %2 : i32 to index
      %c0_416 = arith.constant 0 : index
      %845 = vector.load %arg5[%c2_414, %c1_415, %844, %c0_416] : memref<3x4x64x128xf32, #tpu.memory_space<vmem>>, vector<1x1x8x128xf32>
      %846 = vector.shape_cast %845 : vector<1x1x8x128xf32> to vector<8x128xf32>
      %847 = arith.select %762, %840, %846 : vector<8x128xi1>, vector<8x128xf32>
      %c2_417 = arith.constant 2 : index
      %c1_418 = arith.constant 1 : index
      %848 = arith.index_cast %2 : i32 to index
      %c0_419 = arith.constant 0 : index
      %849 = vector.load %arg6[%c2_417, %c1_418, %848, %c0_419] : memref<3x4x64x128xf32, #tpu.memory_space<vmem>>, vector<1x1x8x128xf32>
      %850 = vector.shape_cast %849 : vector<1x1x8x128xf32> to vector<8x128xf32>
      %851 = arith.select %762, %843, %850 : vector<8x128xi1>, vector<8x128xf32>
      %852 = arith.addf %807, %847 : vector<8x128xf32>
      %853 = arith.mulf %852, %792 : vector<8x128xf32>
      %cst_420 = arith.constant 0.000000e+00 : f32
      %854 = vector.broadcast %cst_420 : f32 to vector<8x128xf32>
      %855 = arith.cmpf oge, %853, %854 : vector<8x128xf32>
      %856 = arith.andi %735, %855 : vector<8x128xi1>
      %857 = arith.mulf %807, %852 : vector<8x128xf32>
      %cst_421 = arith.constant 0.000000e+00 : f32
      %858 = vector.broadcast %cst_421 : f32 to vector<8x128xf32>
      %859 = arith.cmpf olt, %857, %858 : vector<8x128xf32>
      %cst_422 = arith.constant 0.000000e+00 : f32
      %860 = vector.broadcast %cst_422 : f32 to vector<8x128xf32>
      %861 = arith.select %859, %807, %860 : vector<8x128xi1>, vector<8x128xf32>
      %862 = arith.select %856, %847, %861 : vector<8x128xi1>, vector<8x128xf32>
      %863 = arith.select %859, %852, %847 : vector<8x128xi1>, vector<8x128xf32>
      %cst_423 = arith.constant 0.000000e+00 : f32
      %864 = vector.broadcast %cst_423 : f32 to vector<8x128xf32>
      %865 = arith.select %856, %864, %863 : vector<8x128xi1>, vector<8x128xf32>
      %cst_424 = arith.constant 0.000000e+00 : f32
      %866 = vector.broadcast %cst_424 : f32 to vector<8x128xf32>
      %867 = arith.select %856, %866, %851 : vector<8x128xi1>, vector<8x128xf32>
      %868 = math.absf %862 : vector<8x128xf32>
      %869 = arith.mulf %868, %702 : vector<8x128xf32>
      %870 = arith.mulf %867, %722 : vector<8x128xf32>
      %cst_425 = arith.constant 1.000000e+00 : f32
      %871 = vector.broadcast %cst_425 : f32 to vector<8x128xf32>
      %872 = arith.subf %871, %870 : vector<8x128xf32>
      %873 = arith.mulf %869, %872 : vector<8x128xf32>
      %874 = arith.addf %829, %873 : vector<8x128xf32>
      %c2_426 = arith.constant 2 : index
      %c1_427 = arith.constant 1 : index
      %875 = arith.index_cast %2 : i32 to index
      %c0_428 = arith.constant 0 : index
      %876 = vector.load %arg15[%c2_426, %c1_427, %875, %c0_428] : memref<3x4x64x128xf32, #tpu.memory_space<vmem>>, vector<1x1x8x128xf32>
      %877 = vector.shape_cast %876 : vector<1x1x8x128xf32> to vector<8x128xf32>
      %878 = vector.shape_cast %865 : vector<8x128xf32> to vector<1x1x8x128xf32>
      tpu.vector_store %arg15[%c2_426, %c1_427, %875, %c0_428], %878 {strides = array<i32>} : memref<3x4x64x128xf32, #tpu.memory_space<vmem>>, vector<1x1x8x128xf32>,
      %c2_429 = arith.constant 2 : index
      %c1_430 = arith.constant 1 : index
      %879 = arith.index_cast %2 : i32 to index
      %c0_431 = arith.constant 0 : index
      %880 = vector.load %arg16[%c2_429, %c1_430, %879, %c0_431] : memref<3x4x64x128xf32, #tpu.memory_space<vmem>>, vector<1x1x8x128xf32>
      %881 = vector.shape_cast %880 : vector<1x1x8x128xf32> to vector<8x128xf32>
      %882 = vector.shape_cast %867 : vector<8x128xf32> to vector<1x1x8x128xf32>
      tpu.vector_store %arg16[%c2_429, %c1_430, %879, %c0_431], %882 {strides = array<i32>} : memref<3x4x64x128xf32, #tpu.memory_space<vmem>>, vector<1x1x8x128xf32>,
      %c2_432 = arith.constant 2 : index
      %c3_433 = arith.constant 3 : index
      %883 = arith.index_cast %2 : i32 to index
      %c0_434 = arith.constant 0 : index
      %884 = vector.load %arg5[%c2_432, %c3_433, %883, %c0_434] : memref<3x4x64x128xf32, #tpu.memory_space<vmem>>, vector<1x1x8x128xf32>
      %885 = vector.shape_cast %884 : vector<1x1x8x128xf32> to vector<8x128xf32>
      %c2_435 = arith.constant 2 : index
      %c3_436 = arith.constant 3 : index
      %886 = arith.index_cast %2 : i32 to index
      %c0_437 = arith.constant 0 : index
      %887 = vector.load %arg6[%c2_435, %c3_436, %886, %c0_437] : memref<3x4x64x128xf32, #tpu.memory_space<vmem>>, vector<1x1x8x128xf32>
      %888 = vector.shape_cast %887 : vector<1x1x8x128xf32> to vector<8x128xf32>
      %c2_438 = arith.constant 2 : index
      %c2_439 = arith.constant 2 : index
      %889 = arith.index_cast %2 : i32 to index
      %c0_440 = arith.constant 0 : index
      %890 = vector.load %arg5[%c2_438, %c2_439, %889, %c0_440] : memref<3x4x64x128xf32, #tpu.memory_space<vmem>>, vector<1x1x8x128xf32>
      %891 = vector.shape_cast %890 : vector<1x1x8x128xf32> to vector<8x128xf32>
      %892 = arith.select %762, %885, %891 : vector<8x128xi1>, vector<8x128xf32>
      %c2_441 = arith.constant 2 : index
      %c2_442 = arith.constant 2 : index
      %893 = arith.index_cast %2 : i32 to index
      %c0_443 = arith.constant 0 : index
      %894 = vector.load %arg6[%c2_441, %c2_442, %893, %c0_443] : memref<3x4x64x128xf32, #tpu.memory_space<vmem>>, vector<1x1x8x128xf32>
      %895 = vector.shape_cast %894 : vector<1x1x8x128xf32> to vector<8x128xf32>
      %896 = arith.select %762, %888, %895 : vector<8x128xi1>, vector<8x128xf32>
      %897 = arith.addf %852, %892 : vector<8x128xf32>
      %898 = arith.mulf %897, %792 : vector<8x128xf32>
      %cst_444 = arith.constant 0.000000e+00 : f32
      %899 = vector.broadcast %cst_444 : f32 to vector<8x128xf32>
      %900 = arith.cmpf oge, %898, %899 : vector<8x128xf32>
      %901 = arith.andi %735, %900 : vector<8x128xi1>
      %902 = arith.mulf %852, %897 : vector<8x128xf32>
      %cst_445 = arith.constant 0.000000e+00 : f32
      %903 = vector.broadcast %cst_445 : f32 to vector<8x128xf32>
      %904 = arith.cmpf olt, %902, %903 : vector<8x128xf32>
      %cst_446 = arith.constant 0.000000e+00 : f32
      %905 = vector.broadcast %cst_446 : f32 to vector<8x128xf32>
      %906 = arith.select %904, %852, %905 : vector<8x128xi1>, vector<8x128xf32>
      %907 = arith.select %901, %892, %906 : vector<8x128xi1>, vector<8x128xf32>
      %908 = arith.select %904, %897, %892 : vector<8x128xi1>, vector<8x128xf32>
      %cst_447 = arith.constant 0.000000e+00 : f32
      %909 = vector.broadcast %cst_447 : f32 to vector<8x128xf32>
      %910 = arith.select %901, %909, %908 : vector<8x128xi1>, vector<8x128xf32>
      %cst_448 = arith.constant 0.000000e+00 : f32
      %911 = vector.broadcast %cst_448 : f32 to vector<8x128xf32>
      %912 = arith.select %901, %911, %896 : vector<8x128xi1>, vector<8x128xf32>
      %913 = math.absf %907 : vector<8x128xf32>
      %914 = arith.mulf %913, %702 : vector<8x128xf32>
      %915 = arith.mulf %912, %722 : vector<8x128xf32>
      %cst_449 = arith.constant 1.000000e+00 : f32
      %916 = vector.broadcast %cst_449 : f32 to vector<8x128xf32>
      %917 = arith.subf %916, %915 : vector<8x128xf32>
      %918 = arith.mulf %914, %917 : vector<8x128xf32>
      %919 = arith.addf %874, %918 : vector<8x128xf32>
      %c2_450 = arith.constant 2 : index
      %c2_451 = arith.constant 2 : index
      %920 = arith.index_cast %2 : i32 to index
      %c0_452 = arith.constant 0 : index
      %921 = vector.load %arg15[%c2_450, %c2_451, %920, %c0_452] : memref<3x4x64x128xf32, #tpu.memory_space<vmem>>, vector<1x1x8x128xf32>
      %922 = vector.shape_cast %921 : vector<1x1x8x128xf32> to vector<8x128xf32>
      %923 = vector.shape_cast %910 : vector<8x128xf32> to vector<1x1x8x128xf32>
      tpu.vector_store %arg15[%c2_450, %c2_451, %920, %c0_452], %923 {strides = array<i32>} : memref<3x4x64x128xf32, #tpu.memory_space<vmem>>, vector<1x1x8x128xf32>,
      %c2_453 = arith.constant 2 : index
      %c2_454 = arith.constant 2 : index
      %924 = arith.index_cast %2 : i32 to index
      %c0_455 = arith.constant 0 : index
      %925 = vector.load %arg16[%c2_453, %c2_454, %924, %c0_455] : memref<3x4x64x128xf32, #tpu.memory_space<vmem>>, vector<1x1x8x128xf32>
      %926 = vector.shape_cast %925 : vector<1x1x8x128xf32> to vector<8x128xf32>
      %927 = vector.shape_cast %912 : vector<8x128xf32> to vector<1x1x8x128xf32>
      tpu.vector_store %arg16[%c2_453, %c2_454, %924, %c0_455], %927 {strides = array<i32>} : memref<3x4x64x128xf32, #tpu.memory_space<vmem>>, vector<1x1x8x128xf32>,
      %c2_456 = arith.constant 2 : index
      %c3_457 = arith.constant 3 : index
      %928 = arith.index_cast %2 : i32 to index
      %c0_458 = arith.constant 0 : index
      %929 = vector.load %arg5[%c2_456, %c3_457, %928, %c0_458] : memref<3x4x64x128xf32, #tpu.memory_space<vmem>>, vector<1x1x8x128xf32>
      %930 = vector.shape_cast %929 : vector<1x1x8x128xf32> to vector<8x128xf32>
      %931 = arith.select %762, %792, %930 : vector<8x128xi1>, vector<8x128xf32>
      %c2_459 = arith.constant 2 : index
      %c3_460 = arith.constant 3 : index
      %932 = arith.index_cast %2 : i32 to index
      %c0_461 = arith.constant 0 : index
      %933 = vector.load %arg6[%c2_459, %c3_460, %932, %c0_461] : memref<3x4x64x128xf32, #tpu.memory_space<vmem>>, vector<1x1x8x128xf32>
      %934 = vector.shape_cast %933 : vector<1x1x8x128xf32> to vector<8x128xf32>
      %935 = arith.select %762, %748, %934 : vector<8x128xi1>, vector<8x128xf32>
      %936 = arith.addf %897, %931 : vector<8x128xf32>
      %937 = arith.mulf %936, %792 : vector<8x128xf32>
      %cst_462 = arith.constant 0.000000e+00 : f32
      %938 = vector.broadcast %cst_462 : f32 to vector<8x128xf32>
      %939 = arith.cmpf oge, %937, %938 : vector<8x128xf32>
      %940 = arith.andi %735, %939 : vector<8x128xi1>
      %941 = arith.mulf %897, %936 : vector<8x128xf32>
      %cst_463 = arith.constant 0.000000e+00 : f32
      %942 = vector.broadcast %cst_463 : f32 to vector<8x128xf32>
      %943 = arith.cmpf olt, %941, %942 : vector<8x128xf32>
      %cst_464 = arith.constant 0.000000e+00 : f32
      %944 = vector.broadcast %cst_464 : f32 to vector<8x128xf32>
      %945 = arith.select %943, %897, %944 : vector<8x128xi1>, vector<8x128xf32>
      %946 = arith.select %940, %931, %945 : vector<8x128xi1>, vector<8x128xf32>
      %947 = arith.select %943, %936, %931 : vector<8x128xi1>, vector<8x128xf32>
      %cst_465 = arith.constant 0.000000e+00 : f32
      %948 = vector.broadcast %cst_465 : f32 to vector<8x128xf32>
      %949 = arith.select %940, %948, %947 : vector<8x128xi1>, vector<8x128xf32>
      %cst_466 = arith.constant 0.000000e+00 : f32
      %950 = vector.broadcast %cst_466 : f32 to vector<8x128xf32>
      %951 = arith.select %940, %950, %935 : vector<8x128xi1>, vector<8x128xf32>
      %952 = math.absf %946 : vector<8x128xf32>
      %953 = arith.mulf %952, %702 : vector<8x128xf32>
      %954 = arith.mulf %951, %722 : vector<8x128xf32>
      %cst_467 = arith.constant 1.000000e+00 : f32
      %955 = vector.broadcast %cst_467 : f32 to vector<8x128xf32>
      %956 = arith.subf %955, %954 : vector<8x128xf32>
      %957 = arith.mulf %953, %956 : vector<8x128xf32>
      %958 = arith.addf %919, %957 : vector<8x128xf32>
      %959 = arith.addf %11, %755 : vector<8x128xf32>
      %960 = arith.divf %958, %670 : vector<8x128xf32>
      %cst_468 = arith.constant 1.000000e+00 : f32
      %961 = vector.broadcast %cst_468 : f32 to vector<8x128xf32>
      %962 = arith.addf %961, %960 : vector<8x128xf32>
      %963 = math.log %962 : vector<8x128xf32>
      %964 = arith.subf %963, %708 : vector<8x128xf32>
      %965 = arith.mulf %959, %964 : vector<8x128xf32>
      %966 = arith.addf %965, %963 : vector<8x128xf32>
      %967 = arith.subf %668, %966 : vector<8x128xf32>
      %968 = arith.mulf %964, %964 : vector<8x128xf32>
      %969 = arith.addf %967, %968 : vector<8x128xf32>
      %970 = arith.subf %669, %963 : vector<8x128xf32>
      %971 = arith.addf %670, %958 : vector<8x128xf32>
      %cst_469 = arith.constant 0.000000e+00 : f32
      %972 = vector.broadcast %cst_469 : f32 to vector<8x128xf32>
      %973 = arith.cmpf one, %936, %972 : vector<8x128xf32>
      %974 = arith.andi %940, %973 : vector<8x128xi1>
      %975 = arith.select %763, %792, %949 : vector<8x128xi1>, vector<8x128xf32>
      %976 = arith.select %974, %936, %975 : vector<8x128xi1>, vector<8x128xf32>
      %977 = arith.ori %974, %763 : vector<8x128xi1>
      %978 = arith.select %977, %748, %951 : vector<8x128xi1>, vector<8x128xf32>
      %c2_470 = arith.constant 2 : index
      %c3_471 = arith.constant 3 : index
      %979 = arith.index_cast %2 : i32 to index
      %c0_472 = arith.constant 0 : index
      %980 = vector.load %arg15[%c2_470, %c3_471, %979, %c0_472] : memref<3x4x64x128xf32, #tpu.memory_space<vmem>>, vector<1x1x8x128xf32>
      %981 = vector.shape_cast %980 : vector<1x1x8x128xf32> to vector<8x128xf32>
      %982 = vector.shape_cast %976 : vector<8x128xf32> to vector<1x1x8x128xf32>
      tpu.vector_store %arg15[%c2_470, %c3_471, %979, %c0_472], %982 {strides = array<i32>} : memref<3x4x64x128xf32, #tpu.memory_space<vmem>>, vector<1x1x8x128xf32>,
      %c2_473 = arith.constant 2 : index
      %c3_474 = arith.constant 3 : index
      %983 = arith.index_cast %2 : i32 to index
      %c0_475 = arith.constant 0 : index
      %984 = vector.load %arg16[%c2_473, %c3_474, %983, %c0_475] : memref<3x4x64x128xf32, #tpu.memory_space<vmem>>, vector<1x1x8x128xf32>
      %985 = vector.shape_cast %984 : vector<1x1x8x128xf32> to vector<8x128xf32>
      %986 = vector.shape_cast %978 : vector<8x128xf32> to vector<1x1x8x128xf32>
      tpu.vector_store %arg16[%c2_473, %c3_474, %983, %c0_475], %986 {strides = array<i32>} : memref<3x4x64x128xf32, #tpu.memory_space<vmem>>, vector<1x1x8x128xf32>,
      %987 = arith.index_cast %2 : i32 to index
      %c0_476 = arith.constant 0 : index
      %988 = vector.load %arg12[%987, %c0_476] : memref<64x128xf32, #tpu.memory_space<vmem>>, vector<8x128xf32>
      tpu.vector_store %arg12[%987, %c0_476], %969 {strides = array<i32>} : memref<64x128xf32, #tpu.memory_space<vmem>>, vector<8x128xf32>,
      %989 = arith.index_cast %2 : i32 to index
      %c0_477 = arith.constant 0 : index
      %990 = vector.load %arg13[%989, %c0_477] : memref<64x128xf32, #tpu.memory_space<vmem>>, vector<8x128xf32>
      tpu.vector_store %arg13[%989, %c0_477], %970 {strides = array<i32>} : memref<64x128xf32, #tpu.memory_space<vmem>>, vector<8x128xf32>,
      %991 = arith.index_cast %2 : i32 to index
      %c0_478 = arith.constant 0 : index
      %992 = vector.load %arg14[%991, %c0_478] : memref<64x128xf32, #tpu.memory_space<vmem>>, vector<8x128xf32>
      tpu.vector_store %arg14[%991, %c0_478], %971 {strides = array<i32>} : memref<64x128xf32, #tpu.memory_space<vmem>>, vector<8x128xf32>,
    }
    %c8_i32_0 = arith.constant 8 : i32
    return
  }
  func.func @transform_0(%arg0: i32) -> (i32, i32, i32) {
    %c0_i32 = arith.constant 0 : i32
    %c0_i32_0 = arith.constant 0 : i32
    %c0_i32_1 = arith.constant 0 : i32
    return %c0_i32, %arg0, %c0_i32_0 : i32, i32, i32
  }
  func.func @transform_1(%arg0: i32) -> (i32, i32, i32) {
    %c0_i32 = arith.constant 0 : i32
    %c0_i32_0 = arith.constant 0 : i32
    %c0_i32_1 = arith.constant 0 : i32
    return %c0_i32, %arg0, %c0_i32_0 : i32, i32, i32
  }
  func.func @transform_2(%arg0: i32) -> (i32, i32, i32) {
    %c0_i32 = arith.constant 0 : i32
    %c0_i32_0 = arith.constant 0 : i32
    %c0_i32_1 = arith.constant 0 : i32
    return %c0_i32, %arg0, %c0_i32_0 : i32, i32, i32
  }
  func.func @transform_3(%arg0: i32) -> (i32, i32) {
    %c0_i32 = arith.constant 0 : i32
    %c0_i32_0 = arith.constant 0 : i32
    return %arg0, %c0_i32 : i32, i32
  }
  func.func @transform_4(%arg0: i32) -> (i32, i32, i32, i32) {
    %c0_i32 = arith.constant 0 : i32
    %c0_i32_0 = arith.constant 0 : i32
    %c0_i32_1 = arith.constant 0 : i32
    %c0_i32_2 = arith.constant 0 : i32
    return %c0_i32, %c0_i32_0, %arg0, %c0_i32_1 : i32, i32, i32, i32
  }
  func.func @transform_5(%arg0: i32) -> (i32, i32, i32, i32) {
    %c0_i32 = arith.constant 0 : i32
    %c0_i32_0 = arith.constant 0 : i32
    %c0_i32_1 = arith.constant 0 : i32
    %c0_i32_2 = arith.constant 0 : i32
    return %c0_i32, %c0_i32_0, %arg0, %c0_i32_1 : i32, i32, i32, i32
  }
  func.func @transform_6(%arg0: i32) -> (i32, i32) {
    %c0_i32 = arith.constant 0 : i32
    %c0_i32_0 = arith.constant 0 : i32
    return %arg0, %c0_i32 : i32, i32
  }
  func.func @transform_7(%arg0: i32) -> (i32, i32) {
    %c0_i32 = arith.constant 0 : i32
    %c0_i32_0 = arith.constant 0 : i32
    return %arg0, %c0_i32 : i32, i32
  }
  func.func @transform_8(%arg0: i32) -> (i32, i32, i32) {
    %c0_i32 = arith.constant 0 : i32
    %c0_i32_0 = arith.constant 0 : i32
    %c0_i32_1 = arith.constant 0 : i32
    return %c0_i32, %arg0, %c0_i32_0 : i32, i32, i32
  }
  func.func @transform_9(%arg0: i32) -> (i32, i32, i32) {
    %c0_i32 = arith.constant 0 : i32
    %c0_i32_0 = arith.constant 0 : i32
    %c0_i32_1 = arith.constant 0 : i32
    return %c0_i32, %arg0, %c0_i32_0 : i32, i32, i32
  }
  func.func @transform_10(%arg0: i32) -> (i32, i32, i32) {
    %c0_i32 = arith.constant 0 : i32
    %c0_i32_0 = arith.constant 0 : i32
    %c0_i32_1 = arith.constant 0 : i32
    return %c0_i32, %arg0, %c0_i32_0 : i32, i32, i32
  }
  func.func @transform_11(%arg0: i32) -> (i32, i32) {
    %c0_i32 = arith.constant 0 : i32
    %c0_i32_0 = arith.constant 0 : i32
    return %arg0, %c0_i32 : i32, i32
  }
  func.func @transform_12(%arg0: i32) -> (i32, i32) {
    %c0_i32 = arith.constant 0 : i32
    %c0_i32_0 = arith.constant 0 : i32
    return %arg0, %c0_i32 : i32, i32
  }
  func.func @transform_13(%arg0: i32) -> (i32, i32) {
    %c0_i32 = arith.constant 0 : i32
    %c0_i32_0 = arith.constant 0 : i32
    return %arg0, %c0_i32 : i32, i32
  }
  func.func @transform_14(%arg0: i32) -> (i32, i32, i32, i32) {
    %c0_i32 = arith.constant 0 : i32
    %c0_i32_0 = arith.constant 0 : i32
    %c0_i32_1 = arith.constant 0 : i32
    %c0_i32_2 = arith.constant 0 : i32
    return %c0_i32, %c0_i32_0, %arg0, %c0_i32_1 : i32, i32, i32, i32
  }
  func.func @transform_15(%arg0: i32) -> (i32, i32, i32, i32) {
    %c0_i32 = arith.constant 0 : i32
    %c0_i32_0 = arith.constant 0 : i32
    %c0_i32_1 = arith.constant 0 : i32
    %c0_i32_2 = arith.constant 0 : i32
    return %c0_i32, %c0_i32_0, %arg0, %c0_i32_1 : i32, i32, i32, i32
  }
}

</mosaic_0001>

<bundles_post_ra>
// kernel: loss_evaluator_forward.4
= control target key start
LH: loop header
LB: loop body
LE: loop exit
PB: predicated region body
PF: predicated region fallthrough
CT: control target
= control target key end

     0   :  { %s699_s24 = smov 0   ;;  %s851_s0 = inlined_call_operand.vmem [shape: f32[3,64,128], index: 0, kind: input, shape index: {}]   ;;  %s852_s1 = inlined_call_operand.vmem [shape: f32[3,64,128], index: 1, kind: input, shape index: {}]   ;;  %s853_s2 = inlined_call_operand.vmem [shape: f32[3,64,128], index: 2, kind: input, shape index: {}]   ;;  %s854_s3 = inlined_call_operand.vmem [shape: f32[64,128], index: 3, kind: input, shape index: {}]   ;;  %s855_s4 = inlined_call_operand.vmem [shape: f32[3,4,64,128], index: 4, kind: input, shape index: {}]   ;;  %s856_s5 = inlined_call_operand.vmem [shape: f32[3,4,64,128], index: 5, kind: input, shape index: {}]   ;;  %s857_s6 = inlined_call_operand.vmem [shape: f32[25,64,128], index: 6, kind: output, shape index: {0}]   ;;  %s858_s7 = inlined_call_operand.vmem [shape: s32[64,128], index: 7, kind: output, shape index: {1}]  }
   0x1 LB: > { %s705_s25 = sshll.u32 %s656_s24, 3  ;;  %s30_s24 = sadd.s32 1, %s656_s24   ;;  %s656_s24 = sphi %s699_s24, %s30_s24  }
   0x2   : > { %s32_s28 = scalar_lea.vmem %s854_s3, %s705_s25  ;;  %s39_s8 = scalar_lea.vmem %s853_s2, %s705_s25 }
   0x3   : > { %v715_v0 = vld [vmem:[%s32_s28] sm:$0xff]  ;;  %s721_s11 = scalar_lea.vmem %s855_s4, %s705_s25  ;;  %s35_s14 = scalar_lea.vmem %s851_s0, %s705_s25 }
   0x4   : > { %v40_v1 = vld [vmem:[%s39_s8] sm:$0xff]  ;;  %630 = vrcp.f32 %v715_v0  ;;  %s37_s17 = scalar_lea.vmem %s852_s1, %s705_s25  ;;  %s742_s20 = scalar_lea.vmem %s856_s5, %s705_s25 }
   0x5   : > { %v546_v2 = vld [vmem:[%s39_s8 + $0x40] sm:$0xff]  ;;  %632 = vrcp.f32 %v40_v1  ;;  %s761_s23 = scalar_lea.vmem %s857_s6, %s705_s25  ;;  %s326_s28 = scalar_lea.vmem %s858_s7, %s705_s25 }
   0x6   : > { %v515_v3 = vld [vmem:[%s721_s11 + $0xc0] sm:$0xff]  ;;  %634 = vrcp.f32 %v546_v2  ;;  %p27_p0 = scmp.ge.s32.totalorder %s30_s24, 8  }
   0x7   : > { %v36_v4 = vld [vmem:[%s35_s14] sm:$0xff]  ;;  %vm45_vm0 = vcmp.gt.f32.partialorder %v515_v3, 0.0  ;;  %vm46_vm1 = vcmp.lt.f32.partialorder %v515_v3, 0.0 }
   0x8   : > { %v38_v5 = vld [vmem:[%s37_s17] sm:$0xff] }
   0x9   : > { %v47_v6 = vsel %vm46_vm1, %v38_v5, 1.0  ;;  %v50_v7 = vadd.f32 %v38_v5, %v36_v4  ;;  %v542_v9 = vld [vmem:[%s35_s14 + $0x40] sm:$0xff] }
   0xa   : > { %v48_v8 = vsel %vm45_vm0, %v36_v4, %v47_v6  ;;  %v544_v10 = vld [vmem:[%s37_s17 + $0x40] sm:$0xff] }
   0xb   : > { %636 = vrcp.f32 %v48_v8  ;;  %v548_v11 = vld [vmem:[%s721_s11 + $0x1c0] sm:$0xff]  ;;  %v141_v12 = vadd.f32 %v544_v10, %v542_v9 }
   0xc   : > { %638 = vrcp.f32 %v50_v7  ;;  %vm136_vm2 = vcmp.gt.f32.partialorder %v548_v11, 0.0  ;;  %vm137_vm3 = vcmp.lt.f32.partialorder %v548_v11, 0.0  ;;  %v585_v15 = vld [vmem:[%s39_s8 + $0x80] sm:$0xff] }
   0xd   : > { %v138_v13 = vsel %vm137_vm3, %v544_v10, 1.0  ;;  %v581_v16 = vld [vmem:[%s35_s14 + $0x80] sm:$0xff]  ;;  %640 = vrcp.f32 %v141_v12 }
   0xe   : > { %v139_v14 = vsel %vm136_vm2, %v542_v9, %v138_v13  ;;  %v583_v17 = vld [vmem:[%s37_s17 + $0x80] sm:$0xff]  ;;  %v748_v23 = vpop.eup %630 }
   0xf   : > { %v735_v18 = vld [vmem:[%s721_s11 + $0x2c0] sm:$0xff]  ;;  %v236_v19 = vadd.f32 %v583_v17, %v581_v16  ;;  %642 = vrcp.f32 %v139_v14  ;;  %v633_v28 = vpop.eup %632 }
  0x10   : > { %v54_v20 = vld [vmem:[%s721_s11] sm:$0xff]  ;;  %vm231_vm4 = vcmp.gt.f32.partialorder %v735_v18, 0.0  ;;  %vm232_vm5 = vcmp.lt.f32.partialorder %v735_v18, 0.0  ;;  %644 = vrcp.f32 %v585_v15  ;;  %v635_v30 = vpop.eup %634  ;;  %v112_v36 = vmul.f32 %v633_v28, %v515_v3 }
  0x11   : > { %v519_v21 = vld [vmem:[%s721_s11 + $0x40] sm:$0xff]  ;;  %v233_v27 = vsel %vm232_vm5, %v583_v17, 1.0  ;;  %646 = vrcp.f32 %v236_v19  ;;  %v57_v31 = vmul.f32 %v633_v28, %v54_v20  ;;  %v770_v41 = vmul.f32 %v635_v30, %v548_v11 }
  0x12   : > { %v527_v22 = vld [vmem:[%s721_s11 + $0x80] sm:$0xff]  ;;  %v753_v29 = vsel %vm231_vm4, %v581_v16, %v233_v27  ;;  %v76_v33 = vmul.f32 %v633_v28, %v519_v21  ;;  %v113_v56 = vand.u32 2147483647, %v112_v36  ;;  %v119_v59 = vmul.f32 %v748_v23, %v112_v36 }
  0x13   : > { %v550_v24 = vld [vmem:[%s721_s11 + $0x100] sm:$0xff]  ;;  %v95_v35 = vmul.f32 %v633_v28, %v527_v22  ;;  %v58_v43 = vand.u32 2147483647, %v57_v31  ;;  %v64_v44 = vmul.f32 %v748_v23, %v57_v31  ;;  %648 = vrcp.f32 %v753_v29 }
  0x14   : > { %v558_v25 = vld [vmem:[%s721_s11 + $0x140] sm:$0xff]  ;;  %v764_v38 = vmul.f32 %v635_v30, %v550_v24  ;;  %v77_v45 = vand.u32 2147483647, %v76_v33  ;;  %v83_v46 = vmul.f32 %v748_v23, %v76_v33  ;;  %538 = vst [vmem:[%s761_s23 + $0xc0] sm:$0xff] %v119_v59 }
  0x15   : > { %v566_v26 = vld [vmem:[%s721_s11 + $0x180] sm:$0xff]  ;;  %v766_v39 = vmul.f32 %v635_v30, %v558_v25  ;;  %v637_v42 = vpop.eup %636  ;;  %v96_v51 = vand.u32 2147483647, %v95_v35  ;;  %v102_v52 = vmul.f32 %v748_v23, %v95_v35  ;;  %66 = vst [vmem:[%s761_s23] sm:$0xff] %v64_v44 }
  0x16   : > { %v56_v32 = vld [vmem:[%s742_s20] sm:$0xff]  ;;  %v768_v40 = vmul.f32 %v635_v30, %v566_v26  ;;  %v639_v48 = vpop.eup %638  ;;  %v78_v54 = vadd.f32 %v77_v45, %v58_v43  ;;  %523 = vst [vmem:[%s761_s23 + $0x40] sm:$0xff] %v83_v46  ;;  %v150_v13 = vand.u32 2147483647, %v764_v38  ;;  %v156_v19 = vmul.f32 %v748_v23, %v764_v38 }
  0x17   : > { %v521_v34 = vld [vmem:[%s742_s20 + $0x40] sm:$0xff]  ;;  %v60_v49 = vmul.f32 %v637_v42, %v56_v32  ;;  %v52_v53 = vmul.f32 2.0, %v639_v48  ;;  %531 = vst [vmem:[%s761_s23 + $0x80] sm:$0xff] %v102_v52  ;;  %v641_v61 = vpop.eup %640  ;;  %v169_v24 = vand.u32 2147483647, %v766_v39  ;;  %v175_v25 = vmul.f32 %v748_v23, %v766_v39 }
  0x18   : > { %v529_v37 = vld [vmem:[%s742_s20 + $0x80] sm:$0xff]  ;;  %v79_v50 = vmul.f32 %v637_v42, %v521_v34  ;;  %v97_v1 = vadd.f32 %v96_v51, %v78_v54  ;;  %v143_v20 = vmul.f32 2.0, %v641_v61  ;;  %554 = vst [vmem:[%s761_s23 + $0x100] sm:$0xff] %v156_v19  ;;  %v207_v48 = vand.u32 2147483647, %v770_v41 }
  0x19   : > { %v536_v47 = vld [vmem:[%s742_s20 + $0xc0] sm:$0xff]  ;;  %v98_v55 = vmul.f32 %v637_v42, %v529_v37  ;;  %v61_v57 = vsub.f32 1.0, %v60_v49  ;;  %v67_v62 = vmul.f32 %v56_v32, %v52_v53  ;;  %v86_v63 = vmul.f32 %v521_v34, %v52_v53  ;;  %v643_v3 = vpop.eup %642  ;;  %562 = vst [vmem:[%s761_s23 + $0x140] sm:$0xff] %v175_v25 }
  0x1a   : > { %v80_v58 = vsub.f32 1.0, %v79_v50  ;;  %v115_v60 = vmul.f32 %v637_v42, %v536_v47  ;;  %v105_v6 = vmul.f32 %v529_v37, %v52_v53  ;;  %v552_v8 = vld [vmem:[%s742_s20 + $0x100] sm:$0xff]  ;;  %v782_v9 = vpop.eup %644  ;;  %v114_v11 = vadd.f32 %v113_v56, %v97_v1 }
  0x1b   : > { %v99_v2 = vsub.f32 1.0, %v98_v55  ;;  %v62_v4 = vmul.f32 %v61_v57, %v57_v31  ;;  %517 = vst [vmem:[%s761_s23 + $0x340] sm:$0xff] %v67_v62  ;;  %525 = vst [vmem:[%s761_s23 + $0x380] sm:$0xff] %v86_v63  ;;  %v122_v12 = vmul.f32 %v536_v47, %v52_v53  ;;  %v560_v14 = vld [vmem:[%s742_s20 + $0x140] sm:$0xff]  ;;  %v647_v15 = vpop.eup %646  ;;  %v152_v22 = vmul.f32 %v643_v3, %v552_v8 }
  0x1c   : > { %v81_v5 = vmul.f32 %v80_v58, %v76_v33  ;;  %v116_v7 = vsub.f32 1.0, %v115_v60  ;;  %533 = vst [vmem:[%s761_s23 + $0x3c0] sm:$0xff] %v105_v6  ;;  %v151_v21 = vadd.f32 %v150_v13, %v114_v11  ;;  %v568_v26 = vld [vmem:[%s742_s20 + $0x180] sm:$0xff]  ;;  %v159_v28 = vmul.f32 %v552_v8, %v143_v20 }
  0x1d   : > { %v100_v10 = vmul.f32 %v99_v2, %v95_v35  ;;  %540 = vst [vmem:[%s761_s23 + $0x400] sm:$0xff] %v122_v12  ;;  %v171_v30 = vmul.f32 %v643_v3, %v560_v14  ;;  %v179_v31 = vmul.f32 %v560_v14, %v143_v20  ;;  %v153_v32 = vsub.f32 1.0, %v152_v22  ;;  %v589_v45 = vld [vmem:[%s721_s11 + $0x200] sm:$0xff]  ;;  %v649_v22 = vpop.eup %648 }
  0x1e   : > { %v82_v16 = vadd.f32 %v81_v5, %v62_v4  ;;  %v117_v17 = vmul.f32 %v116_v7, %v112_v36  ;;  %v170_v33 = vadd.f32 %v169_v24, %v151_v21  ;;  %v189_v34 = vand.u32 2147483647, %v768_v40  ;;  %v575_v36 = vld [vmem:[%s742_s20 + $0x1c0] sm:$0xff]  ;;  %556 = vst [vmem:[%s761_s23 + $0x440] sm:$0xff] %v159_v28 }
  0x1f   : > { %v195_v35 = vmul.f32 %v748_v23, %v768_v40  ;;  %v172_v42 = vsub.f32 1.0, %v171_v30  ;;  %564 = vst [vmem:[%s761_s23 + $0x480] sm:$0xff] %v179_v31  ;;  %v191_v43 = vmul.f32 %v643_v3, %v568_v26  ;;  %v199_v44 = vmul.f32 %v568_v26, %v143_v20  ;;  %v597_v50 = vld [vmem:[%s721_s11 + $0x240] sm:$0xff] }
  0x20   : > { %v101_v27 = vadd.f32 %v100_v10, %v82_v16  ;;  %v154_v46 = vmul.f32 %v153_v32, %v764_v38  ;;  %v190_v47 = vadd.f32 %v189_v34, %v170_v33  ;;  %v213_v49 = vmul.f32 %v748_v23, %v770_v41  ;;  %v605_v54 = vld [vmem:[%s721_s11 + $0x280] sm:$0xff] }
  0x21   : > { %570 = vst [vmem:[%s761_s23 + $0x180] sm:$0xff] %v195_v35  ;;  %v192_v51 = vsub.f32 1.0, %v191_v43  ;;  %572 = vst [vmem:[%s761_s23 + $0x4c0] sm:$0xff] %v199_v44  ;;  %v209_v52 = vmul.f32 %v643_v3, %v575_v36  ;;  %v217_v53 = vmul.f32 %v575_v36, %v143_v20  ;;  %v173_v56 = vmul.f32 %v172_v42, %v766_v39  ;;  %v591_v62 = vld [vmem:[%s742_s20 + $0x200] sm:$0xff] }
  0x22   : > { %v118_v37 = vadd.f32 %v117_v17, %v101_v27  ;;  %577 = vst [vmem:[%s761_s23 + $0x1c0] sm:$0xff] %v213_v49  ;;  %v244_v38 = vmul.f32 %v782_v9, %v589_v45  ;;  %v208_v57 = vadd.f32 %v207_v48, %v190_v47  ;;  %v238_v58 = vmul.f32 2.0, %v647_v15  ;;  %v599_v4 = vld [vmem:[%s742_s20 + $0x240] sm:$0xff] }
  0x23   : > { %579 = vst [vmem:[%s761_s23 + $0x500] sm:$0xff] %v217_v53  ;;  %v263_v59 = vmul.f32 %v782_v9, %v597_v50  ;;  %v193_v60 = vmul.f32 %v192_v51, %v768_v40  ;;  %v283_v63 = vmul.f32 %v782_v9, %v605_v54  ;;  %v210_v1 = vsub.f32 1.0, %v209_v52  ;;  %v607_v5 = vld [vmem:[%s742_s20 + $0x280] sm:$0xff] }
  0x24   : > { %v155_v55 = vadd.f32 %v154_v46, %v118_v37  ;;  %v245_v61 = vand.u32 2147483647, %v244_v38  ;;  %v251_v39 = vmul.f32 %v748_v23, %v244_v38  ;;  %v254_v2 = vmul.f32 %v591_v62, %v238_v58  ;;  %v614_v10 = vld [vmem:[%s742_s20 + $0x2c0] sm:$0xff] }
  0x25   : > { %v264_v29 = vand.u32 2147483647, %v263_v59  ;;  %v270_v3 = vmul.f32 %v748_v23, %v263_v59  ;;  %v274_v6 = vmul.f32 %v599_v4, %v238_v58  ;;  %v290_v7 = vmul.f32 %v748_v23, %v283_v63 }
  0x26   : > { %v174_v40 = vadd.f32 %v173_v56, %v155_v55  ;;  %593 = vst [vmem:[%s761_s23 + $0x200] sm:$0xff] %v251_v39  ;;  %v294_v8 = vmul.f32 %v607_v5, %v238_v58  ;;  %595 = vst [vmem:[%s761_s23 + $0x540] sm:$0xff] %v254_v2  ;;  %v301_v11 = vmul.f32 %v782_v9, %v735_v18  ;;  %v284_v14 = vand.u32 2147483647, %v283_v63 }
  0x27   : > { %601 = vst [vmem:[%s761_s23 + $0x240] sm:$0xff] %v270_v3  ;;  %v312_v12 = vmul.f32 %v614_v10, %v238_v58  ;;  %v246_v13 = vadd.f32 %v245_v61, %v208_v57  ;;  %603 = vst [vmem:[%s761_s23 + $0x580] sm:$0xff] %v274_v6  ;;  %v211_v20 = vmul.f32 %v210_v1, %v770_v41  ;;  %v658_v49 = vmov 0  }
  0x28   : > { %609 = vst [vmem:[%s761_s23 + $0x280] sm:$0xff] %v290_v7  ;;  %611 = vst [vmem:[%s761_s23 + $0x5c0] sm:$0xff] %v294_v8  ;;  %v308_v15 = vmul.f32 %v748_v23, %v301_v11  ;;  %v302_v17 = vand.u32 2147483647, %v301_v11  ;;  %v194_v19 = vadd.f32 %v193_v60, %v174_v40  ;;  %v247_v24 = vmul.f32 %v649_v22, %v591_v62 }
  0x29   : > { %618 = vst [vmem:[%s761_s23 + $0x600] sm:$0xff] %v312_v12  ;;  %v265_v16 = vadd.f32 %v264_v29, %v246_v13  ;;  %v266_v25 = vmul.f32 %v649_v22, %v599_v4  ;;  %v286_v18 = vmul.f32 %v649_v22, %v607_v5  ;;  %v304_v9 = vmul.f32 %v649_v22, %v614_v10 }
  0x2a   : > { %616 = vst [vmem:[%s761_s23 + $0x2c0] sm:$0xff] %v308_v15  ;;  %v212_v27 = vadd.f32 %v211_v20, %v194_v19  ;;  %v248_v28 = vsub.f32 1.0, %v247_v24 }
  0x2b   : > { %v285_v21 = vadd.f32 %v284_v14, %v265_v16  ;;  %v267_v30 = vsub.f32 1.0, %v266_v25  ;;  %v287_v31 = vsub.f32 1.0, %v286_v18  ;;  %v305_v35 = vsub.f32 1.0, %v304_v9 }
  0x2c   : > { %v249_v33 = vmul.f32 %v248_v28, %v244_v38 }
  0x2d   : > { %v303_v26 = vadd.f32 %v302_v17, %v285_v21  ;;  %v268_v34 = vmul.f32 %v267_v30, %v263_v59  ;;  %v288_v37 = vmul.f32 %v287_v31, %v283_v63  ;;  %v306_v44 = vmul.f32 %v305_v35, %v301_v11 }
  0x2e   : > { %v250_v36 = vadd.f32 %v249_v33, %v212_v27 }
  0x2f   : > { %v316_v32 = vsub.f32 %v715_v0, %v303_v26  ;;  %v323_v47 = vmul.f32 0.5, %v303_v26 }
  0x30   : > { %v269_v43 = vadd.f32 %v268_v34, %v250_v36 }
  0x31   : > { %v317_v41 = vmax.f32 %v316_v32, 0.0 }
  0x32   : > { %v289_v45 = vadd.f32 %v288_v37, %v269_v43 }
  0x33   : > { %v318_v42 = vmul.f32 %v748_v23, %v317_v41 }
  0x34   : > { %v307_v46 = vadd.f32 %v306_v44, %v289_v45  ;;  %29 = sbr.rel (!%p27_p0) target bundleno = 1 (0x1), region = 119 }
  0x35   : > { %620 = vst [vmem:[%s761_s23 + $0x300] sm:$0xff] %v318_v42 }
  0x36   : > { %v322_v48 = vadd.f32 %v307_v46, %v715_v0 }
  0x38   : > { %vm324_vm6 = vcmp.lt.f32.partialorder %v322_v48, %v323_v47 }
  0x39   : > { %v325_v50 = vsel %vm324_vm6, 1, %v658_v49 }
  0x3a   : > { %327 = vst [vmem:[%s326_s28] sm:$0xff] %v325_v50 }

// kernel: loss_evaluator_forward.5
= control target key start
LH: loop header
LB: loop body
LE: loop exit
PB: predicated region body
PF: predicated region fallthrough
CT: control target
= control target key end

     0   :  { %s1180_s18 = smov 0   ;;  %s1867_s0 = inlined_call_operand.vmem [shape: f32[3,64,128], index: 0, kind: input, shape index: {}]   ;;  %s1868_s1 = inlined_call_operand.vmem [shape: f32[3,64,128], index: 1, kind: input, shape index: {}]   ;;  %s1869_s2 = inlined_call_operand.vmem [shape: f32[3,64,128], index: 2, kind: input, shape index: {}]   ;;  %s1870_s3 = inlined_call_operand.vmem [shape: f32[64,128], index: 3, kind: input, shape index: {}, may-alias: {3,13}]   ;;  %s1871_s4 = inlined_call_operand.vmem [shape: f32[3,4,64,128], index: 4, kind: input, shape index: {}, may-alias: {4,14}]   ;;  %s1872_s5 = inlined_call_operand.vmem [shape: f32[3,4,64,128], index: 5, kind: input, shape index: {}, may-alias: {5,15}]   ;;  %s1873_s6 = inlined_call_operand.vmem [shape: s32[64,128], index: 6, kind: input, shape index: {}]   ;;  %s1874_s7 = inlined_call_operand.vmem [shape: f32[64,128], index: 7, kind: input, shape index: {}]   ;;  %s1875_s8 = inlined_call_operand.vmem [shape: f32[3,64,128], index: 8, kind: input, shape index: {}]   ;;  %s1876_s9 = inlined_call_operand.vmem [shape: f32[3,64,128], index: 9, kind: input, shape index: {}]   ;;  %s1877_s10 = inlined_call_operand.vmem [shape: f32[3,64,128], index: 10, kind: input, shape index: {}]   ;;  %s1878_s11 = inlined_call_operand.vmem [shape: f32[64,128], index: 11, kind: output, shape index: {0}]   ;;  %s1879_s12 = inlined_call_operand.vmem [shape: f32[64,128], index: 12, kind: output, shape index: {1}]   ;;  %s1880_s13 = inlined_call_operand.vmem [shape: f32[64,128], index: 13, kind: output, shape index: {2}, may-alias: {3,13}]   ;;  %s1881_s14 = inlined_call_operand.vmem [shape: f32[3,4,64,128], index: 14, kind: output, shape index: {3}, may-alias: {4,14}]   ;;  %s1882_s15 = inlined_call_operand.vmem [shape: f32[3,4,64,128], index: 15, kind: output, shape index: {4}, may-alias: {5,15}]  }
   0x1 LB: > { %s1186_s19 = sshll.u32 %s1097_s18, 3  ;;  %vm1099_vm4 = vmmov 1   ;;  %s48_s18 = sadd.s32 1, %s1097_s18   ;;  %s1097_s18 = sphi %s1180_s18, %s48_s18  }
   0x2   : > { %s1192_s22 = scalar_lea.vmem %s1871_s4, %s1186_s19  ;;  %s73_s25 = scalar_lea.vmem %s1869_s2, %s1186_s19 }
   0x3   : > { %v1199_v0 = vld [vmem:[%s1192_s22] sm:$0xff]  ;;  %s1229_s28 = scalar_lea.vmem %s1875_s8, %s1186_s19  ;;  %s52_s16 = scalar_lea.vmem %s1873_s6, %s1186_s19 }
   0x4   : > { %v1202_v1 = vld [vmem:[%s1192_s22 + $0x40] sm:$0xff]  ;;  %s50_s21 = scalar_lea.vmem %s1870_s3, %s1186_s19  ;;  %vm134_vm6 = vcmp.eq.f32.partialorder %v1199_v0, 0.0  ;;  %s1313_s29 = scalar_lea.vmem %s1867_s0, %s1186_s19 }
   0x5   : > { %v915_v2 = vld [vmem:[%s1192_s22 + $0x80] sm:$0xff]  ;;  %v63_v3 = vadd.f32 %v1202_v1, %v1199_v0  ;;  %s1326_s17 = scalar_lea.vmem %s1868_s1, %s1186_s19  ;;  %s1354_s23 = scalar_lea.vmem %s1881_s14, %s1186_s19 }
   0x6   : > { %v1208_v4 = vld [vmem:[%s1192_s22 + $0xc0] sm:$0xff]  ;;  %s1360_s27 = scalar_lea.vmem %s1882_s15, %s1186_s19  ;;  %s1653_s30 = scalar_lea.vmem %s1876_s9, %s1186_s19 }
   0x7   : > { %v74_v5 = vld [vmem:[%s73_s25] sm:$0xff]  ;;  %v67_v9 = vadd.f32 %v915_v2, %v63_v3  ;;  %vm138_vm1 = vcmp.ne.f32.partialorder %v1208_v4, 0.0  ;;  %s1674_s20 = scalar_lea.vmem %s1877_s10, %s1186_s19  ;;  %s56_s26 = scalar_lea.vmem %s1874_s7, %s1186_s19 }
   0x8   : > { %1067 = vrcp.f32 %v74_v5  ;;  %v919_v6 = vld [vmem:[%s1192_s22 + $0x100] sm:$0xff]  ;;  %p45_p0 = scmp.ge.s32.totalorder %s48_s18, 8  }
   0x9   : > { %v921_v7 = vld [vmem:[%s1192_s22 + $0x140] sm:$0xff]  ;;  %v71_v16 = vadd.f32 %v1208_v4, %v67_v9 }
   0xa   : > { %v923_v8 = vld [vmem:[%s1192_s22 + $0x180] sm:$0xff]  ;;  %v84_v10 = vadd.f32 %v921_v7, %v919_v6 }
   0xb   : > { %v1213_v11 = vld [vmem:[%s73_s25 + $0x40] sm:$0xff]  ;;  %v72_v23 = vand.u32 2147483647, %v71_v16  ;;  %v165_v48 = vsub.f32 0.0, %v71_v16 }
   0xc   : > { %v929_v12 = vld [vmem:[%s1192_s22 + $0x200] sm:$0xff]  ;;  %1069 = vrcp.f32 %v1213_v11  ;;  %v88_v17 = vadd.f32 %v923_v8, %v84_v10 }
   0xd   : > { %v925_v13 = vld [vmem:[%s1192_s22 + $0x1c0] sm:$0xff] }
   0xe   : > { %v931_v14 = vld [vmem:[%s1192_s22 + $0x240] sm:$0xff]  ;;  %v92_v21 = vadd.f32 %v925_v13, %v88_v17 }
   0xf   : > { %v933_v15 = vld [vmem:[%s1192_s22 + $0x280] sm:$0xff]  ;;  %v105_v18 = vadd.f32 %v931_v14, %v929_v12 }
  0x10   : > { %v1221_v19 = vld [vmem:[%s73_s25 + $0x80] sm:$0xff]  ;;  %v93_v27 = vand.u32 2147483647, %v92_v21  ;;  %s1307_s25 = scalar_lea.vmem %s1872_s5, %s1186_s19 }
  0x11   : > { %v935_v20 = vld [vmem:[%s1192_s22 + $0x2c0] sm:$0xff]  ;;  %1071 = vrcp.f32 %v1221_v19  ;;  %v109_v22 = vadd.f32 %v933_v15, %v105_v18 }
  0x12   : > { %v1236_v25 = vld [vmem:[%s1229_s28] sm:$0xff]  ;;  %v1240_v28 = vpop.eup %1067 }
  0x13   : > { %v113_v24 = vadd.f32 %v935_v20, %v109_v22  ;;  %v1238_v26 = vld [vmem:[%s52_s16] sm:$0xff]  ;;  %v133_v29 = vmul.f32 %v1208_v4, %v1236_v25  ;;  %v1246_v30 = vmul.f32 %v1240_v28, %v72_v23 }
  0x14   : > { %vm54_vm0 = vcmp.ne.s32.totalorder %v1238_v26, 0  ;;  %v1270_v38 = vld [vmem:[%s50_s21] sm:$0xff] }
  0x15   : > { %v114_v31 = vand.u32 2147483647, %v113_v24  ;;  %vm139_vm2 = vmand %vm54_vm0, %vm138_vm1  ;;  %vm140_vm3 = vcmp.lt.f32.partialorder %v133_v29, 0.0  ;;  %vm136_vm9 = vcmp.gt.f32.partialorder %v133_v29, 0.0  ;;  %v1316_v51 = vld [vmem:[%s1229_s28 + $0x40] sm:$0xff] }
  0x16   : > { %v1249_v32 = vpop.eup %1069  ;;  %vm1263_vm5 = vmxor %vm54_vm0, %vm1099_vm4  ;;  %v1329_v53 = vld [vmem:[%s1313_s29 + $0x40] sm:$0xff]  ;;  %vm332_vm14 = vcmp.gt.f32.partialorder %v1316_v51, 0.0  ;;  %vm333_vm15 = vcmp.lt.f32.partialorder %v1316_v51, 0.0 }
  0x17   : > { %v97_v33 = vmul.f32 %v1249_v32, %v93_v27  ;;  %vm1274_vm7 = vmor %vm139_vm2, %vm140_vm3  ;;  %v939_v55 = vld [vmem:[%s1307_s25 + $0x40] sm:$0xff]  ;;  %v334_v58 = vsel %vm333_vm15, %v1329_v53, 0.0 }
  0x18   : > { %vm135_vm8 = vmand %vm1263_vm5, %vm134_vm6  ;;  %v161_v42 = vsel %vm1274_vm7, %v1246_v30, 0.0  ;;  %v171_v56 = vld [vmem:[%s1307_s25] sm:$0xff] }
  0x19   : > { %v98_v36 = vadd.f32 %v97_v33, %v1246_v30  ;;  %vm137_vm10 = vmand %vm135_vm8, %vm136_vm9  ;;  %v1340_v57 = vld [vmem:[%s1326_s17 + $0x40] sm:$0xff]  ;;  %vm129_vm9 = vcmp.lt.f32.partialorder %v1208_v4, 0.0 }
  0x1a   : > { %v1344_v59 = vsel %vm332_vm14, %v1340_v57, %v334_v58  ;;  %v123_v13 = vld [vmem:[%s1326_s17] sm:$0xff] }
  0x1b   : > { %v1256_v34 = vpop.eup %1071  ;;  %v121_v18 = vld [vmem:[%s1313_s29] sm:$0xff]  ;;  %v130_v20 = vsel %vm129_vm9, %v123_v13, 1.0  ;;  %vm144_vm9 = vcmp.ne.f32.partialorder %v1236_v25, 0.0 }
  0x1c   : > { %v118_v37 = vmul.f32 %v1256_v34, %v114_v31 }
  0x1e   : > { %v1272_v39 = vadd.f32 %v118_v37, %v98_v36 }
  0x20   : > { %v155_v41 = vsub.f32 %v1270_v38, %v1272_v39 }
  0x22   : > { %vm156_vm11 = vcmp.le.f32.partialorder %v155_v41, 0.0 }
  0x23   : > { %v157_v43 = vsel %vm156_vm11, 0.0, %v155_v41  ;;  %vm1286_vm12 = vmxor %vm156_vm11, %vm1099_vm4  ;;  %vm128_vm11 = vcmp.gt.f32.partialorder %v1208_v4, 0.0 }
  0x24   : > { %v162_v45 = vadd.f32 %v161_v42, %v157_v43  ;;  %vm1292_vm13 = vmand %vm137_vm10, %vm1286_vm12  ;;  %v131_v21 = vsel %vm128_vm11, %v121_v18, %v130_v20 }
  0x25   : > { %v1301_v50 = vsel %vm1292_vm13, %v1202_v1, %v1199_v0  ;;  %v172_v61 = vsel %vm1292_vm13, %v939_v55, %v171_v56  ;;  %1073 = vrcp.f32 %v131_v21 }
  0x26   : > { %v163_v47 = vmul.f32 %v162_v45, %v1236_v25 }
  0x28   : > { %v164_v49 = vmul.f32 %v163_v47, %v74_v5 }
  0x2a   : > { %v1320_v52 = vsel %vm54_vm0, %v165_v48, %v164_v49 }
  0x2b   : > { %v1335_v54 = vadd.f32 %v1301_v50, %v1320_v52 }
  0x2d   : > { %v174_v60 = vmul.f32 %v1335_v54, %v1320_v52 }
  0x2f   : > { %vm175_vm1 = vcmp.ge.f32.partialorder %v174_v60, 0.0  ;;  %vm177_vm2 = vcmp.lt.f32.partialorder %v174_v60, 0.0  ;;  %v1074_v48 = vpop.eup %1073 }
  0x30   : > { %vm1364_vm3 = vmand %vm1274_vm7, %vm175_vm1  ;;  %v180_v63 = vsel %vm177_vm2, %v1335_v54, %v1301_v50  ;;  %v178_v37 = vsel %vm177_vm2, %v1320_v52, 0.0  ;;  %vm142_vm2 = vcmp.eq.f32.partialorder %v1208_v4, 0.0 }
  0x31   : > { %v1373_v0 = vsel %vm1364_vm3, 0.0, %v180_v63  ;;  %v182_v1 = vsel %vm1364_vm3, 0.0, %v172_v61  ;;  %v179_v49 = vsel %vm1364_vm3, %v1301_v50, %v178_v37  ;;  %vm143_vm3 = vmand %vm1263_vm5, %vm142_vm2 }
  0x32   : > { %190 = vst [vmem:[%s1354_s23] sm:$0xff] %v1373_v0  ;;  %192 = vst [vmem:[%s1360_s27] sm:$0xff] %v182_v1  ;;  %v183_v58 = vand.u32 2147483647, %v179_v49  ;;  %v185_v60 = vmul.f32 %v1074_v48, %v182_v1 }
  0x34   : > { %v184_v1 = vmul.f32 %v1240_v28, %v183_v58 }
  0x39   : > { %v940_v2 = vld [vmem:[%s1192_s22 + $0x80] sm:$0xff] }
  0x3a   : > { %v943_v3 = vld [vmem:[%s1192_s22 + $0x40] sm:$0xff] }
  0x3b   : > { %v198_v5 = vsel %vm1292_vm13, %v940_v2, %v943_v3  ;;  %v942_v7 = vld [vmem:[%s1307_s25 + $0x80] sm:$0xff]  ;;  %v186_v2 = vsub.f32 1.0, %v185_v60 }
  0x3c   : > { %v201_v6 = vadd.f32 %v198_v5, %v1335_v54  ;;  %v944_v8 = vld [vmem:[%s1307_s25 + $0x40] sm:$0xff] }
  0x3d   : > { %v200_v12 = vsel %vm1292_vm13, %v942_v7, %v944_v8 }
  0x3e   : > { %v205_v9 = vmul.f32 %v201_v6, %v1335_v54  ;;  %v202_v10 = vmul.f32 %v201_v6, %v1320_v52 }
  0x40   : > { %vm203_vm6 = vcmp.ge.f32.partialorder %v202_v10, 0.0  ;;  %vm206_vm8 = vcmp.lt.f32.partialorder %v205_v9, 0.0 }
  0x41   : > { %vm1395_vm10 = vmand %vm1274_vm7, %vm203_vm6  ;;  %v209_v15 = vsel %vm206_vm8, %v201_v6, %v198_v5  ;;  %v207_v55 = vsel %vm206_vm8, %v1335_v54, 0.0  ;;  %vm147_vm6 = vcmp.lt.f32.partialorder %v1236_v25, 0.0  ;;  %vm146_vm8 = vcmp.gt.f32.partialorder %v1236_v25, 0.0 }
  0x42   : > { %v210_v16 = vsel %vm1395_vm10, 0.0, %v209_v15  ;;  %v211_v17 = vsel %vm1395_vm10, 0.0, %v200_v12  ;;  %v208_v61 = vsel %vm1395_vm10, %v198_v5, %v207_v55  ;;  %v148_v62 = vsel %vm147_vm6, %v121_v18, 0.0  ;;  %vm1451_vm10 = vmand %vm143_vm3, %vm144_vm9 }
  0x43   : > { %946 = vst [vmem:[%s1354_s23 + $0x40] sm:$0xff] %v210_v16  ;;  %948 = vst [vmem:[%s1360_s27 + $0x40] sm:$0xff] %v211_v17  ;;  %v212_v50 = vand.u32 2147483647, %v208_v61  ;;  %v214_v54 = vmul.f32 %v1074_v48, %v211_v17  ;;  %v149_v9 = vsel %vm146_vm8, %v123_v13, %v148_v62  ;;  %v187_v17 = vmul.f32 %v186_v2, %v184_v1 }
  0x44   : > { %v222_v18 = vadd.f32 %v210_v16, %v1373_v0  ;;  %vm160_vm11 = vmand %vm1451_vm10, %vm1286_vm12 }
  0x45   : > { %v213_v10 = vmul.f32 %v1240_v28, %v212_v50  ;;  %v215_v12 = vsub.f32 1.0, %v214_v54 }
  0x47   : > { %v216_v16 = vmul.f32 %v215_v12, %v213_v10  ;;  %v1533_v12 = vld [vmem:[%s1313_s29 + $0x80] sm:$0xff]  ;;  %s682_s29 = scalar_lea.vmem %s1879_s12, %s1186_s19 }
  0x4a   : > { %v949_v22 = vld [vmem:[%s1192_s22 + $0xc0] sm:$0xff] }
  0x4b   : > { %v952_v23 = vld [vmem:[%s1192_s22 + $0x80] sm:$0xff] }
  0x4c   : > { %v227_v24 = vsel %vm1292_vm13, %v949_v22, %v952_v23  ;;  %v951_v33 = vld [vmem:[%s1307_s25 + $0xc0] sm:$0xff] }
  0x4d   : > { %v230_v27 = vadd.f32 %v227_v24, %v201_v6  ;;  %v953_v36 = vld [vmem:[%s1307_s25 + $0x80] sm:$0xff] }
  0x4e   : > { %v229_v43 = vsel %vm1292_vm13, %v951_v33, %v953_v36 }
  0x4f   : > { %v231_v29 = vmul.f32 %v230_v27, %v1320_v52  ;;  %v234_v31 = vmul.f32 %v230_v27, %v201_v6 }
  0x51   : > { %vm232_vm14 = vcmp.ge.f32.partialorder %v231_v29, 0.0  ;;  %vm235_vm15 = vcmp.lt.f32.partialorder %v234_v31, 0.0 }
  0x52   : > { %vm1419_vm1 = vmand %vm1274_vm7, %vm232_vm14  ;;  %v238_v42 = vsel %vm235_vm15, %v230_v27, %v227_v24  ;;  %v236_v56 = vsel %vm235_vm15, %v201_v6, 0.0 }
  0x53   : > { %v239_v45 = vsel %vm1419_vm1, 0.0, %v238_v42  ;;  %v240_v47 = vsel %vm1419_vm1, 0.0, %v229_v43  ;;  %v237_v63 = vsel %vm1419_vm1, %v227_v24, %v236_v56 }
  0x54   : > { %955 = vst [vmem:[%s1354_s23 + $0x80] sm:$0xff] %v239_v45  ;;  %957 = vst [vmem:[%s1360_s27 + $0x80] sm:$0xff] %v240_v47  ;;  %v241_v6 = vand.u32 2147483647, %v237_v63  ;;  %v243_v7 = vmul.f32 %v1074_v48, %v240_v47  ;;  %v251_v33 = vadd.f32 %v239_v45, %v222_v18  ;;  %v217_v45 = vadd.f32 %v216_v16, %v187_v17 }
  0x56   : > { %v242_v20 = vmul.f32 %v1240_v28, %v241_v6  ;;  %v244_v13 = vsub.f32 1.0, %v243_v7 }
  0x58   : > { %v245_v41 = vmul.f32 %v244_v13, %v242_v20 }
  0x5a   : > { %v246_v49 = vadd.f32 %v245_v41, %v217_v45 }
  0x5b   : > { %v958_v4 = vld [vmem:[%s1192_s22 + $0xc0] sm:$0xff] }
  0x5c   : > { %v253_v3 = vsel %vm1292_vm13, %v1320_v52, %v958_v4  ;;  %v959_v15 = vld [vmem:[%s1307_s25 + $0xc0] sm:$0xff] }
  0x5d   : > { %v256_v5 = vadd.f32 %v253_v3, %v230_v27  ;;  %v255_v22 = vsel %vm1292_vm13, %v149_v9, %v959_v15 }
  0x5f   : > { %v257_v25 = vmul.f32 %v256_v5, %v1320_v52  ;;  %v260_v14 = vmul.f32 %v256_v5, %v230_v27  ;;  %vm287_vm2 = vcmp.ne.f32.partialorder %v256_v5, 0.0 }
  0x61   : > { %vm258_vm14 = vcmp.ge.f32.partialorder %v257_v25, 0.0  ;;  %vm261_vm15 = vcmp.lt.f32.partialorder %v260_v14, 0.0  ;;  %v1544_v14 = vld [vmem:[%s1326_s17 + $0x80] sm:$0xff]  ;;  %s680_s17 = scalar_lea.vmem %s1878_s11, %s1186_s19 }
  0x62   : > { %vm259_vm1 = vmand %vm1274_vm7, %vm258_vm14  ;;  %v264_v21 = vsel %vm261_vm15, %v256_v5, %v253_v3  ;;  %v262_v0 = vsel %vm261_vm15, %v230_v27, 0.0 }
  0x63   : > { %v265_v23 = vsel %vm259_vm1, 0.0, %v264_v21  ;;  %vm288_vm6 = vmand %vm259_vm1, %vm287_vm2  ;;  %v263_v24 = vsel %vm259_vm1, %v253_v3, %v262_v0  ;;  %v266_v29 = vsel %vm259_vm1, 0.0, %v255_v22 }
  0x64   : > { %v289_v31 = vsel %vm160_vm11, %v1320_v52, %v265_v23  ;;  %v267_v36 = vand.u32 2147483647, %v263_v24  ;;  %v269_v37 = vmul.f32 %v1074_v48, %v266_v29  ;;  %vm291_vm13 = vmor %vm288_vm6, %vm160_vm11 }
  0x65   : > { %v290_v46 = vsel %vm288_vm6, %v256_v5, %v289_v31  ;;  %v292_v27 = vsel %vm291_vm13, %v149_v9, %v266_v29  ;;  %v1529_v9 = vld [vmem:[%s1229_s28 + $0x80] sm:$0xff]  ;;  %s684_s28 = scalar_lea.vmem %s1880_s13, %s1186_s19 }
  0x66   : > { %961 = vst [vmem:[%s1354_s23 + $0xc0] sm:$0xff] %v290_v46  ;;  %v268_v42 = vmul.f32 %v1240_v28, %v267_v36  ;;  %v270_v43 = vsub.f32 1.0, %v269_v37  ;;  %963 = vst [vmem:[%s1360_s27 + $0xc0] sm:$0xff] %v292_v27  ;;  %v297_v52 = vadd.f32 %v290_v46, %v251_v33 }
  0x68   : > { %v271_v47 = vmul.f32 %v270_v43, %v268_v42  ;;  %v298_v48 = vand.u32 2147483647, %v297_v52 }
  0x6a   : > { %v299_v44 = vmul.f32 %v1240_v28, %v298_v48  ;;  %v1483_v55 = vadd.f32 %v271_v47, %v246_v49 }
  0x6c   : > { %v300_v56 = vsub.f32 %v299_v44, %v1246_v30  ;;  %v1499_v28 = vadd.f32 %v1483_v55, %v1270_v38 }
  0x6d   : > { %v1487_v58 = vld [vmem:[%s1192_s22 + $0x1c0] sm:$0xff] }
  0x6e   : > { %v974_v60 = vld [vmem:[%s1192_s22 + $0x100] sm:$0xff]  ;;  %v1492_v63 = vadd.f32 %v300_v56, %v1272_v39  ;;  %vm314_vm12 = vcmp.gt.f32.partialorder %v1487_v58, 0.0  ;;  %vm315_vm9 = vcmp.lt.f32.partialorder %v1487_v58, 0.0  ;;  %v319_v30 = vmul.f32 %v1487_v58, %v1316_v51 }
  0x6f   : > { %v977_v61 = vld [vmem:[%s1192_s22 + $0x140] sm:$0xff]  ;;  %v316_v4 = vsel %vm315_vm9, %v1340_v57, 1.0  ;;  %vm324_vm3 = vcmp.ne.f32.partialorder %v1487_v58, 0.0  ;;  %vm320_vm11 = vcmp.eq.f32.partialorder %v974_v60, 0.0  ;;  %vm526_vm9 = vcmp.lt.f32.partialorder %v1529_v9, 0.0 }
  0x70   : > { %v348_v50 = vadd.f32 %v977_v61, %v974_v60  ;;  %v978_v54 = vld [vmem:[%s1192_s22 + $0x180] sm:$0xff]  ;;  %v317_v1 = vsel %vm314_vm12, %v1329_v53, %v316_v4  ;;  %v341_v39 = vsub.f32 %v1499_v28, %v1492_v63  ;;  %vm325_vm8 = vmand %vm54_vm0, %vm324_vm3  ;;  %vm326_vm10 = vcmp.lt.f32.partialorder %v319_v30, 0.0 }
  0x71   : > { %vm1514_vm15 = vmor %vm325_vm8, %vm326_vm10  ;;  %vm322_vm2 = vcmp.gt.f32.partialorder %v319_v30, 0.0  ;;  %vm525_vm12 = vcmp.gt.f32.partialorder %v1529_v9, 0.0  ;;  %1075 = vrcp.f32 %v317_v1  ;;  %v527_v15 = vsel %vm526_vm9, %v1533_v12, 0.0  ;;  %v982_v16 = vld [vmem:[%s1307_s25 + $0x100] sm:$0xff] }
  0x72   : > { %v350_v62 = vadd.f32 %v978_v54, %v348_v50  ;;  %vm342_vm14 = vcmp.le.f32.partialorder %v341_v39, 0.0  ;;  %vm321_vm1 = vmand %vm1263_vm5, %vm320_vm11  ;;  %v1549_v20 = vsel %vm525_vm12, %v1544_v14, %v527_v15  ;;  %1077 = vrcp.f32 %v1270_v38 }
  0x73   : > { %v343_v5 = vsel %vm342_vm14, 0.0, %v341_v39  ;;  %vm1524_vm6 = vmxor %vm342_vm14, %vm1099_vm4  ;;  %1079 = vrcp.f32 %v1499_v28 }
  0x74   : > { %v351_v2 = vadd.f32 %v1487_v58, %v350_v62  ;;  %vm323_vm13 = vmand %vm321_vm1, %vm322_vm2 }
  0x75   : > { %vm1539_vm3 = vmand %vm323_vm13, %vm1524_vm6 }
  0x76   : > { %v352_v57 = vand.u32 2147483647, %v351_v2  ;;  %v358_v18 = vsub.f32 0.0, %v351_v2  ;;  %v362_v21 = vsel %vm1539_vm3, %v977_v61, %v974_v60 }
  0x78   : > { %v1512_v3 = vmul.f32 %v1249_v32, %v352_v57 }
  0x7a   : > { %v354_v6 = vsel %vm1514_vm15, %v1512_v3, 0.0 }
  0x7b   : > { %v355_v8 = vadd.f32 %v354_v6, %v343_v5  ;;  %v1566_v31 = vpop.eup %1075 }
  0x7d   : > { %v356_v10 = vmul.f32 %v1316_v51, %v355_v8 }
  0x7f   : > { %v357_v17 = vmul.f32 %v1213_v11, %v356_v10  ;;  %v980_v11 = vld [vmem:[%s1307_s25 + $0x140] sm:$0xff] }
  0x80   : > { %v365_v24 = vsel %vm1539_vm3, %v980_v11, %v982_v16 }
  0x81   : > { %v1553_v13 = vsel %vm54_vm0, %v358_v18, %v357_v17 }
  0x82   : > { %v366_v22 = vadd.f32 %v362_v21, %v1553_v13 }
  0x84   : > { %v367_v0 = vmul.f32 %v366_v22, %v1553_v13 }
  0x86   : > { %vm368_vm8 = vcmp.ge.f32.partialorder %v367_v0, 0.0  ;;  %vm370_vm10 = vcmp.lt.f32.partialorder %v367_v0, 0.0 }
  0x87   : > { %vm369_vm11 = vmand %vm1514_vm15, %vm368_vm8  ;;  %v373_v23 = vsel %vm370_vm10, %v366_v22, %v362_v21  ;;  %v371_v29 = vsel %vm370_vm10, %v1553_v13, 0.0  ;;  %vm328_vm8 = vcmp.eq.f32.partialorder %v1487_v58, 0.0 }
  0x88   : > { %v1568_v33 = vsel %vm369_vm11, 0.0, %v373_v23  ;;  %v372_v36 = vsel %vm369_vm11, %v362_v21, %v371_v29  ;;  %v375_v37 = vsel %vm369_vm11, 0.0, %v365_v24  ;;  %vm329_vm10 = vmand %vm1263_vm5, %vm328_vm8  ;;  %vm330_vm11 = vcmp.ne.f32.partialorder %v1316_v51, 0.0 }
  0x89   : > { %984 = vst [vmem:[%s1354_s23 + $0x100] sm:$0xff] %v1568_v33  ;;  %v376_v46 = vand.u32 2147483647, %v372_v36  ;;  %v378_v27 = vmul.f32 %v1566_v31, %v375_v37  ;;  %986 = vst [vmem:[%s1360_s27 + $0x100] sm:$0xff] %v375_v37 }
  0x8b   : > { %v377_v41 = vmul.f32 %v1249_v32, %v376_v46  ;;  %v379_v42 = vsub.f32 1.0, %v378_v27  ;;  %v1078_v46 = vpop.eup %1077 }
  0x8d   : > { %v380_v43 = vmul.f32 %v379_v42, %v377_v41 }
  0x90   : > { %v987_v52 = vld [vmem:[%s1192_s22 + $0x180] sm:$0xff] }
  0x91   : > { %v990_v45 = vld [vmem:[%s1192_s22 + $0x140] sm:$0xff] }
  0x92   : > { %v391_v47 = vsel %vm1539_vm3, %v987_v52, %v990_v45  ;;  %v989_v49 = vld [vmem:[%s1307_s25 + $0x180] sm:$0xff] }
  0x93   : > { %v394_v48 = vadd.f32 %v391_v47, %v366_v22  ;;  %v991_v44 = vld [vmem:[%s1307_s25 + $0x140] sm:$0xff] }
  0x94   : > { %v393_v61 = vsel %vm1539_vm3, %v989_v49, %v991_v44 }
  0x95   : > { %v395_v56 = vmul.f32 %v394_v48, %v1553_v13  ;;  %v398_v60 = vmul.f32 %v394_v48, %v366_v22 }
  0x97   : > { %vm396_vm14 = vcmp.ge.f32.partialorder %v395_v56, 0.0  ;;  %vm399_vm1 = vcmp.lt.f32.partialorder %v398_v60, 0.0 }
  0x98   : > { %vm397_vm2 = vmand %vm1514_vm15, %vm396_vm14  ;;  %v400_v50 = vsel %vm399_vm1, %v366_v22, 0.0  ;;  %v402_v54 = vsel %vm399_vm1, %v394_v48, %v391_v47 }
  0x99   : > { %v401_v4 = vsel %vm397_vm2, %v391_v47, %v400_v50  ;;  %v403_v30 = vsel %vm397_vm2, 0.0, %v402_v54  ;;  %v404_v62 = vsel %vm397_vm2, 0.0, %v393_v61  ;;  %vm1620_vm14 = vmand %vm329_vm10, %vm330_vm11 }
  0x9a   : > { %v405_v1 = vand.u32 2147483647, %v401_v4  ;;  %v407_v39 = vmul.f32 %v1566_v31, %v404_v62  ;;  %993 = vst [vmem:[%s1354_s23 + $0x140] sm:$0xff] %v403_v30  ;;  %995 = vst [vmem:[%s1360_s27 + $0x140] sm:$0xff] %v404_v62  ;;  %v415_v51 = vadd.f32 %v403_v30, %v1568_v33 }
  0x9c   : > { %v406_v2 = vmul.f32 %v1249_v32, %v405_v1  ;;  %v408_v57 = vsub.f32 1.0, %v407_v39 }
  0x9e   : > { %v409_v5 = vmul.f32 %v408_v57, %v406_v2 }
  0xa0   : > { %v410_v6 = vadd.f32 %v409_v5, %v380_v43  ;;  %v275_v43 = vmul.f32 %v1078_v46, %v1483_v55 }
  0xa1   : > { %v996_v8 = vld [vmem:[%s1192_s22 + $0x1c0] sm:$0xff] }
  0xa2   : > { %v999_v10 = vld [vmem:[%s1192_s22 + $0x180] sm:$0xff]  ;;  %v276_v55 = vadd.f32 1.0, %v275_v43 }
  0xa3   : > { %v420_v15 = vsel %vm1539_vm3, %v996_v8, %v999_v10  ;;  %v998_v18 = vld [vmem:[%s1307_s25 + $0x1c0] sm:$0xff]  ;;  %v1080_v8 = vpop.eup %1079 }
  0xa4   : > { %v423_v17 = vadd.f32 %v420_v15, %v394_v48  ;;  %v1000_v21 = vld [vmem:[%s1307_s25 + $0x180] sm:$0xff]  ;;  %1081 = vlog2.f32 %v276_v55 }
  0xa5   : > { %v422_v11 = vsel %vm1539_vm3, %v998_v18, %v1000_v21  ;;  %v976_v43 = vld [vmem:[%s1653_s30 + $0x40] sm:$0xff] }
  0xa6   : > { %v424_v22 = vmul.f32 %v423_v17, %v1553_v13  ;;  %v427_v0 = vmul.f32 %v423_v17, %v394_v48 }
  0xa8   : > { %vm425_vm13 = vcmp.ge.f32.partialorder %v424_v22, 0.0  ;;  %vm428_vm12 = vcmp.lt.f32.partialorder %v427_v0, 0.0 }
  0xa9   : > { %vm426_vm9 = vmand %vm1514_vm15, %vm425_vm13  ;;  %v429_v16 = vsel %vm428_vm12, %v394_v48, 0.0  ;;  %v431_v23 = vsel %vm428_vm12, %v423_v17, %v420_v15 }
  0xaa   : > { %v430_v38 = vsel %vm426_vm9, %v420_v15, %v429_v16  ;;  %v432_v24 = vsel %vm426_vm9, 0.0, %v431_v23  ;;  %v433_v29 = vsel %vm426_vm9, 0.0, %v422_v11 }
  0xab   : > { %v434_v36 = vand.u32 2147483647, %v430_v38  ;;  %v436_v37 = vmul.f32 %v1566_v31, %v433_v29  ;;  %1002 = vst [vmem:[%s1354_s23 + $0x180] sm:$0xff] %v432_v24  ;;  %1004 = vst [vmem:[%s1360_s27 + $0x180] sm:$0xff] %v433_v29  ;;  %v444_v62 = vadd.f32 %v432_v24, %v415_v51  ;;  %v127_v24 = vld [vmem:[%s1674_s20] sm:$0xff] }
  0xad   : > { %v435_v27 = vmul.f32 %v1249_v32, %v434_v36  ;;  %v437_v41 = vsub.f32 1.0, %v436_v37 }
  0xae   : > { %v1082_v15 = vpop.eup %1081 }
  0xaf   : > { %v438_v42 = vmul.f32 %v437_v41, %v435_v27  ;;  %v278_v11 = vmul.f32 0.6931472, %v1082_v15  ;;  %v1703_v27 = vld [vmem:[%s56_s26] sm:$0xff] }
  0xb1   : > { %v439_v52 = vadd.f32 %v438_v42, %v410_v6 }
  0xb2   : > { %v1005_v45 = vld [vmem:[%s1192_s22 + $0x1c0] sm:$0xff] }
  0xb3   : > { %v1006_v47 = vld [vmem:[%s1307_s25 + $0x1c0] sm:$0xff]  ;;  %v446_v48 = vsel %vm1539_vm3, %v1553_v13, %v1005_v45 }
  0xb4   : > { %v448_v49 = vsel %vm1539_vm3, %v1344_v59, %v1006_v47  ;;  %v449_v44 = vadd.f32 %v446_v48, %v423_v17  ;;  %vm346_vm3 = vmand %vm1620_vm14, %vm1524_vm6 }
  0xb5   : > { %vm150_vm6 = vmand %vm1274_vm7, %vm1263_vm5  ;;  %vm523_vm7 = vcmp.ne.f32.partialorder %v1529_v9, 0.0 }
  0xb6   : > { %v450_v58 = vmul.f32 %v449_v44, %v1553_v13  ;;  %v453_v56 = vmul.f32 %v449_v44, %v423_v17  ;;  %vm480_vm12 = vcmp.ne.f32.partialorder %v449_v44, 0.0  ;;  %vm336_vm14 = vmand %vm1514_vm15, %vm1263_vm5 }
  0xb8   : > { %vm451_vm1 = vcmp.ge.f32.partialorder %v450_v58, 0.0  ;;  %vm454_vm2 = vcmp.lt.f32.partialorder %v453_v56, 0.0 }
  0xb9   : > { %vm452_vm13 = vmand %vm1514_vm15, %vm451_vm1  ;;  %v455_v25 = vsel %vm454_vm2, %v423_v17, 0.0  ;;  %v457_v61 = vsel %vm454_vm2, %v449_v44, %v446_v48 }
  0xba   : > { %v456_v50 = vsel %vm452_vm13, %v446_v48, %v455_v25  ;;  %v458_v54 = vsel %vm452_vm13, 0.0, %v457_v61  ;;  %v459_v4 = vsel %vm452_vm13, 0.0, %v448_v49  ;;  %vm481_vm9 = vmand %vm452_vm13, %vm480_vm12  ;;  %v339_v48 = vsel %vm336_vm14, %v976_v43, 0.0 }
  0xbb   : > { %v460_v1 = vand.u32 2147483647, %v456_v50  ;;  %v462_v39 = vmul.f32 %v1566_v31, %v459_v4  ;;  %v482_v33 = vsel %vm346_vm3, %v1553_v13, %v458_v54  ;;  %vm484_vm8 = vmor %vm481_vm9, %vm346_vm3 }
  0xbc   : > { %v483_v30 = vsel %vm481_vm9, %v449_v44, %v482_v33  ;;  %v485_v2 = vsel %vm484_vm8, %v1344_v59, %v459_v4  ;;  %v1023_v44 = vld [vmem:[%s1653_s30 + $0x80] sm:$0xff] }
  0xbd   : > { %v461_v31 = vmul.f32 %v1249_v32, %v460_v1  ;;  %v463_v57 = vsub.f32 1.0, %v462_v39  ;;  %v490_v5 = vadd.f32 %v483_v30, %v444_v62  ;;  %1008 = vst [vmem:[%s1354_s23 + $0x1c0] sm:$0xff] %v483_v30  ;;  %1010 = vst [vmem:[%s1360_s27 + $0x1c0] sm:$0xff] %v485_v2  ;;  %v972_v62 = vld [vmem:[%s1674_s20 + $0x40] sm:$0xff]  ;;  %v285_v39 = vsub.f32 0.0, %v278_v11 }
  0xbf   : > { %v464_v13 = vmul.f32 %v463_v57, %v461_v31  ;;  %v491_v6 = vand.u32 2147483647, %v490_v5 }
  0xc1   : > { %v465_v10 = vadd.f32 %v464_v13, %v439_v52  ;;  %v492_v7 = vmul.f32 %v1249_v32, %v491_v6  ;;  %v279_v52 = vsub.f32 %v278_v11, %v127_v24 }
  0xc3   : > { %v493_v59 = vsub.f32 %v492_v7, %v1512_v3  ;;  %v1661_v17 = vadd.f32 %v465_v10, %v1499_v28  ;;  %v468_v22 = vmul.f32 %v1080_v8, %v465_v10  ;;  %v152_v28 = vld [vmem:[%s1653_s30] sm:$0xff]  ;;  %v283_v13 = vmul.f32 %v279_v52, %v279_v52 }
  0xc4   : > { %v1020_v18 = vld [vmem:[%s1192_s22 + $0x2c0] sm:$0xff]  ;;  %v153_v41 = vsel %vm150_vm6, %v152_v28, 0.0 }
  0xc5   : > { %v1665_v21 = vld [vmem:[%s1192_s22 + $0x200] sm:$0xff]  ;;  %v494_v3 = vadd.f32 %v493_v59, %v1492_v63  ;;  %v512_v0 = vmul.f32 %v1020_v18, %v1529_v9  ;;  %vm517_vm11 = vcmp.ne.f32.partialorder %v1020_v18, 0.0  ;;  %vm507_vm1 = vcmp.gt.f32.partialorder %v1020_v18, 0.0 }
  0xc6   : > { %v1668_v32 = vld [vmem:[%s1192_s22 + $0x240] sm:$0xff]  ;;  %vm513_vm10 = vcmp.eq.f32.partialorder %v1665_v21, 0.0  ;;  %vm508_vm2 = vcmp.lt.f32.partialorder %v1020_v18, 0.0  ;;  %vm518_vm12 = vmand %vm54_vm0, %vm517_vm11  ;;  %v469_v46 = vadd.f32 1.0, %v468_v22  ;;  %v273_v42 = vadd.f32 %v153_v41, %v1703_v27 }
  0xc7   : > { %vm514_vm3 = vmand %vm1263_vm5, %vm513_vm10  ;;  %v541_v63 = vadd.f32 %v1668_v32, %v1665_v21  ;;  %vm515_vm13 = vcmp.gt.f32.partialorder %v512_v0, 0.0  ;;  %vm519_vm9 = vcmp.lt.f32.partialorder %v512_v0, 0.0  ;;  %v534_v16 = vsub.f32 %v1661_v17, %v494_v3  ;;  %v1025_v23 = vld [vmem:[%s1192_s22 + $0x280] sm:$0xff] }
  0xc8   : > { %v509_v38 = vsel %vm508_vm2, %v1544_v14, 1.0  ;;  %vm1698_vm8 = vmand %vm514_vm3, %vm515_vm13  ;;  %vm521_vm3 = vcmp.eq.f32.partialorder %v1020_v18, 0.0  ;;  %1083 = vlog2.f32 %v469_v46  ;;  %v280_v58 = vmul.f32 %v279_v52, %v273_v42  ;;  %v1027_v10 = vld [vmem:[%s1307_s25 + $0x240] sm:$0xff] }
  0xc9   : > { %v543_v36 = vadd.f32 %v1025_v23, %v541_v63  ;;  %v510_v37 = vsel %vm507_vm1, %v1533_v12, %v509_v38  ;;  %vm1710_vm10 = vmor %vm518_vm12, %vm519_vm9  ;;  %vm535_vm11 = vcmp.le.f32.partialorder %v534_v16, 0.0  ;;  %v340_v56 = vadd.f32 %v339_v48, %v153_v41  ;;  %v1029_v7 = vld [vmem:[%s1307_s25 + $0x200] sm:$0xff] }
  0xca   : > { %vm1718_vm1 = vmxor %vm535_vm11, %vm1099_vm4  ;;  %v536_v53 = vsel %vm535_vm11, 0.0, %v534_v16  ;;  %v281_v50 = vadd.f32 %v280_v58, %v278_v11  ;;  %1085 = vrcp.f32 %v510_v37 }
  0xcb   : > { %v544_v40 = vadd.f32 %v1020_v18, %v543_v36  ;;  %vm1727_vm6 = vmand %vm1698_vm8, %vm1718_vm1  ;;  %v466_v2 = vadd.f32 %v340_v56, %v1703_v27  ;;  %1087 = vrcp.f32 %v1661_v17 }
  0xcc   : > { %vm522_vm4 = vmand %vm1263_vm5, %vm521_vm3  ;;  %v282_v30 = vsub.f32 0.0, %v281_v50  ;;  %v558_v59 = vsel %vm1727_vm6, %v1027_v10, %v1029_v7 }
  0xcd   : > { %v545_v47 = vand.u32 2147483647, %v544_v40  ;;  %vm1738_vm2 = vmand %vm522_vm4, %vm523_vm7  ;;  %v551_v1 = vsub.f32 0.0, %v544_v40 }
  0xce   : > { %vm539_vm13 = vmand %vm1738_vm2, %vm1718_vm1  ;;  %v284_v26 = vadd.f32 %v283_v13, %v282_v30 }
  0xcf   : > { %v546_v55 = vmul.f32 %v1256_v34, %v545_v47  ;;  %vm529_vm15 = vmand %vm1710_vm10, %vm1263_vm5 }
  0xd0   : > { %v532_v51 = vsel %vm529_vm15, %v1023_v44, 0.0 }
  0xd1   : > { %v547_v60 = vsel %vm1710_vm10, %v546_v55, 0.0  ;;  %v1755_v61 = vadd.f32 %v532_v51, %v340_v56 }
  0xd2   : > { %v548_v25 = vadd.f32 %v547_v60, %v536_v53  ;;  %v1084_v4 = vpop.eup %1083 }
  0xd3   : > { %v471_v33 = vmul.f32 0.6931472, %v1084_v4 }
  0xd4   : > { %v549_v54 = vmul.f32 %v1529_v9, %v548_v25  ;;  %v555_v9 = vsel %vm1727_vm6, %v1668_v32, %v1665_v21  ;;  %v1780_v3 = vpop.eup %1085 }
  0xd5   : > { %v1769_v57 = vsub.f32 %v285_v39, %v471_v33  ;;  %v472_v5 = vsub.f32 %v471_v33, %v972_v62  ;;  %v1088_v49 = vpop.eup %1087 }
  0xd6   : > { %v550_v35 = vmul.f32 %v1221_v19, %v549_v54 }
  0xd7   : > { %v473_v6 = vmul.f32 %v472_v5, %v466_v2  ;;  %v476_v22 = vmul.f32 %v472_v5, %v472_v5 }
  0xd8   : > { %v1763_v31 = vsel %vm54_vm0, %v551_v1, %v550_v35 }
  0xd9   : > { %v559_v19 = vadd.f32 %v555_v9, %v1763_v31  ;;  %v474_v15 = vadd.f32 %v473_v6, %v471_v33 }
  0xdb   : > { %v560_v8 = vmul.f32 %v559_v19, %v1763_v31  ;;  %v475_v32 = vsub.f32 %v284_v26, %v474_v15 }
  0xdd   : > { %vm561_vm0 = vcmp.ge.f32.partialorder %v560_v8, 0.0  ;;  %vm563_vm5 = vcmp.lt.f32.partialorder %v560_v8, 0.0  ;;  %v1785_v23 = vadd.f32 %v476_v22, %v475_v32 }
  0xde   : > { %vm562_vm14 = vmand %vm1710_vm10, %vm561_vm0  ;;  %v566_v18 = vsel %vm563_vm5, %v559_v19, %v555_v9  ;;  %v564_v21 = vsel %vm563_vm5, %v1763_v31, 0.0 }
  0xdf   : > { %v567_v0 = vsel %vm562_vm14, 0.0, %v566_v18  ;;  %v568_v28 = vsel %vm562_vm14, 0.0, %v558_v59  ;;  %v565_v63 = vsel %vm562_vm14, %v555_v9, %v564_v21 }
  0xe0   : > { %1031 = vst [vmem:[%s1354_s23 + $0x200] sm:$0xff] %v567_v0  ;;  %1033 = vst [vmem:[%s1360_s27 + $0x200] sm:$0xff] %v568_v28  ;;  %v569_v11 = vand.u32 2147483647, %v565_v63  ;;  %v571_v16 = vmul.f32 %v1780_v3, %v568_v28 }
  0xe2   : > { %v570_v38 = vmul.f32 %v1256_v34, %v569_v11  ;;  %v572_v24 = vsub.f32 1.0, %v571_v16 }
  0xe4   : > { %v573_v29 = vmul.f32 %v572_v24, %v570_v38 }
  0xe7   : > { %v1034_v36 = vld [vmem:[%s1192_s22 + $0x280] sm:$0xff] }
  0xe8   : > { %v1037_v37 = vld [vmem:[%s1192_s22 + $0x240] sm:$0xff] }
  0xe9   : > { %v583_v46 = vsel %vm1727_vm6, %v1034_v36, %v1037_v37  ;;  %v1036_v42 = vld [vmem:[%s1307_s25 + $0x280] sm:$0xff] }
  0xea   : > { %v586_v41 = vadd.f32 %v583_v46, %v559_v19  ;;  %v1038_v43 = vld [vmem:[%s1307_s25 + $0x240] sm:$0xff] }
  0xeb   : > { %v585_v47 = vsel %vm1727_vm6, %v1036_v42, %v1038_v43 }
  0xec   : > { %v587_v40 = vmul.f32 %v586_v41, %v1763_v31  ;;  %v590_v52 = vmul.f32 %v586_v41, %v559_v19 }
  0xee   : > { %vm588_vm12 = vcmp.ge.f32.partialorder %v587_v40, 0.0  ;;  %vm591_vm9 = vcmp.lt.f32.partialorder %v590_v52, 0.0 }
  0xef   : > { %vm589_vm8 = vmand %vm1710_vm10, %vm588_vm12  ;;  %v594_v48 = vsel %vm591_vm9, %v586_v41, %v583_v46  ;;  %v592_v44 = vsel %vm591_vm9, %v559_v19, 0.0 }
  0xf0   : > { %v595_v55 = vsel %vm589_vm8, 0.0, %v594_v48  ;;  %v596_v58 = vsel %vm589_vm8, 0.0, %v585_v47  ;;  %v593_v56 = vsel %vm589_vm8, %v583_v46, %v592_v44  ;;  %v1019_v47 = vld [vmem:[%s1674_s20 + $0x80] sm:$0xff]  ;;  %v656_v44 = vadd.f32 %v1755_v61, %v1703_v27 }
  0xf1   : > { %1040 = vst [vmem:[%s1354_s23 + $0x240] sm:$0xff] %v595_v55  ;;  %1042 = vst [vmem:[%s1360_s27 + $0x240] sm:$0xff] %v596_v58  ;;  %v597_v53 = vand.u32 2147483647, %v593_v56  ;;  %v599_v60 = vmul.f32 %v1780_v3, %v596_v58 }
  0xf3   : > { %v598_v51 = vmul.f32 %v1256_v34, %v597_v53  ;;  %v600_v25 = vsub.f32 1.0, %v599_v60 }
  0xf5   : > { %v601_v50 = vmul.f32 %v600_v25, %v598_v51 }
  0xf7   : > { %v602_v54 = vadd.f32 %v601_v50, %v573_v29 }
  0xf8   : > { %v1043_v4 = vld [vmem:[%s1192_s22 + $0x2c0] sm:$0xff] }
  0xf9   : > { %v1046_v62 = vld [vmem:[%s1192_s22 + $0x280] sm:$0xff] }
  0xfa   : > { %v611_v35 = vsel %vm1727_vm6, %v1043_v4, %v1046_v62  ;;  %v1045_v39 = vld [vmem:[%s1307_s25 + $0x2c0] sm:$0xff] }
  0xfb   : > { %v614_v1 = vadd.f32 %v611_v35, %v586_v41  ;;  %v1047_v33 = vld [vmem:[%s1307_s25 + $0x280] sm:$0xff] }
  0xfc   : > { %v613_v9 = vsel %vm1727_vm6, %v1045_v39, %v1047_v33 }
  0xfd   : > { %v615_v30 = vmul.f32 %v614_v1, %v1763_v31  ;;  %v618_v2 = vmul.f32 %v614_v1, %v586_v41 }
  0xff   : > { %vm616_vm11 = vcmp.ge.f32.partialorder %v615_v30, 0.0  ;;  %vm619_vm3 = vcmp.lt.f32.partialorder %v618_v2, 0.0 }
 0x100   : > { %vm617_vm7 = vmand %vm1710_vm10, %vm616_vm11  ;;  %v622_v5 = vsel %vm619_vm3, %v614_v1, %v611_v35  ;;  %v620_v19 = vsel %vm619_vm3, %v586_v41, 0.0 }
 0x101   : > { %v623_v13 = vsel %vm617_vm7, 0.0, %v622_v5  ;;  %v624_v6 = vsel %vm617_vm7, 0.0, %v613_v9  ;;  %v621_v8 = vsel %vm617_vm7, %v611_v35, %v620_v19 }
 0x102   : > { %1049 = vst [vmem:[%s1354_s23 + $0x280] sm:$0xff] %v623_v13  ;;  %1051 = vst [vmem:[%s1360_s27 + $0x280] sm:$0xff] %v624_v6  ;;  %v625_v10 = vand.u32 2147483647, %v621_v8  ;;  %v627_v7 = vmul.f32 %v1780_v3, %v624_v6 }
 0x104   : > { %v626_v26 = vmul.f32 %v1256_v34, %v625_v10  ;;  %v628_v15 = vsub.f32 1.0, %v627_v7 }
 0x106   : > { %v629_v59 = vmul.f32 %v628_v15, %v626_v26 }
 0x108   : > { %v630_v18 = vadd.f32 %v629_v59, %v602_v54 }
 0x109   : > { %v1052_v21 = vld [vmem:[%s1192_s22 + $0x2c0] sm:$0xff] }
 0x10a   : > { %v1053_v32 = vld [vmem:[%s1307_s25 + $0x2c0] sm:$0xff]  ;;  %v636_v22 = vsel %vm1727_vm6, %v1763_v31, %v1052_v21 }
 0x10b   : > { %v638_v0 = vsel %vm1727_vm6, %v1549_v20, %v1053_v32  ;;  %v639_v28 = vadd.f32 %v636_v22, %v614_v1 }
 0x10d   : > { %v640_v63 = vmul.f32 %v639_v28, %v1763_v31  ;;  %v643_v11 = vmul.f32 %v639_v28, %v614_v1  ;;  %vm670_vm5 = vcmp.ne.f32.partialorder %v639_v28, 0.0 }
 0x10f   : > { %vm641_vm4 = vcmp.ge.f32.partialorder %v640_v63, 0.0  ;;  %vm644_vm15 = vcmp.lt.f32.partialorder %v643_v11, 0.0 }
 0x110   : > { %vm642_vm0 = vmand %vm1710_vm10, %vm641_vm4  ;;  %v647_v16 = vsel %vm644_vm15, %v639_v28, %v636_v22  ;;  %v645_v38 = vsel %vm644_vm15, %v614_v1, 0.0 }
 0x111   : > { %v648_v24 = vsel %vm642_vm0, 0.0, %v647_v16  ;;  %v649_v29 = vsel %vm642_vm0, 0.0, %v638_v0  ;;  %vm671_vm6 = vmand %vm642_vm0, %vm670_vm5  ;;  %v646_v45 = vsel %vm642_vm0, %v636_v22, %v645_v38 }
 0x112   : > { %v672_v36 = vsel %vm539_vm13, %v1763_v31, %v648_v24  ;;  %vm674_vm10 = vmor %vm671_vm6, %vm539_vm13  ;;  %v650_v14 = vand.u32 2147483647, %v646_v45  ;;  %v652_v37 = vmul.f32 %v1780_v3, %v649_v29 }
 0x113   : > { %v673_v46 = vsel %vm671_vm6, %v639_v28, %v672_v36  ;;  %v675_v41 = vsel %vm674_vm10, %v1549_v20, %v649_v29 }
 0x114   : > { %1055 = vst [vmem:[%s1354_s23 + $0x2c0] sm:$0xff] %v673_v46  ;;  %1057 = vst [vmem:[%s1360_s27 + $0x2c0] sm:$0xff] %v675_v41  ;;  %v651_v42 = vmul.f32 %v1256_v34, %v650_v14  ;;  %v653_v43 = vsub.f32 1.0, %v652_v37 }
 0x116   : > { %v654_v31 = vmul.f32 %v653_v43, %v651_v42 }
 0x118   : > { %v655_v40 = vadd.f32 %v654_v31, %v630_v18 }
 0x11a   : > { %v658_v12 = vmul.f32 %v1088_v49, %v655_v40  ;;  %v669_v3 = vadd.f32 %v655_v40, %v1661_v17 }
 0x11c   : > { %v659_v52 = vadd.f32 1.0, %v658_v12  ;;  %685 = vst [vmem:[%s684_s28] sm:$0xff] %v669_v3 }
 0x11e   : > { %1089 = vlog2.f32 %v659_v52 }
 0x128   : > { %v1090_v20 = vpop.eup %1089 }
 0x129   : > { %v661_v48 = vmul.f32 0.6931472, %v1090_v20 }
 0x12b   : > { %v668_v34 = vsub.f32 %v1769_v57, %v661_v48  ;;  %v662_v55 = vsub.f32 %v661_v48, %v1019_v47 }
 0x12d   : > { %683 = vst [vmem:[%s682_s29] sm:$0xff] %v668_v34  ;;  %v663_v58 = vmul.f32 %v662_v55, %v656_v44  ;;  %v666_v53 = vmul.f32 %v662_v55, %v662_v55 }
 0x12f   : > { %v664_v17 = vadd.f32 %v663_v58, %v661_v48  ;;  %47 = sbr.rel (!%p45_p0) target bundleno = 1 (0x1), region = 175 }
 0x131   : > { %v665_v56 = vsub.f32 %v1785_v23, %v664_v17 }
 0x133   : > { %v667_v60 = vadd.f32 %v666_v53, %v665_v56 }
 0x135   : > { %681 = vst [vmem:[%s680_s17] sm:$0xff] %v667_v60 }

</bundles_post_ra>
